<compile_context>
chip_gen: v7x
topology: tpu7x:2x2x1
jax: 0.10.0
libtpu: 0.0.40
codegen_flags: <defaults>
</compile_context>

<pallas_src>
import jax
import jax.numpy as jnp
from jax.experimental import pallas as pl
from jax.experimental.pallas import tpu as pltpu

EPS = 1e-5
N_CLS = 20       # real number of classes
PAD_CLS = 128    # lane-dense padded class dim
NEG_BIG = -1e9   # bias for padded (dead) classes -> exp underflows to 0


def mlp_kernel(x_ref,
               w1_ref, g1_ref, be1_ref,
               w2_hbm, g2_ref, be2_ref,
               w3_hbm, g3_ref, be3_ref,
               wc_hbm, bc_ref,
               o_ref,
               w2_buf, w3_buf, wc_buf, sems):
    """Fused MLP forward; later-layer weight DMAs overlap earlier compute."""
    # Kick off all HBM->VMEM weight copies up front so they run under compute.
    cp2 = pltpu.make_async_copy(w2_hbm, w2_buf, sems.at[0])
    cp3 = pltpu.make_async_copy(w3_hbm, w3_buf, sems.at[1])
    cpc = pltpu.make_async_copy(wc_hbm, wc_buf, sems.at[2])
    cp2.start()
    cp3.start()
    cpc.start()

    inv_b = 1.0 / x_ref.shape[0]

    def dense(h_bf16, w):
        # bf16 x bf16 -> f32 accumulate on the MXU.
        return jnp.dot(h_bf16, w, preferred_element_type=jnp.float32)

    def bn_relu(h, g_ref, be_ref):
        # BatchNorm1d (training mode), single-pass moments over the batch axis.
        s1 = jnp.sum(h, axis=0, keepdims=True)
        s2 = jnp.sum(h * h, axis=0, keepdims=True)
        mean = s1 * inv_b
        var = jnp.maximum(s2 * inv_b - mean * mean, 0.0)
        scale = g_ref[...] * jax.lax.rsqrt(var + EPS)      # gamma / sqrt(var+eps)
        shift = be_ref[...] - mean * scale                 # beta - mean*scale
        return jnp.maximum(h * scale + shift, 0.0)         # fused affine + ReLU

    # In-kernel bf16 cast of x; pre-BN linear biases are dropped because BN's
    # mean subtraction cancels them exactly.
    h = bn_relu(dense(x_ref[...].astype(jnp.bfloat16), w1_ref[...]),
                g1_ref, be1_ref)

    cp2.wait()
    h = bn_relu(dense(h.astype(jnp.bfloat16), w2_buf[...]), g2_ref, be2_ref)

    cp3.wait()
    h = bn_relu(dense(h.astype(jnp.bfloat16), w3_buf[...]), g3_ref, be3_ref)

    cpc.wait()
    # Classifier with lane-dense (padded to 128) class dim; padded logits=-1e9.
    logits = dense(h.astype(jnp.bfloat16), wc_buf[...]) + bc_ref[...]

    # Softmax over dim=1 (PyTorch nn.Softmax() on 2-D input).
    m = jnp.max(logits, axis=-1, keepdims=True)
    e = jnp.exp(logits - m)
    denom = jnp.sum(e, axis=-1, keepdims=True)
    o_ref[...] = e * pl.reciprocal(denom, approx=True)      # EUP reciprocal


def _vmem_limit_bytes(resident_bytes):
    """Right-size the scoped VMEM request; clamp per-generation capacity."""
    try:
        cap = int(pltpu.get_tpu_info().vmem_capacity_bytes)
    except Exception:
        cap = 64 << 20  # conservative (v7x physical VMEM)
    want = 2 * resident_bytes + (8 << 20)     # activations + compiler headroom
    return int(min(max(want, 16 << 20), (cap * 3) // 4))


def model_forward(x, params):
    """Returns lane-dense padded probabilities of shape (B, PAD_CLS).

    Columns [N_CLS:] are ~0 (padded classes carry bias -1e9). Downstream
    consumers should mask / fuse the [:, :N_CLS] view rather than paying a
    standalone slice HLO on this microsecond-scale path.
    """
    B = x.shape[0]

    args = (
        x,                                               # f32, cast in-kernel
        params["w1"], params["g1"], params["be1"],
        params["w2"], params["g2"], params["be2"],
        params["w3"], params["g3"], params["be3"],
        params["wc"], params["bc"],
    )

    vmem_spec = pl.BlockSpec(memory_space=pltpu.MemorySpace.VMEM)
    any_spec = pl.BlockSpec(memory_space=pl.ANY)
    in_specs = [
        vmem_spec,                       # x
        vmem_spec, vmem_spec, vmem_spec,  # w1, g1, be1
        any_spec, vmem_spec, vmem_spec,   # w2 (HBM), g2, be2
        any_spec, vmem_spec, vmem_spec,   # w3 (HBM), g3, be3
        any_spec, vmem_spec,              # wc (HBM), bc
    ]

    scratch_shapes = [
        pltpu.VMEM(params["w2"].shape, params["w2"].dtype),
        pltpu.VMEM(params["w3"].shape, params["w3"].dtype),
        pltpu.VMEM(params["wc"].shape, params["wc"].dtype),
        pltpu.SemaphoreType.DMA((3,)),
    ]

    # Resident VMEM footprint = VMEM-spec'd inputs + output + weight scratch.
    resident = 0
    for a, spec in zip(args, in_specs):
        if spec is vmem_spec:
            resident += int(a.size) * a.dtype.itemsize
    resident += B * PAD_CLS * 4                              # output
    for nm in ("w2", "w3", "wc"):
        resident += int(params[nm].size) * params[nm].dtype.itemsize

    out_padded = pl.pallas_call(
        mlp_kernel,
        out_shape=jax.ShapeDtypeStruct((B, PAD_CLS), jnp.float32),
        in_specs=in_specs,
        out_specs=vmem_spec,
        scratch_shapes=scratch_shapes,
        compiler_params=pltpu.CompilerParams(
            vmem_limit_bytes=_vmem_limit_bytes(resident)),
    )(*args)
    return out_padded


def init_params(key):
    """Deterministic synthetic parameters matching the PyTorch module shapes.

    Linear weights are stored pre-transposed (in, out) in bf16.
    fc1/fc2/fc3 biases are omitted (cancelled by BatchNorm's mean subtraction).
    The cls layer is padded 20 -> 128 classes (zero weights, -1e9 bias).
    """
    params = {}
    dims = [(512, 512), (512, 768), (768, 384)]
    keys = jax.random.split(key, len(dims) + 2)
    for idx, ((din, dout), nm) in enumerate(zip(dims, ["1", "2", "3"])):
        w = (jax.random.normal(keys[idx], (din, dout), jnp.float32)
             * (1.0 / jnp.sqrt(din)))
        params[f"w{nm}"] = w.astype(jnp.bfloat16)

    # Classifier (384 -> 20), padded to 128 output lanes.
    wc = (jax.random.normal(keys[-2], (384, N_CLS), jnp.float32)
          * (1.0 / jnp.sqrt(384.0)))
    bc = jax.random.normal(keys[-1], (1, N_CLS), jnp.float32) * 0.01
    wc_pad = jnp.zeros((384, PAD_CLS), jnp.float32).at[:, :N_CLS].set(wc)
    bc_pad = jnp.full((1, PAD_CLS), NEG_BIG, jnp.float32).at[:, :N_CLS].set(bc)
    params["wc"] = wc_pad.astype(jnp.bfloat16)
    params["bc"] = bc_pad  # keep bias in f32 (tiny)

    # BatchNorm affine params (gamma / beta), f32.
    bn_dims = [512, 768, 384]
    bkeys = jax.random.split(jax.random.fold_in(key, 123), 2 * len(bn_dims))
    for idx, (d, nm) in enumerate(zip(bn_dims, ["1", "2", "3"])):
        kg, kb = bkeys[2 * idx], bkeys[2 * idx + 1]
        params[f"g{nm}"] = 1.0 + 0.1 * jax.random.normal(kg, (1, d), jnp.float32)
        params[f"be{nm}"] = 0.1 * jax.random.normal(kb, (1, d), jnp.float32)
    return params


def reference_forward(x, p):
    """Plain-JAX reference (same bf16 matmul precision as the kernel)."""
    def dense(h, w):
        return jnp.dot(h.astype(jnp.bfloat16), w,
                       preferred_element_type=jnp.float32)

    def bn_relu(h, g, be):
        mean = jnp.mean(h, axis=0, keepdims=True)
        var = jnp.mean((h - mean) ** 2, axis=0, keepdims=True)
        return jnp.maximum((h - mean) * jax.lax.rsqrt(var + EPS) * g + be, 0.0)

    h = bn_relu(dense(x, p["w1"]), p["g1"], p["be1"])
    h = bn_relu(dense(h, p["w2"]), p["g2"], p["be2"])
    h = bn_relu(dense(h, p["w3"]), p["g3"], p["be3"])
    logits = dense(h, p["wc"]) + p["bc"]          # padded logits; pads ~ -1e9
    return jax.nn.softmax(logits, axis=-1)[:, :N_CLS]


if __name__ == "__main__":
    key = jax.random.PRNGKey(0)
    kx, kp = jax.random.split(key)

    B = 16  # small batch consistent with the DDP training example
    x = jax.random.normal(kx, (B, 512), jnp.float32)
    params = init_params(kp)

    out_padded = model_forward(x, params)
    out_padded = jax.block_until_ready(out_padded)

    # Test-harness-only slice back to the 20 real classes for comparison.
    out = out_padded[:, :N_CLS]

    ref = reference_forward(x, params)
    assert out_padded.shape == (B, PAD_CLS)
    assert out.shape == (B, N_CLS)
    assert bool(jnp.all(jnp.isfinite(out_padded)))
    # Padded classes must carry (near-)zero probability.
    assert bool(jnp.all(out_padded[:, N_CLS:] < 1e-6))
    # bf16 matmuls are matched between kernel and reference; remaining diffs are
    # single-pass BN moments and the approximate (EUP) softmax reciprocal.
    assert jnp.allclose(out, ref, atol=2e-3, rtol=2e-3), "mismatch vs reference"
    assert jnp.allclose(jnp.sum(out, axis=-1), 1.0, atol=1e-2)

    print("KERNEL_OK")
</pallas_src>

<mosaic_0001>
module attributes {stable_mosaic.version = 11 : i64} {
  func.func @mlp_kernel(%arg0: memref<16x512xf32, #tpu.memory_space<vmem>>, %arg1: memref<512x512xbf16, #tpu.memory_space<vmem>>, %arg2: memref<1x512xf32, #tpu.memory_space<vmem>>, %arg3: memref<1x512xf32, #tpu.memory_space<vmem>>, %arg4: memref<512x768xbf16, #tpu.memory_space<any>>, %arg5: memref<1x768xf32, #tpu.memory_space<vmem>>, %arg6: memref<1x768xf32, #tpu.memory_space<vmem>>, %arg7: memref<768x384xbf16, #tpu.memory_space<any>>, %arg8: memref<1x384xf32, #tpu.memory_space<vmem>>, %arg9: memref<1x384xf32, #tpu.memory_space<vmem>>, %arg10: memref<384x128xbf16, #tpu.memory_space<any>>, %arg11: memref<1x128xf32, #tpu.memory_space<vmem>>, %arg12: memref<16x128xf32, #tpu.memory_space<vmem>>, %arg13: memref<512x768xbf16, #tpu.memory_space<vmem>>, %arg14: memref<768x384xbf16, #tpu.memory_space<vmem>>, %arg15: memref<384x128xbf16, #tpu.memory_space<vmem>>, %arg16: memref<3x!tpu.dma_semaphore, #tpu.memory_space<semaphore_mem>>) attributes {dimension_semantics = [], scalar_prefetch = 0 : i64, scratch_operands = 4 : i64, tpu.core_type = #tpu.core_type<tc>} {
    %c0_i32 = arith.constant 0 : i32
    %0 = tpu.memref_slice %arg16[%c0_i32] : memref<3x!tpu.dma_semaphore, #tpu.memory_space<semaphore_mem>> -> memref<1x!tpu.dma_semaphore, #tpu.memory_space<semaphore_mem>>
    %1 = tpu.memref_squeeze %0 : memref<1x!tpu.dma_semaphore, #tpu.memory_space<semaphore_mem>> -> memref<!tpu.dma_semaphore, #tpu.memory_space<semaphore_mem>>
    tpu.enqueue_dma source(%arg4 : memref<512x768xbf16, #tpu.memory_space<any>>) target(%arg13 : memref<512x768xbf16, #tpu.memory_space<vmem>>) target_semaphore(%1 : memref<!tpu.dma_semaphore, #tpu.memory_space<semaphore_mem>>)
    %c1_i32 = arith.constant 1 : i32
    %2 = tpu.memref_slice %arg16[%c1_i32] : memref<3x!tpu.dma_semaphore, #tpu.memory_space<semaphore_mem>> -> memref<1x!tpu.dma_semaphore, #tpu.memory_space<semaphore_mem>>
    %3 = tpu.memref_squeeze %2 : memref<1x!tpu.dma_semaphore, #tpu.memory_space<semaphore_mem>> -> memref<!tpu.dma_semaphore, #tpu.memory_space<semaphore_mem>>
    tpu.enqueue_dma source(%arg7 : memref<768x384xbf16, #tpu.memory_space<any>>) target(%arg14 : memref<768x384xbf16, #tpu.memory_space<vmem>>) target_semaphore(%3 : memref<!tpu.dma_semaphore, #tpu.memory_space<semaphore_mem>>)
    %c2_i32 = arith.constant 2 : i32
    %4 = tpu.memref_slice %arg16[%c2_i32] : memref<3x!tpu.dma_semaphore, #tpu.memory_space<semaphore_mem>> -> memref<1x!tpu.dma_semaphore, #tpu.memory_space<semaphore_mem>>
    %5 = tpu.memref_squeeze %4 : memref<1x!tpu.dma_semaphore, #tpu.memory_space<semaphore_mem>> -> memref<!tpu.dma_semaphore, #tpu.memory_space<semaphore_mem>>
    tpu.enqueue_dma source(%arg10 : memref<384x128xbf16, #tpu.memory_space<any>>) target(%arg15 : memref<384x128xbf16, #tpu.memory_space<vmem>>) target_semaphore(%5 : memref<!tpu.dma_semaphore, #tpu.memory_space<semaphore_mem>>)
    %c0 = arith.constant 0 : index
    %c0_0 = arith.constant 0 : index
    %6 = vector.load %arg0[%c0, %c0_0] : memref<16x512xf32, #tpu.memory_space<vmem>>, vector<16x512xf32>
    %7 = arith.truncf %6 : vector<16x512xf32> to vector<16x512xbf16>
    %c0_1 = arith.constant 0 : index
    %c0_2 = arith.constant 0 : index
    %8 = vector.load %arg1[%c0_1, %c0_2] : memref<512x512xbf16, #tpu.memory_space<vmem>>, vector<512x512xbf16>
    %cst = arith.constant dense<0.000000e+00> : vector<16x512xf32>
    %9 = tpu.matmul %7, %8, %cst {dimension_numbers = #tpu.dot_dimension_numbers<[1], [0], [0], [1], [0, 0, 1, 1], [], []>} : vector<16x512xbf16>, vector<512x512xbf16>, vector<16x512xf32> -> vector<16x512xf32>
    %cst_3 = arith.constant dense<0.000000e+00> : vector<512xf32>
    %10 = vector.multi_reduction <add>, %9, %cst_3 [0] : vector<16x512xf32> to vector<512xf32>
    %11 = vector.shape_cast %10 : vector<512xf32> to vector<1x512xf32>
    %12 = arith.mulf %9, %9 : vector<16x512xf32>
    %cst_4 = arith.constant dense<0.000000e+00> : vector<512xf32>
    %13 = vector.multi_reduction <add>, %12, %cst_4 [0] : vector<16x512xf32> to vector<512xf32>
    %14 = vector.shape_cast %13 : vector<512xf32> to vector<1x512xf32>
    %cst_5 = arith.constant 6.250000e-02 : f32
    %15 = vector.broadcast %cst_5 : f32 to vector<1x512xf32>
    %16 = arith.mulf %11, %15 : vector<1x512xf32>
    %cst_6 = arith.constant 6.250000e-02 : f32
    %17 = vector.broadcast %cst_6 : f32 to vector<1x512xf32>
    %18 = arith.mulf %14, %17 : vector<1x512xf32>
    %19 = arith.mulf %16, %16 : vector<1x512xf32>
    %20 = arith.subf %18, %19 : vector<1x512xf32>
    %cst_7 = arith.constant 0.000000e+00 : f32
    %21 = vector.broadcast %cst_7 : f32 to vector<1x512xf32>
    %22 = arith.maximumf %20, %21 : vector<1x512xf32>
    %c0_8 = arith.constant 0 : index
    %c0_9 = arith.constant 0 : index
    %23 = vector.load %arg2[%c0_8, %c0_9] : memref<1x512xf32, #tpu.memory_space<vmem>>, vector<1x512xf32>
    %cst_10 = arith.constant 9.99999974E-6 : f32
    %24 = vector.broadcast %cst_10 : f32 to vector<1x512xf32>
    %25 = arith.addf %22, %24 : vector<1x512xf32>
    %26 = math.rsqrt %25 : vector<1x512xf32>
    %27 = arith.mulf %23, %26 : vector<1x512xf32>
    %c0_11 = arith.constant 0 : index
    %c0_12 = arith.constant 0 : index
    %28 = vector.load %arg3[%c0_11, %c0_12] : memref<1x512xf32, #tpu.memory_space<vmem>>, vector<1x512xf32>
    %29 = arith.mulf %16, %27 : vector<1x512xf32>
    %30 = arith.subf %28, %29 : vector<1x512xf32>
    %31 = vector.broadcast %27 : vector<1x512xf32> to vector<16x512xf32>
    %32 = arith.mulf %9, %31 : vector<16x512xf32>
    %33 = vector.broadcast %30 : vector<1x512xf32> to vector<16x512xf32>
    %34 = arith.addf %32, %33 : vector<16x512xf32>
    %cst_13 = arith.constant 0.000000e+00 : f32
    %35 = vector.broadcast %cst_13 : f32 to vector<16x512xf32>
    %36 = arith.maximumf %34, %35 : vector<16x512xf32>
    %c0_i32_14 = arith.constant 0 : i32
    %37 = tpu.memref_slice %arg16[%c0_i32_14] : memref<3x!tpu.dma_semaphore, #tpu.memory_space<semaphore_mem>> -> memref<1x!tpu.dma_semaphore, #tpu.memory_space<semaphore_mem>>
    %38 = tpu.memref_squeeze %37 : memref<1x!tpu.dma_semaphore, #tpu.memory_space<semaphore_mem>> -> memref<!tpu.dma_semaphore, #tpu.memory_space<semaphore_mem>>
    tpu.wait_dma2 semaphore(%38 : memref<!tpu.dma_semaphore, #tpu.memory_space<semaphore_mem>>) src(%arg4 : memref<512x768xbf16, #tpu.memory_space<any>>) dst(%arg13 : memref<512x768xbf16, #tpu.memory_space<vmem>>)
    %39 = arith.truncf %36 : vector<16x512xf32> to vector<16x512xbf16>
    %c0_15 = arith.constant 0 : index
    %c0_16 = arith.constant 0 : index
    %40 = vector.load %arg13[%c0_15, %c0_16] : memref<512x768xbf16, #tpu.memory_space<vmem>>, vector<512x768xbf16>
    %cst_17 = arith.constant dense<0.000000e+00> : vector<16x768xf32>
    %41 = tpu.matmul %39, %40, %cst_17 {dimension_numbers = #tpu.dot_dimension_numbers<[1], [0], [0], [1], [0, 0, 1, 1], [], []>} : vector<16x512xbf16>, vector<512x768xbf16>, vector<16x768xf32> -> vector<16x768xf32>
    %cst_18 = arith.constant dense<0.000000e+00> : vector<768xf32>
    %42 = vector.multi_reduction <add>, %41, %cst_18 [0] : vector<16x768xf32> to vector<768xf32>
    %43 = vector.shape_cast %42 : vector<768xf32> to vector<1x768xf32>
    %44 = arith.mulf %41, %41 : vector<16x768xf32>
    %cst_19 = arith.constant dense<0.000000e+00> : vector<768xf32>
    %45 = vector.multi_reduction <add>, %44, %cst_19 [0] : vector<16x768xf32> to vector<768xf32>
    %46 = vector.shape_cast %45 : vector<768xf32> to vector<1x768xf32>
    %cst_20 = arith.constant 6.250000e-02 : f32
    %47 = vector.broadcast %cst_20 : f32 to vector<1x768xf32>
    %48 = arith.mulf %43, %47 : vector<1x768xf32>
    %cst_21 = arith.constant 6.250000e-02 : f32
    %49 = vector.broadcast %cst_21 : f32 to vector<1x768xf32>
    %50 = arith.mulf %46, %49 : vector<1x768xf32>
    %51 = arith.mulf %48, %48 : vector<1x768xf32>
    %52 = arith.subf %50, %51 : vector<1x768xf32>
    %cst_22 = arith.constant 0.000000e+00 : f32
    %53 = vector.broadcast %cst_22 : f32 to vector<1x768xf32>
    %54 = arith.maximumf %52, %53 : vector<1x768xf32>
    %c0_23 = arith.constant 0 : index
    %c0_24 = arith.constant 0 : index
    %55 = vector.load %arg5[%c0_23, %c0_24] : memref<1x768xf32, #tpu.memory_space<vmem>>, vector<1x768xf32>
    %cst_25 = arith.constant 9.99999974E-6 : f32
    %56 = vector.broadcast %cst_25 : f32 to vector<1x768xf32>
    %57 = arith.addf %54, %56 : vector<1x768xf32>
    %58 = math.rsqrt %57 : vector<1x768xf32>
    %59 = arith.mulf %55, %58 : vector<1x768xf32>
    %c0_26 = arith.constant 0 : index
    %c0_27 = arith.constant 0 : index
    %60 = vector.load %arg6[%c0_26, %c0_27] : memref<1x768xf32, #tpu.memory_space<vmem>>, vector<1x768xf32>
    %61 = arith.mulf %48, %59 : vector<1x768xf32>
    %62 = arith.subf %60, %61 : vector<1x768xf32>
    %63 = vector.broadcast %59 : vector<1x768xf32> to vector<16x768xf32>
    %64 = arith.mulf %41, %63 : vector<16x768xf32>
    %65 = vector.broadcast %62 : vector<1x768xf32> to vector<16x768xf32>
    %66 = arith.addf %64, %65 : vector<16x768xf32>
    %cst_28 = arith.constant 0.000000e+00 : f32
    %67 = vector.broadcast %cst_28 : f32 to vector<16x768xf32>
    %68 = arith.maximumf %66, %67 : vector<16x768xf32>
    %c1_i32_29 = arith.constant 1 : i32
    %69 = tpu.memref_slice %arg16[%c1_i32_29] : memref<3x!tpu.dma_semaphore, #tpu.memory_space<semaphore_mem>> -> memref<1x!tpu.dma_semaphore, #tpu.memory_space<semaphore_mem>>
    %70 = tpu.memref_squeeze %69 : memref<1x!tpu.dma_semaphore, #tpu.memory_space<semaphore_mem>> -> memref<!tpu.dma_semaphore, #tpu.memory_space<semaphore_mem>>
    tpu.wait_dma2 semaphore(%70 : memref<!tpu.dma_semaphore, #tpu.memory_space<semaphore_mem>>) src(%arg7 : memref<768x384xbf16, #tpu.memory_space<any>>) dst(%arg14 : memref<768x384xbf16, #tpu.memory_space<vmem>>)
    %71 = arith.truncf %68 : vector<16x768xf32> to vector<16x768xbf16>
    %c0_30 = arith.constant 0 : index
    %c0_31 = arith.constant 0 : index
    %72 = vector.load %arg14[%c0_30, %c0_31] : memref<768x384xbf16, #tpu.memory_space<vmem>>, vector<768x384xbf16>
    %cst_32 = arith.constant dense<0.000000e+00> : vector<16x384xf32>
    %73 = tpu.matmul %71, %72, %cst_32 {dimension_numbers = #tpu.dot_dimension_numbers<[1], [0], [0], [1], [0, 0, 1, 1], [], []>} : vector<16x768xbf16>, vector<768x384xbf16>, vector<16x384xf32> -> vector<16x384xf32>
    %cst_33 = arith.constant dense<0.000000e+00> : vector<384xf32>
    %74 = vector.multi_reduction <add>, %73, %cst_33 [0] : vector<16x384xf32> to vector<384xf32>
    %75 = vector.shape_cast %74 : vector<384xf32> to vector<1x384xf32>
    %76 = arith.mulf %73, %73 : vector<16x384xf32>
    %cst_34 = arith.constant dense<0.000000e+00> : vector<384xf32>
    %77 = vector.multi_reduction <add>, %76, %cst_34 [0] : vector<16x384xf32> to vector<384xf32>
    %78 = vector.shape_cast %77 : vector<384xf32> to vector<1x384xf32>
    %cst_35 = arith.constant 6.250000e-02 : f32
    %79 = vector.broadcast %cst_35 : f32 to vector<1x384xf32>
    %80 = arith.mulf %75, %79 : vector<1x384xf32>
    %cst_36 = arith.constant 6.250000e-02 : f32
    %81 = vector.broadcast %cst_36 : f32 to vector<1x384xf32>
    %82 = arith.mulf %78, %81 : vector<1x384xf32>
    %83 = arith.mulf %80, %80 : vector<1x384xf32>
    %84 = arith.subf %82, %83 : vector<1x384xf32>
    %cst_37 = arith.constant 0.000000e+00 : f32
    %85 = vector.broadcast %cst_37 : f32 to vector<1x384xf32>
    %86 = arith.maximumf %84, %85 : vector<1x384xf32>
    %c0_38 = arith.constant 0 : index
    %c0_39 = arith.constant 0 : index
    %87 = vector.load %arg8[%c0_38, %c0_39] : memref<1x384xf32, #tpu.memory_space<vmem>>, vector<1x384xf32>
    %cst_40 = arith.constant 9.99999974E-6 : f32
    %88 = vector.broadcast %cst_40 : f32 to vector<1x384xf32>
    %89 = arith.addf %86, %88 : vector<1x384xf32>
    %90 = math.rsqrt %89 : vector<1x384xf32>
    %91 = arith.mulf %87, %90 : vector<1x384xf32>
    %c0_41 = arith.constant 0 : index
    %c0_42 = arith.constant 0 : index
    %92 = vector.load %arg9[%c0_41, %c0_42] : memref<1x384xf32, #tpu.memory_space<vmem>>, vector<1x384xf32>
    %93 = arith.mulf %80, %91 : vector<1x384xf32>
    %94 = arith.subf %92, %93 : vector<1x384xf32>
    %95 = vector.broadcast %91 : vector<1x384xf32> to vector<16x384xf32>
    %96 = arith.mulf %73, %95 : vector<16x384xf32>
    %97 = vector.broadcast %94 : vector<1x384xf32> to vector<16x384xf32>
    %98 = arith.addf %96, %97 : vector<16x384xf32>
    %cst_43 = arith.constant 0.000000e+00 : f32
    %99 = vector.broadcast %cst_43 : f32 to vector<16x384xf32>
    %100 = arith.maximumf %98, %99 : vector<16x384xf32>
    %c2_i32_44 = arith.constant 2 : i32
    %101 = tpu.memref_slice %arg16[%c2_i32_44] : memref<3x!tpu.dma_semaphore, #tpu.memory_space<semaphore_mem>> -> memref<1x!tpu.dma_semaphore, #tpu.memory_space<semaphore_mem>>
    %102 = tpu.memref_squeeze %101 : memref<1x!tpu.dma_semaphore, #tpu.memory_space<semaphore_mem>> -> memref<!tpu.dma_semaphore, #tpu.memory_space<semaphore_mem>>
    tpu.wait_dma2 semaphore(%102 : memref<!tpu.dma_semaphore, #tpu.memory_space<semaphore_mem>>) src(%arg10 : memref<384x128xbf16, #tpu.memory_space<any>>) dst(%arg15 : memref<384x128xbf16, #tpu.memory_space<vmem>>)
    %103 = arith.truncf %100 : vector<16x384xf32> to vector<16x384xbf16>
    %c0_45 = arith.constant 0 : index
    %c0_46 = arith.constant 0 : index
    %104 = vector.load %arg15[%c0_45, %c0_46] : memref<384x128xbf16, #tpu.memory_space<vmem>>, vector<384x128xbf16>
    %cst_47 = arith.constant dense<0.000000e+00> : vector<16x128xf32>
    %105 = tpu.matmul %103, %104, %cst_47 {dimension_numbers = #tpu.dot_dimension_numbers<[1], [0], [0], [1], [0, 0, 1, 1], [], []>} : vector<16x384xbf16>, vector<384x128xbf16>, vector<16x128xf32> -> vector<16x128xf32>
    %c0_48 = arith.constant 0 : index
    %c0_49 = arith.constant 0 : index
    %106 = vector.load %arg11[%c0_48, %c0_49] : memref<1x128xf32, #tpu.memory_space<vmem>>, vector<1x128xf32>
    %107 = vector.broadcast %106 : vector<1x128xf32> to vector<16x128xf32>
    %108 = arith.addf %105, %107 : vector<16x128xf32>
    %cst_50 = arith.constant dense<0xFF800000> : vector<16xf32>
    %109 = vector.multi_reduction <maximumf>, %108, %cst_50 [1] : vector<16x128xf32> to vector<16xf32>
    %110 = vector.shape_cast %109 : vector<16xf32> to vector<16x1xf32>
    %111 = vector.broadcast %110 : vector<16x1xf32> to vector<16x128xf32>
    %112 = arith.subf %108, %111 : vector<16x128xf32>
    %113 = math.exp %112 : vector<16x128xf32>
    %cst_51 = arith.constant dense<0.000000e+00> : vector<16xf32>
    %114 = vector.multi_reduction <add>, %113, %cst_51 [1] : vector<16x128xf32> to vector<16xf32>
    %115 = vector.shape_cast %114 : vector<16xf32> to vector<16x1xf32>
    %116 = tpu.reciprocal %115 {approx = true} : vector<16x1xf32> -> vector<16x1xf32>
    %117 = vector.broadcast %116 : vector<16x1xf32> to vector<16x128xf32>
    %118 = arith.mulf %113, %117 : vector<16x128xf32>
    %c0_52 = arith.constant 0 : index
    %c0_53 = arith.constant 0 : index
    %119 = vector.load %arg12[%c0_52, %c0_53] : memref<16x128xf32, #tpu.memory_space<vmem>>, vector<16x128xf32>
    tpu.vector_store %arg12[%c0_52, %c0_53], %118 {strides = array<i32>} : memref<16x128xf32, #tpu.memory_space<vmem>>, vector<16x128xf32>,
    return
  }
}

</mosaic_0001>

<bundles_post_ra>
// kernel: tpu_custom_call.1
= control target key start
LH: loop header
LB: loop body
LE: loop exit
PB: predicated region body
PF: predicated region fallthrough
CT: control target
= control target key end

     0   :  { %17 = vsyncpa [#allocation7], 0  ;;  %s4164_s0 = inlined_call_operand.hbm [shape: f32[16,512], index: 0, kind: input, shape index: {}]   ;;  %s4165_s1 = inlined_call_operand.hbm [shape: bf16[512,512], index: 1, kind: input, shape index: {}]   ;;  %s4166_s2 = inlined_call_operand.hbm [shape: f32[1,512], index: 2, kind: input, shape index: {}]   ;;  %s4167_s3 = inlined_call_operand.hbm [shape: f32[1,512], index: 3, kind: input, shape index: {}]   ;;  %s4168_s4 = inlined_call_operand.hbm [shape: bf16[512,768], index: 4, kind: input, shape index: {}]   ;;  %s4169_s5 = inlined_call_operand.vmem [shape: f32[1,768], index: 5, kind: input, shape index: {}]   ;;  %s4170_s6 = inlined_call_operand.vmem [shape: f32[1,768], index: 6, kind: input, shape index: {}]   ;;  %s4171_s7 = inlined_call_operand.hbm [shape: bf16[768,384], index: 7, kind: input, shape index: {}]   ;;  %s4172_s8 = inlined_call_operand.vmem [shape: f32[1,384], index: 8, kind: input, shape index: {}]   ;;  %s4173_s9 = inlined_call_operand.vmem [shape: f32[1,384], index: 9, kind: input, shape index: {}]   ;;  %s4174_s10 = inlined_call_operand.hbm [shape: bf16[384,128], index: 10, kind: input, shape index: {}]   ;;  %s4175_s11 = inlined_call_operand.vmem [shape: f32[1,128], index: 11, kind: input, shape index: {}]   ;;  %s4176_s12 = inlined_call_operand.hbm [shape: f32[16,128], index: 12, kind: output, shape index: {}]  }
   0x1   :  { %18 = vsyncpa [#allocation10], 0 }
   0x2   :  { %19 = vsyncpa [#allocation13], 0 }
   0x3   :  { %20 = vsyncpa [#allocation8], 0  ;;  %s3591_s21 = smov [#allocation9]   ;;  %s3445_s25 = scalar_lea.hbm %s4165_s1, 16384 }
   0x4   :  { %s38_s22 = sshll.u32 %s3591_s21, 4  ;;  %p3446_p0 = scmp.ne.s32.totalorder %s4165_s1, %s3445_s25  ;;  %s39_s22 = int_to_ptr.vmem [resolvable:$true] %s38_s22 }
   0x5   :  { %p3449_p1 = scmp.lt.u32.totalorder %s3445_s25, %s4165_s1 }
   0x7   :  { %p3451_p2 = pnand %p3449_p1, %p3446_p0 }
   0x9   :  { %3454 = shalt.err (!%p3451_p2)
}
   0xa   :  { %s3455_s30 = scalar_lea.vmem %s39_s22, 16384  ;;  %p3460_p4 = scmp.lt.s32.totalorder %s39_s22, %s39_s22 }
   0xb   :  { %p3456_p3 = scmp.ne.s32.totalorder %s39_s22, %s3455_s30  ;;  %p3461_p5 = scmp.lt.s32.totalorder %s3455_s30, %s3455_s30 }
   0xd   :  { %p3462_p6 = por %p3461_p5, %p3460_p4 }
   0xf   :  { %p3463_p7 = pnand %p3462_p6, %p3456_p3 }
  0x11   :  { %3466 = shalt.err (!%p3463_p7)
}
  0x12   :  { %s3592_s13 = smov 256   ;;  %s3593_s14 = smov 16  }
  0x13   :  { %44 = dma.hbm_to_vmem [thread:$0]  %s4165_s1, 16384, %s39_s22, [#allocation10], %s3592_s13, %s3592_s13, %s3593_s14  }
  0x14   :  { %s3594_s17 = smov [#allocation6]   ;;  %s3467_s21 = scalar_lea.hbm %s4164_s0, 1024 }
  0x15   :  { %s26_s18 = sshll.u32 %s3594_s17, 4  ;;  %p3468_p8 = scmp.ne.s32.totalorder %s4164_s0, %s3467_s21  ;;  %s27_s18 = int_to_ptr.vmem [resolvable:$true] %s26_s18 }
  0x16   :  { %p3471_p9 = scmp.lt.u32.totalorder %s3467_s21, %s4164_s0 }
  0x18   :  { %p3473_p10 = pnand %p3471_p9, %p3468_p8 }
  0x1a   :  { %3476 = shalt.err (!%p3473_p10)
}
  0x1b   :  { %s3477_s27 = scalar_lea.vmem %s27_s18, 1024  ;;  %p3482_p12 = scmp.lt.s32.totalorder %s27_s18, %s27_s18 }
  0x1c   :  { %p3478_p11 = scmp.ne.s32.totalorder %s27_s18, %s3477_s27  ;;  %p3483_p13 = scmp.lt.s32.totalorder %s3477_s27, %s3477_s27 }
  0x1e   :  { %p3484_p0 = por %p3483_p13, %p3482_p12 }
  0x20   :  { %p3485_p1 = pnand %p3484_p0, %p3478_p11 }
  0x22   :  { %3488 = shalt.err (!%p3485_p1)
}
  0x23   :  { %s3595_s1 = smov 512   ;;  %s3596_s22 = smov 32  }
  0x24   :  { %32 = dma.hbm_to_vmem [thread:$0]  %s4164_s0, 1024, %s27_s18, [#allocation7], %s3595_s1, %s3595_s1, %s3596_s22  }
  0x25   :  { %s3597_s30 = smov [#allocation11]   ;;  %s3598_s14 = smov [#allocation12]  }
  0x26   :  { %s51_s13 = sshll.u32 %s3597_s30, 4  ;;  %s61_s15 = sshll.u32 %s3598_s14, 4  ;;  %s52_s13 = int_to_ptr.vmem [resolvable:$true] %s51_s13  ;;  %s62_s15 = int_to_ptr.vmem [resolvable:$true] %s61_s15 }
  0x27   :  { %s3489_s19 = scalar_lea.hbm %s4166_s2, 64 }
  0x28   :  { %p3490_p2 = scmp.ne.s32.totalorder %s4166_s2, %s3489_s19  ;;  %p3493_p3 = scmp.lt.u32.totalorder %s3489_s19, %s4166_s2 }
  0x2a   :  { %p3495_p4 = pnand %p3493_p3, %p3490_p2 }
  0x2c   :  { %3498 = shalt.err (!%p3495_p4)
}
  0x2d   :  { %s3499_s0 = scalar_lea.vmem %s52_s13, 64  ;;  %p3504_p6 = scmp.lt.s32.totalorder %s52_s13, %s52_s13 }
  0x2e   :  { %p3500_p5 = scmp.ne.s32.totalorder %s52_s13, %s3499_s0  ;;  %p3505_p7 = scmp.lt.s32.totalorder %s3499_s0, %s3499_s0 }
  0x30   :  { %p3506_p8 = por %p3505_p7, %p3504_p6 }
  0x32   :  { %p3507_p9 = pnand %p3506_p8, %p3500_p5 }
  0x34   :  { %3510 = shalt.err (!%p3507_p9)
}
  0x35   :  { %54 = dma.hbm_to_vmem [thread:$0]  %s4166_s2, 64, %s52_s13, [#allocation10]  }
  0x36   :  { %s3511_s1 = scalar_lea.hbm %s4167_s3, 64 }
  0x37   :  { %p3512_p10 = scmp.ne.s32.totalorder %s4167_s3, %s3511_s1  ;;  %p3515_p11 = scmp.lt.u32.totalorder %s3511_s1, %s4167_s3 }
  0x39   :  { %p3517_p12 = pnand %p3515_p11, %p3512_p10 }
  0x3b   :  { %3520 = shalt.err (!%p3517_p12)
}
  0x3c   :  { %s3521_s14 = scalar_lea.vmem %s62_s15, 64  ;;  %p3526_p0 = scmp.lt.s32.totalorder %s62_s15, %s62_s15 }
  0x3d   :  { %p3522_p13 = scmp.ne.s32.totalorder %s62_s15, %s3521_s14  ;;  %p3527_p1 = scmp.lt.s32.totalorder %s3521_s14, %s3521_s14 }
  0x3f   :  { %p3528_p2 = por %p3527_p1, %p3526_p0 }
  0x41   :  { %p3529_p3 = pnand %p3528_p2, %p3522_p13 }
  0x43   :  { %3532 = shalt.err (!%p3529_p3)
}
  0x44   :  { %64 = dma.hbm_to_vmem [thread:$0]  %s4167_s3, 64, %s62_s15, [#allocation13]  }
  0x45   :  { %3577 = dma.done.wait [#allocation7], 1024  }
  0x46   :  { %3578 = vsyncadd [#allocation7], 4294966272 }
  0x47   :  { %3579 = dma.done.wait [#allocation10], 16448  }
  0x48   :  { %3580 = vsyncadd [#allocation10], 4294950848 }
  0x49   :  { %3581 = dma.done.wait [#allocation13], 64  }
  0x4a   :  { %3582 = vsyncadd [#allocation13], 4294967232  ;;  %s92_s16 = sld [smem:[#allocation0]]   ;;  %s3599_s17 = smov 768  }
  0x4b   :  { %104 = sst [smem:[#allocation16]] %s3599_s17  ;;  %s3600_s19 = smov 6  }
  0x4c   :  { %106 = sst [smem:[#allocation16 + $0x1]] %s3599_s17  ;;  %s3601_s20 = smov [#allocation2]  }
  0x4d   :  { %108 = sst [smem:[#allocation16 + $0x2]] %s3600_s19  ;;  %s100_s21 = sshll.u32 %s3601_s20, 4  ;;  %s101_s21 = int_to_ptr.vmem [resolvable:$true] %s100_s21 }
  0x4e   :  { %s3602_s23 = smov 64   ;;  %s3603_s24 = smov 128  }
  0x4f   :  { %110 = sst [smem:[#allocation16 + $0x3]] %s3602_s23  ;;  %s3604_s15 = smov 2  }
  0x50   :  { %112 = sst [smem:[#allocation16 + $0x4]] %s3603_s24  ;;  %s2909_s3 = sshll.u32 %s92_s16, 26 }
  0x51   :  { %114 = sst [smem:[#allocation16 + $0x5]] %s3604_s15  ;;  %s2910_s0 = sadd.s32 134217728, %s2909_s3 }
  0x52   :  { %s3605_s18 = smov 384   ;;  %118 = sst [smem:[#allocation16 + $0x7]] %s3602_s23 }
  0x53   :  { %116 = sst [smem:[#allocation16 + $0x6]] %s3605_s18  ;;  %s3606_s25 = smov 4  }
  0x54   :  { %120 = sst [smem:[#allocation16 + $0x8]] %s3606_s25  ;;  %s3607_s26 = smov [#allocation5]  }
  0x55   :  { %s3608_s27 = smov [#allocation15]   ;;  %s3609_s28 = smov 3  }
  0x56   :  { %122 = dma.general %s4168_s4, 24576, %s101_s21, %s3607_s26, %s3608_s27, [#allocation16], %s2910_s0, 0  }
  0x57   :  { %139 = sst [smem:[#allocation18]] %s3605_s18  ;;  %s3610_s29 = smov [#allocation3]  }
  0x58   :  { %141 = sst [smem:[#allocation18 + $0x1]] %s3605_s18  ;;  %s135_s30 = sshll.u32 %s3610_s29, 4  ;;  %s136_s30 = int_to_ptr.vmem [resolvable:$true] %s135_s30 }
  0x59   :  { %143 = sst [smem:[#allocation18 + $0x2]] %s3609_s28  ;;  %s3611_s14 = smov 192  }
  0x5a   :  { %145 = sst [smem:[#allocation18 + $0x3]] %s3602_s23  ;;  %s3612_s2 = smov [#allocation5 + $0x1]  }
  0x5b   :  { %147 = sst [smem:[#allocation18 + $0x4]] %s3603_s24  ;;  %s3613_s13 = smov [#allocation17]  }
  0x5c   :  { %149 = sst [smem:[#allocation18 + $0x5]] %s3604_s15  ;;  %s3614_s4 = smov [#allocation4]  }
  0x5d   :  { %151 = sst [smem:[#allocation18 + $0x6]] %s3611_s14  ;;  %s3533_s21 = scalar_lea.hbm %s4174_s10, 3072 }
  0x5e   :  { %153 = sst [smem:[#allocation18 + $0x7]] %s3602_s23  ;;  %p3534_p4 = scmp.ne.s32.totalorder %s4174_s10, %s3533_s21 }
  0x5f   :  { %155 = sst [smem:[#allocation18 + $0x8]] %s3606_s25  ;;  %p3537_p5 = scmp.lt.u32.totalorder %s3533_s21, %s4174_s10 }
  0x60   :  { %157 = dma.general %s4171_s7, 18432, %s136_s30, %s3612_s2, %s3613_s13, [#allocation18], %s2910_s0, 0  }
  0x61   :  { %v3219_v0 = vld [vmem:[#allocation9 + $0x4] ss:$16 sps:$4 sm:$0xff]   ;;  %v3221_v1 = vld [vmem:[#allocation9 + $0xc] ss:$16 sps:$4 sm:$0xff]   ;;  %v3223_v2 = vld [vmem:[#allocation9] ss:$16 sps:$4 sm:$0xff]   ;;  %p3539_p6 = pnand %p3537_p5, %p3534_p4 }
  0x62   :  { %950 = vmatprep.subr.bf16.mxu0 %v3219_v0  ;;  %v3224_v3 = vld [vmem:[#allocation9 + $0x8] ss:$16 sps:$4 sm:$0xff]   ;;  %1036 = vmatprep.subr.bf16.mxu1 %v3221_v1  ;;  %v3225_v4 = vld [vmem:[#allocation9 + $0x24] ss:$16 sps:$4 sm:$0xff]   ;;  %v3227_v5 = vld [vmem:[#allocation9 + $0x2c] ss:$16 sps:$4 sm:$0xff]  }
  0x63   :  { %951 = vmatpush1.bf16.msra.mxu0 %v3223_v2  ;;  %1037 = vmatpush1.bf16.msra.mxu1 %v3224_v3  ;;  %v3229_v6 = vld [vmem:[#allocation9 + $0x20] ss:$16 sps:$4 sm:$0xff]   ;;  %v3230_v7 = vld [vmem:[#allocation9 + $0x28] ss:$16 sps:$4 sm:$0xff]   ;;  %v3231_v8 = vld [vmem:[#allocation9 + $0x44] ss:$16 sps:$4 sm:$0xff]  }
  0x64   :  { %952 = vmatprep.subr.bf16.mxu0 %v3225_v4  ;;  %1038 = vmatprep.subr.bf16.mxu1 %v3227_v5  ;;  %v3233_v9 = vld [vmem:[#allocation9 + $0x4c] ss:$16 sps:$4 sm:$0xff]   ;;  %v3235_v10 = vld [vmem:[#allocation9 + $0x40] ss:$16 sps:$4 sm:$0xff]   ;;  %v3236_v11 = vld [vmem:[#allocation9 + $0x48] ss:$16 sps:$4 sm:$0xff]  }
  0x65   :  { %v3237_v12 = vld [vmem:[#allocation9 + $0x64] ss:$16 sps:$4 sm:$0xff]   ;;  %v3239_v13 = vld [vmem:[#allocation9 + $0x6c] ss:$16 sps:$4 sm:$0xff]   ;;  %v3241_v14 = vld [vmem:[#allocation9 + $0x60] ss:$16 sps:$4 sm:$0xff]  }
  0x66   :  { %v3242_v15 = vld [vmem:[#allocation9 + $0x68] ss:$16 sps:$4 sm:$0xff]   ;;  %v3243_v16 = vld [vmem:[#allocation9 + $0x84] ss:$16 sps:$4 sm:$0xff]   ;;  %v3245_v17 = vld [vmem:[#allocation9 + $0x8c] ss:$16 sps:$4 sm:$0xff]  }
  0x67   :  { %953 = vmatpush1.bf16.msra.mxu0 %v3229_v6  ;;  %1039 = vmatpush1.bf16.msra.mxu1 %v3230_v7  ;;  %v3247_v18 = vld [vmem:[#allocation9 + $0x80] ss:$16 sps:$4 sm:$0xff]   ;;  %v3248_v19 = vld [vmem:[#allocation9 + $0x88] ss:$16 sps:$4 sm:$0xff]   ;;  %v3249_v20 = vld [vmem:[#allocation9 + $0xa4] ss:$16 sps:$4 sm:$0xff]  }
  0x68   :  { %954 = vmatprep.subr.bf16.mxu0 %v3231_v8  ;;  %1040 = vmatprep.subr.bf16.mxu1 %v3233_v9  ;;  %v3251_v21 = vld [vmem:[#allocation9 + $0xac] ss:$16 sps:$4 sm:$0xff]   ;;  %v3253_v22 = vld [vmem:[#allocation9 + $0xa0] ss:$16 sps:$4 sm:$0xff]   ;;  %v3254_v23 = vld [vmem:[#allocation9 + $0xa8] ss:$16 sps:$4 sm:$0xff]  }
  0x69   :  { %v3255_v24 = vld [vmem:[#allocation9 + $0xc4] ss:$16 sps:$4 sm:$0xff]   ;;  %v3257_v25 = vld [vmem:[#allocation9 + $0xcc] ss:$16 sps:$4 sm:$0xff]   ;;  %v3259_v26 = vld [vmem:[#allocation9 + $0xc0] ss:$16 sps:$4 sm:$0xff]  }
  0x6a   :  { %v3260_v27 = vld [vmem:[#allocation9 + $0xc8] ss:$16 sps:$4 sm:$0xff]   ;;  %v3261_v28 = vld [vmem:[#allocation9 + $0xe4] ss:$16 sps:$4 sm:$0xff]   ;;  %v3263_v29 = vld [vmem:[#allocation9 + $0xec] ss:$16 sps:$4 sm:$0xff]  }
  0x6b   :  { %955 = vmatpush1.bf16.msra.mxu0 %v3235_v10  ;;  %1041 = vmatpush1.bf16.msra.mxu1 %v3236_v11  ;;  %v3265_v30 = vld [vmem:[#allocation9 + $0xe0] ss:$16 sps:$4 sm:$0xff]   ;;  %v3266_v31 = vld [vmem:[#allocation9 + $0xe8] ss:$16 sps:$4 sm:$0xff]   ;;  %v3267_v32 = vld [vmem:[#allocation9 + $0x104] ss:$16 sps:$4 sm:$0xff]  }
  0x6c   :  { %956 = vmatprep.subr.bf16.mxu0 %v3237_v12  ;;  %1042 = vmatprep.subr.bf16.mxu1 %v3239_v13  ;;  %v3269_v33 = vld [vmem:[#allocation9 + $0x10c] ss:$16 sps:$4 sm:$0xff]   ;;  %v3271_v34 = vld [vmem:[#allocation9 + $0x100] ss:$16 sps:$4 sm:$0xff]   ;;  %v3272_v35 = vld [vmem:[#allocation9 + $0x108] ss:$16 sps:$4 sm:$0xff]  }
  0x6d   :  { %v3273_v36 = vld [vmem:[#allocation9 + $0x124] ss:$16 sps:$4 sm:$0xff]   ;;  %v3275_v37 = vld [vmem:[#allocation9 + $0x12c] ss:$16 sps:$4 sm:$0xff]   ;;  %v3277_v38 = vld [vmem:[#allocation9 + $0x120] ss:$16 sps:$4 sm:$0xff]  }
  0x6e   :  { %v3278_v39 = vld [vmem:[#allocation9 + $0x128] ss:$16 sps:$4 sm:$0xff]   ;;  %v3279_v40 = vld [vmem:[#allocation9 + $0x144] ss:$16 sps:$4 sm:$0xff]   ;;  %v3281_v41 = vld [vmem:[#allocation9 + $0x14c] ss:$16 sps:$4 sm:$0xff]  }
  0x6f   :  { %957 = vmatpush1.bf16.msra.mxu0 %v3241_v14  ;;  %1043 = vmatpush1.bf16.msra.mxu1 %v3242_v15  ;;  %v3283_v42 = vld [vmem:[#allocation9 + $0x140] ss:$16 sps:$4 sm:$0xff]   ;;  %v3284_v43 = vld [vmem:[#allocation9 + $0x148] ss:$16 sps:$4 sm:$0xff]   ;;  %v3285_v44 = vld [vmem:[#allocation9 + $0x164] ss:$16 sps:$4 sm:$0xff]  }
  0x70   :  { %958 = vmatprep.subr.bf16.mxu0 %v3243_v16  ;;  %1044 = vmatprep.subr.bf16.mxu1 %v3245_v17  ;;  %v3287_v45 = vld [vmem:[#allocation9 + $0x16c] ss:$16 sps:$4 sm:$0xff]   ;;  %v3289_v48 = vld [vmem:[#allocation9 + $0x160] ss:$16 sps:$4 sm:$0xff]   ;;  %v3290_v49 = vld [vmem:[#allocation9 + $0x168] ss:$16 sps:$4 sm:$0xff]  }
  0x71   :  { %v171_v46 = vld [vmem:[#allocation6 + $0x8] sm:$0xff]  ;;  %v3291_v51 = vld [vmem:[#allocation9 + $0x184] ss:$16 sps:$4 sm:$0xff]   ;;  %v3295_v53 = vld [vmem:[#allocation9 + $0x180] ss:$16 sps:$4 sm:$0xff]   ;;  %s166_s7 = sshll.u32 %s3614_s4, 4  ;;  %s167_s7 = int_to_ptr.vmem [resolvable:$true] %s166_s7 }
  0x72   :  { %v175_v47 = vld [vmem:[#allocation6 + $0x28] sm:$0xff]  ;;  %v3297_v55 = vld [vmem:[#allocation9 + $0x1a4] ss:$16 sps:$4 sm:$0xff]   ;;  %v3301_v57 = vld [vmem:[#allocation9 + $0x1a0] ss:$16 sps:$4 sm:$0xff]  }
  0x73   :  { %959 = vmatpush1.bf16.msra.mxu0 %v3247_v18  ;;  %1045 = vmatpush1.bf16.msra.mxu1 %v3248_v19  ;;  %v179_v50 = vpack.c.bf16 %v175_v47, %v171_v46  ;;  %v3293_v52 = vld [vmem:[#allocation9 + $0x18c] ss:$16 sps:$4 sm:$0xff]   ;;  %v3296_v54 = vld [vmem:[#allocation9 + $0x188] ss:$16 sps:$4 sm:$0xff]   ;;  %v3303_v59 = vld [vmem:[#allocation9 + $0x1c4] ss:$16 sps:$4 sm:$0xff]  }
  0x74   :  { %960 = vmatprep.subr.bf16.mxu0 %v3249_v20  ;;  %1046 = vmatprep.subr.bf16.mxu1 %v3251_v21  ;;  %v3299_v56 = vld [vmem:[#allocation9 + $0x1ac] ss:$16 sps:$4 sm:$0xff]   ;;  %v3302_v58 = vld [vmem:[#allocation9 + $0x1a8] ss:$16 sps:$4 sm:$0xff]   ;;  %v3307_v61 = vld [vmem:[#allocation9 + $0x1c0] ss:$16 sps:$4 sm:$0xff]  }
  0x75   :  { %982 = vmatprep.mubr.bf16.mxu0 %v179_v50  ;;  %1068 = vmatprep.mubr.bf16.mxu1 %v179_v50  ;;  %v3305_v60 = vld [vmem:[#allocation9 + $0x1cc] ss:$16 sps:$4 sm:$0xff]   ;;  %v3308_v62 = vld [vmem:[#allocation9 + $0x1c8] ss:$16 sps:$4 sm:$0xff]   ;;  %v3309_v63 = vld [vmem:[#allocation9 + $0x1e4] ss:$16 sps:$4 sm:$0xff]  }
  0x76   :  { %v3311_v0 = vld [vmem:[#allocation9 + $0x1ec] ss:$16 sps:$4 sm:$0xff]   ;;  %v3313_v1 = vld [vmem:[#allocation9 + $0x1e0] ss:$16 sps:$4 sm:$0xff]   ;;  %v3314_v2 = vld [vmem:[#allocation9 + $0x1e8] ss:$16 sps:$4 sm:$0xff]  }
  0x77   :  { %961 = vmatpush1.bf16.msra.mxu0 %v3253_v22  ;;  %1047 = vmatpush1.bf16.msra.mxu1 %v3254_v23  ;;  %v3317_v3 = vld [vmem:[#allocation9 + $0x204] ss:$16 sps:$4 sm:$0xff]   ;;  %v3320_v6 = vld [vmem:[#allocation9 + $0x20c] ss:$16 sps:$4 sm:$0xff]   ;;  %v3315_v7 = vld [vmem:[#allocation9 + $0x200] ss:$16 sps:$4 sm:$0xff]  }
  0x78   :  { %962 = vmatprep.subr.bf16.mxu0 %v3255_v24  ;;  %1048 = vmatprep.subr.bf16.mxu1 %v3257_v25  ;;  %v170_v4 = vld [vmem:[#allocation6] sm:$0xff]  ;;  %v3318_v8 = vld [vmem:[#allocation9 + $0x208] ss:$16 sps:$4 sm:$0xff]   ;;  %v3326_v11 = vld [vmem:[#allocation9 + $0x22c] ss:$16 sps:$4 sm:$0xff]  }
  0x79   :  { %v174_v5 = vld [vmem:[#allocation6 + $0x20] sm:$0xff]  ;;  %v3324_v13 = vld [vmem:[#allocation9 + $0x228] ss:$16 sps:$4 sm:$0xff]   ;;  %v3332_v15 = vld [vmem:[#allocation9 + $0x24c] ss:$16 sps:$4 sm:$0xff]  }
  0x7a   :  { %v178_v9 = vpack.c.bf16 %v174_v5, %v170_v4  ;;  %v3323_v10 = vld [vmem:[#allocation9 + $0x224] ss:$16 sps:$4 sm:$0xff]   ;;  %v3321_v12 = vld [vmem:[#allocation9 + $0x220] ss:$16 sps:$4 sm:$0xff]   ;;  %v3330_v17 = vld [vmem:[#allocation9 + $0x248] ss:$16 sps:$4 sm:$0xff]  }
  0x7b   :  { %963 = vmatpush1.bf16.msra.mxu0 %v3259_v26  ;;  %1049 = vmatpush1.bf16.msra.mxu1 %v3260_v27  ;;  %v3329_v14 = vld [vmem:[#allocation9 + $0x244] ss:$16 sps:$4 sm:$0xff]   ;;  %v3327_v16 = vld [vmem:[#allocation9 + $0x240] ss:$16 sps:$4 sm:$0xff]   ;;  %v3338_v19 = vld [vmem:[#allocation9 + $0x26c] ss:$16 sps:$4 sm:$0xff]  }
  0x7c   :  { %964 = vmatprep.subr.bf16.mxu0 %v3261_v28  ;;  %1050 = vmatprep.subr.bf16.mxu1 %v3263_v29  ;;  %v3335_v18 = vld [vmem:[#allocation9 + $0x264] ss:$16 sps:$4 sm:$0xff]   ;;  %v3333_v20 = vld [vmem:[#allocation9 + $0x260] ss:$16 sps:$4 sm:$0xff]   ;;  %v3336_v21 = vld [vmem:[#allocation9 + $0x268] ss:$16 sps:$4 sm:$0xff]  }
  0x7d   :  { %v3341_v22 = vld [vmem:[#allocation9 + $0x284] ss:$16 sps:$4 sm:$0xff]   ;;  %v3344_v23 = vld [vmem:[#allocation9 + $0x28c] ss:$16 sps:$4 sm:$0xff]   ;;  %v3339_v24 = vld [vmem:[#allocation9 + $0x280] ss:$16 sps:$4 sm:$0xff]  }
  0x7e   :  { %v3342_v25 = vld [vmem:[#allocation9 + $0x288] ss:$16 sps:$4 sm:$0xff]   ;;  %v3347_v26 = vld [vmem:[#allocation9 + $0x2a4] ss:$16 sps:$4 sm:$0xff]   ;;  %v3350_v27 = vld [vmem:[#allocation9 + $0x2ac] ss:$16 sps:$4 sm:$0xff]  }
  0x7f   :  { %965 = vmatpush1.bf16.msra.mxu0 %v3265_v30  ;;  %1051 = vmatpush1.bf16.msra.mxu1 %v3266_v31  ;;  %v3345_v28 = vld [vmem:[#allocation9 + $0x2a0] ss:$16 sps:$4 sm:$0xff]   ;;  %v3348_v29 = vld [vmem:[#allocation9 + $0x2a8] ss:$16 sps:$4 sm:$0xff]   ;;  %v3353_v30 = vld [vmem:[#allocation9 + $0x2c4] ss:$16 sps:$4 sm:$0xff]  }
  0x80   :  { %966 = vmatprep.subr.bf16.mxu0 %v3267_v32  ;;  %1052 = vmatprep.subr.bf16.mxu1 %v3269_v33  ;;  %v3356_v31 = vld [vmem:[#allocation9 + $0x2cc] ss:$16 sps:$4 sm:$0xff]   ;;  %v3369_v47 = vld [vmem:[#allocation9 + $0x320] ss:$16 sps:$4 sm:$0xff]   ;;  %v3402_v4 = vld [vmem:[#allocation9 + $0x3c8] ss:$16 sps:$4 sm:$0xff]  }
  0x81   :  { %v173_v32 = vld [vmem:[#allocation6 + $0x18] sm:$0xff]  ;;  %v3407_v5 = vld [vmem:[#allocation9 + $0x3e4] ss:$16 sps:$4 sm:$0xff]  }
  0x82   :  { %v177_v33 = vld [vmem:[#allocation6 + $0x38] sm:$0xff] }
  0x83   :  { %967 = vmatpush1.bf16.msra.mxu0 %v3271_v34  ;;  %1053 = vmatpush1.bf16.msra.mxu1 %v3272_v35  ;;  %v3351_v34 = vld [vmem:[#allocation9 + $0x2c0] ss:$16 sps:$4 sm:$0xff]   ;;  %v3354_v35 = vld [vmem:[#allocation9 + $0x2c8] ss:$16 sps:$4 sm:$0xff]   ;;  %v3374_v46 = vld [vmem:[#allocation9 + $0x32c] ss:$16 sps:$4 sm:$0xff]  }
  0x84   :  { %968 = vmatprep.subr.bf16.mxu0 %v3273_v36  ;;  %1054 = vmatprep.subr.bf16.mxu1 %v3275_v37  ;;  %v181_v36 = vpack.c.bf16 %v177_v33, %v173_v32  ;;  %v3359_v37 = vld [vmem:[#allocation9 + $0x2e4] ss:$16 sps:$4 sm:$0xff]   ;;  %v3380_v50 = vld [vmem:[#allocation9 + $0x34c] ss:$16 sps:$4 sm:$0xff]  }
  0x87   :  { %969 = vmatpush1.bf16.msra.mxu0 %v3277_v38  ;;  %1055 = vmatpush1.bf16.msra.mxu1 %v3278_v39  ;;  %v3362_v38 = vld [vmem:[#allocation9 + $0x2ec] ss:$16 sps:$4 sm:$0xff]   ;;  %v3357_v39 = vld [vmem:[#allocation9 + $0x2e0] ss:$16 sps:$4 sm:$0xff]  }
  0x88   :  { %970 = vmatprep.subr.bf16.mxu0 %v3279_v40  ;;  %1056 = vmatprep.subr.bf16.mxu1 %v3281_v41  ;;  %v3360_v40 = vld [vmem:[#allocation9 + $0x2e8] ss:$16 sps:$4 sm:$0xff]   ;;  %v3365_v41 = vld [vmem:[#allocation9 + $0x304] ss:$16 sps:$4 sm:$0xff]  }
  0x8b   :  { %971 = vmatpush1.bf16.msra.mxu0 %v3283_v42  ;;  %1057 = vmatpush1.bf16.msra.mxu1 %v3284_v43  ;;  %v3368_v42 = vld [vmem:[#allocation9 + $0x30c] ss:$16 sps:$4 sm:$0xff]   ;;  %v3363_v43 = vld [vmem:[#allocation9 + $0x300] ss:$16 sps:$4 sm:$0xff]  }
  0x8c   :  { %972 = vmatprep.subr.bf16.mxu0 %v3285_v44  ;;  %1058 = vmatprep.subr.bf16.mxu1 %v3287_v45  ;;  %v3366_v44 = vld [vmem:[#allocation9 + $0x308] ss:$16 sps:$4 sm:$0xff]   ;;  %v3371_v45 = vld [vmem:[#allocation9 + $0x324] ss:$16 sps:$4 sm:$0xff]  }
  0x8f   :  { %973 = vmatpush1.bf16.msra.mxu0 %v3289_v48  ;;  %1059 = vmatpush1.bf16.msra.mxu1 %v3290_v49  ;;  %v3372_v48 = vld [vmem:[#allocation9 + $0x328] ss:$16 sps:$4 sm:$0xff]   ;;  %v3377_v49 = vld [vmem:[#allocation9 + $0x344] ss:$16 sps:$4 sm:$0xff]  }
  0x90   :  { %974 = vmatprep.subr.bf16.mxu0 %v3291_v51  ;;  %1060 = vmatprep.subr.bf16.mxu1 %v3293_v52  ;;  %v3375_v51 = vld [vmem:[#allocation9 + $0x340] ss:$16 sps:$4 sm:$0xff]   ;;  %v3378_v52 = vld [vmem:[#allocation9 + $0x348] ss:$16 sps:$4 sm:$0xff]  }
  0x93   :  { %975 = vmatpush1.bf16.msra.mxu0 %v3295_v53  ;;  %1061 = vmatpush1.bf16.msra.mxu1 %v3296_v54  ;;  %v3383_v53 = vld [vmem:[#allocation9 + $0x364] ss:$16 sps:$4 sm:$0xff]   ;;  %v3386_v54 = vld [vmem:[#allocation9 + $0x36c] ss:$16 sps:$4 sm:$0xff]  }
  0x94   :  { %976 = vmatprep.subr.bf16.mxu0 %v3297_v55  ;;  %1062 = vmatprep.subr.bf16.mxu1 %v3299_v56  ;;  %v3381_v55 = vld [vmem:[#allocation9 + $0x360] ss:$16 sps:$4 sm:$0xff]   ;;  %v3384_v56 = vld [vmem:[#allocation9 + $0x368] ss:$16 sps:$4 sm:$0xff]  }
  0x97   :  { %977 = vmatpush1.bf16.msra.mxu0 %v3301_v57  ;;  %1063 = vmatpush1.bf16.msra.mxu1 %v3302_v58  ;;  %v3389_v57 = vld [vmem:[#allocation9 + $0x384] ss:$16 sps:$4 sm:$0xff]   ;;  %v3392_v58 = vld [vmem:[#allocation9 + $0x38c] ss:$16 sps:$4 sm:$0xff]  }
  0x98   :  { %978 = vmatprep.subr.bf16.mxu0 %v3303_v59  ;;  %1064 = vmatprep.subr.bf16.mxu1 %v3305_v60  ;;  %v3387_v59 = vld [vmem:[#allocation9 + $0x380] ss:$16 sps:$4 sm:$0xff]   ;;  %v3390_v60 = vld [vmem:[#allocation9 + $0x388] ss:$16 sps:$4 sm:$0xff]  }
  0x9b   :  { %979 = vmatpush1.bf16.msra.mxu0 %v3307_v61  ;;  %1065 = vmatpush1.bf16.msra.mxu1 %v3308_v62  ;;  %v3395_v61 = vld [vmem:[#allocation9 + $0x3a4] ss:$16 sps:$4 sm:$0xff]   ;;  %v3398_v62 = vld [vmem:[#allocation9 + $0x3ac] ss:$16 sps:$4 sm:$0xff]  }
  0x9c   :  { %980 = vmatprep.subr.bf16.mxu0 %v3309_v63  ;;  %1066 = vmatprep.subr.bf16.mxu1 %v3311_v0  ;;  %v3393_v63 = vld [vmem:[#allocation9 + $0x3a0] ss:$16 sps:$4 sm:$0xff]   ;;  %v3396_v0 = vld [vmem:[#allocation9 + $0x3a8] ss:$16 sps:$4 sm:$0xff]  }
  0x9f   :  { %981 = vmatpush1.bf16.msra.mxu0 %v3313_v1  ;;  %1067 = vmatpush1.bf16.msra.mxu1 %v3314_v2  ;;  %v3401_v1 = vld [vmem:[#allocation9 + $0x3c4] ss:$16 sps:$4 sm:$0xff]   ;;  %v3404_v2 = vld [vmem:[#allocation9 + $0x3cc] ss:$16 sps:$4 sm:$0xff]  }
  0xa0   :  { %993 = vmatprep.subr.bf16.mxu0 %v3317_v3  ;;  %1079 = vmatprep.subr.bf16.mxu1 %v3320_v6  ;;  %v3399_v3 = vld [vmem:[#allocation9 + $0x3c0] ss:$16 sps:$4 sm:$0xff]   ;;  %v3410_v6 = vld [vmem:[#allocation9 + $0x3ec] ss:$16 sps:$4 sm:$0xff]  }
  0xa2   :  { %983 = vmatmul.mubr.bf16.vlgmr.msra.gmra.mrb[0].mxu0 %v178_v9  ;;  %1069 = vmatmul.mubr.bf16.vlgmr.msra.gmra.mrb[0].mxu1 %v178_v9  ;;  %v172_v9 = vld [vmem:[#allocation6 + $0x10] sm:$0xff] }
  0xa3   :  { %994 = vmatpush1.bf16.msra.mxu0 %v3315_v7  ;;  %1080 = vmatpush1.bf16.msra.mxu1 %v3318_v8  ;;  %v3405_v7 = vld [vmem:[#allocation9 + $0x3e0] ss:$16 sps:$4 sm:$0xff]   ;;  %v3408_v8 = vld [vmem:[#allocation9 + $0x3e8] ss:$16 sps:$4 sm:$0xff]  }
  0xa4   :  { %995 = vmatprep.subr.bf16.mxu0 %v3323_v10  ;;  %1081 = vmatprep.subr.bf16.mxu1 %v3326_v11  ;;  %v176_v10 = vld [vmem:[#allocation6 + $0x30] sm:$0xff] }
  0xa5   :  { %1025 = vmatprep.mubr.bf16.mxu0 %v181_v36  ;;  %1111 = vmatprep.mubr.bf16.mxu1 %v181_v36  ;;  %v180_v11 = vpack.c.bf16 %v176_v10, %v172_v9 }
  0xa7   :  { %996 = vmatpush1.bf16.msra.mxu0 %v3321_v12  ;;  %1082 = vmatpush1.bf16.msra.mxu1 %v3324_v13 }
  0xa8   :  { %997 = vmatprep.subr.bf16.mxu0 %v3329_v14  ;;  %1083 = vmatprep.subr.bf16.mxu1 %v3332_v15 }
  0xab   :  { %998 = vmatpush1.bf16.msra.mxu0 %v3327_v16  ;;  %1084 = vmatpush1.bf16.msra.mxu1 %v3330_v17 }
  0xac   :  { %999 = vmatprep.subr.bf16.mxu0 %v3335_v18  ;;  %1085 = vmatprep.subr.bf16.mxu1 %v3338_v19 }
  0xaf   :  { %1000 = vmatpush1.bf16.msra.mxu0 %v3333_v20  ;;  %1086 = vmatpush1.bf16.msra.mxu1 %v3336_v21 }
  0xb0   :  { %1001 = vmatprep.subr.bf16.mxu0 %v3341_v22  ;;  %1087 = vmatprep.subr.bf16.mxu1 %v3344_v23 }
  0xb3   :  { %1002 = vmatpush1.bf16.msra.mxu0 %v3339_v24  ;;  %1088 = vmatpush1.bf16.msra.mxu1 %v3342_v25 }
  0xb4   :  { %1003 = vmatprep.subr.bf16.mxu0 %v3347_v26  ;;  %1089 = vmatprep.subr.bf16.mxu1 %v3350_v27 }
  0xb7   :  { %1004 = vmatpush1.bf16.msra.mxu0 %v3345_v28  ;;  %1090 = vmatpush1.bf16.msra.mxu1 %v3348_v29 }
  0xb8   :  { %1005 = vmatprep.subr.bf16.mxu0 %v3353_v30  ;;  %1091 = vmatprep.subr.bf16.mxu1 %v3356_v31 }
  0xbb   :  { %1006 = vmatpush1.bf16.msra.mxu0 %v3351_v34  ;;  %1092 = vmatpush1.bf16.msra.mxu1 %v3354_v35 }
  0xbc   :  { %1007 = vmatprep.subr.bf16.mxu0 %v3359_v37  ;;  %1093 = vmatprep.subr.bf16.mxu1 %v3362_v38 }
  0xbf   :  { %1008 = vmatpush1.bf16.msra.mxu0 %v3357_v39  ;;  %1094 = vmatpush1.bf16.msra.mxu1 %v3360_v40 }
  0xc0   :  { %1009 = vmatprep.subr.bf16.mxu0 %v3365_v41  ;;  %1095 = vmatprep.subr.bf16.mxu1 %v3368_v42 }
  0xc3   :  { %1010 = vmatpush1.bf16.msra.mxu0 %v3363_v43  ;;  %1096 = vmatpush1.bf16.msra.mxu1 %v3366_v44 }
  0xc4   :  { %1011 = vmatprep.subr.bf16.mxu0 %v3371_v45  ;;  %1097 = vmatprep.subr.bf16.mxu1 %v3374_v46 }
  0xc7   :  { %1012 = vmatpush1.bf16.msra.mxu0 %v3369_v47  ;;  %1098 = vmatpush1.bf16.msra.mxu1 %v3372_v48 }
  0xc8   :  { %1013 = vmatprep.subr.bf16.mxu0 %v3377_v49  ;;  %1099 = vmatprep.subr.bf16.mxu1 %v3380_v50 }
  0xcb   :  { %1014 = vmatpush1.bf16.msra.mxu0 %v3375_v51  ;;  %1100 = vmatpush1.bf16.msra.mxu1 %v3378_v52 }
  0xcc   :  { %1015 = vmatprep.subr.bf16.mxu0 %v3383_v53  ;;  %1101 = vmatprep.subr.bf16.mxu1 %v3386_v54 }
  0xcf   :  { %1016 = vmatpush1.bf16.msra.mxu0 %v3381_v55  ;;  %1102 = vmatpush1.bf16.msra.mxu1 %v3384_v56 }
  0xd0   :  { %1017 = vmatprep.subr.bf16.mxu0 %v3389_v57  ;;  %1103 = vmatprep.subr.bf16.mxu1 %v3392_v58 }
  0xd3   :  { %1018 = vmatpush1.bf16.msra.mxu0 %v3387_v59  ;;  %1104 = vmatpush1.bf16.msra.mxu1 %v3390_v60 }
  0xd4   :  { %1019 = vmatprep.subr.bf16.mxu0 %v3395_v61  ;;  %1105 = vmatprep.subr.bf16.mxu1 %v3398_v62 }
  0xd7   :  { %1020 = vmatpush1.bf16.msra.mxu0 %v3393_v63  ;;  %1106 = vmatpush1.bf16.msra.mxu1 %v3396_v0 }
  0xd8   :  { %1021 = vmatprep.subr.bf16.mxu0 %v3401_v1  ;;  %1107 = vmatprep.subr.bf16.mxu1 %v3404_v2 }
  0xdb   :  { %1022 = vmatpush1.bf16.msra.mxu0 %v3399_v3  ;;  %1108 = vmatpush1.bf16.msra.mxu1 %v3402_v4 }
  0xdc   :  { %1023 = vmatprep.subr.bf16.mxu0 %v3407_v5  ;;  %1109 = vmatprep.subr.bf16.mxu1 %v3410_v6 }
  0xdf   :  { %1024 = vmatpush1.bf16.msra.mxu0 %v3405_v7  ;;  %1110 = vmatpush1.bf16.msra.mxu1 %v3408_v8 }
  0xe2   :  { %1026 = vmatmul.mubr.bf16.vlgmr.msra.gmra.mrb[0].mxu0 %v180_v11  ;;  %1112 = vmatmul.mubr.bf16.vlgmr.msra.gmra.mrb[0].mxu1 %v180_v11 }
  0xe3   :  { %3542 = shalt.err (!%p3539_p6)  }
  0xe4   :  { %s3543_s18 = scalar_lea.vmem %s167_s7, 3072  ;;  %p3548_p8 = scmp.lt.s32.totalorder %s167_s7, %s167_s7 }
  0xe5   :  { %p3544_p7 = scmp.ne.s32.totalorder %s167_s7, %s3543_s18  ;;  %p3549_p9 = scmp.lt.s32.totalorder %s3543_s18, %s3543_s18 }
  0xe7   :  { %p3550_p10 = por %p3549_p9, %p3548_p8 }
  0xe9   :  { %p3551_p11 = pnand %p3550_p10, %p3544_p7 }
  0xeb   :  { %3554 = shalt.err (!%p3551_p11)  }
  0xec   :  { %169 = dma.hbm_to_vmem [thread:$0]  %s4174_s10, 3072, %s167_s7, [#allocation5 + $0x2] }
 0x1b5   :  { %v3753_v12 = vpop.f32.mrb[0].mxu0  ;;  %v3755_v13 = vpop.f32.mrb[0].mxu1 }
 0x1b6   :  { %v3757_v14 = vpop.f32.mrb[1].mxu0  ;;  %v3759_v15 = vpop.f32.mrb[1].mxu1  ;;  %v1150_v16 = vmul.f32 %v3753_v12, %v3753_v12  ;;  %v1152_v17 = vmul.f32 %v3755_v13, %v3755_v13 }
 0x1b7   :  { %v1151_v18 = vmul.f32 %v3757_v14, %v3757_v14  ;;  %v1153_v19 = vmul.f32 %v3759_v15, %v3759_v15  ;;  %v3769_v20 = vpop.f32.mrb[2].mxu0  ;;  %v3771_v21 = vpop.f32.mrb[2].mxu1 }
 0x1b8   :  { %v1122_v22 = vadd.f32 %v3769_v20, %v3753_v12  ;;  %v1154_v23 = vmul.f32 %v3769_v20, %v3769_v20  ;;  %v1136_v24 = vadd.f32 %v3771_v21, %v3755_v13  ;;  %v1156_v25 = vmul.f32 %v3771_v21, %v3771_v21  ;;  %v3781_v26 = vpop.f32.mrb[3].mxu0  ;;  %v3783_v27 = vpop.f32.mrb[3].mxu1 }
 0x1b9   :  { %v1129_v28 = vadd.f32 %v3781_v26, %v3757_v14  ;;  %v1155_v29 = vmul.f32 %v3781_v26, %v3781_v26  ;;  %v1143_v30 = vadd.f32 %v3783_v27, %v3759_v15  ;;  %v1157_v31 = vmul.f32 %v3783_v27, %v3783_v27 }
 0x1ba   :  { %v1123_v32 = vrot.slane %v1122_v22, 4  ;;  %v1158_v33 = vadd.f32 %v1154_v23, %v1150_v16  ;;  %v1137_v34 = vrot.slane %v1136_v24, 4  ;;  %v1172_v35 = vadd.f32 %v1156_v25, %v1152_v17 }
 0x1bb   :  { %v1130_v36 = vrot.slane %v1129_v28, 4  ;;  %v1165_v37 = vadd.f32 %v1155_v29, %v1151_v18  ;;  %v1144_v38 = vrot.slane %v1143_v30, 4  ;;  %v1179_v39 = vadd.f32 %v1157_v31, %v1153_v19 }
 0x1bc   :  { %v1124_v40 = vadd.f32 %v1123_v32, %v1122_v22  ;;  %v1159_v41 = vrot.slane %v1158_v33, 4  ;;  %v1138_v42 = vadd.f32 %v1137_v34, %v1136_v24  ;;  %v1173_v43 = vrot.slane %v1172_v35, 4 }
 0x1bd   :  { %v1131_v44 = vadd.f32 %v1130_v36, %v1129_v28  ;;  %v1166_v45 = vrot.slane %v1165_v37, 4  ;;  %v1145_v46 = vadd.f32 %v1144_v38, %v1143_v30  ;;  %v1180_v47 = vrot.slane %v1179_v39, 4 }
 0x1be   :  { %v1125_v48 = vrot.slane %v1124_v40, 2  ;;  %v1160_v49 = vadd.f32 %v1159_v41, %v1158_v33  ;;  %v1139_v50 = vrot.slane %v1138_v42, 2  ;;  %v1174_v51 = vadd.f32 %v1173_v43, %v1172_v35 }
 0x1bf   :  { %v1132_v52 = vrot.slane %v1131_v44, 2  ;;  %v1167_v53 = vadd.f32 %v1166_v45, %v1165_v37  ;;  %v1146_v54 = vrot.slane %v1145_v46, 2  ;;  %v1181_v55 = vadd.f32 %v1180_v47, %v1179_v39 }
 0x1c0   :  { %v1126_v56 = vadd.f32 %v1125_v48, %v1124_v40  ;;  %v1161_v57 = vrot.slane %v1160_v49, 2  ;;  %v1140_v58 = vadd.f32 %v1139_v50, %v1138_v42  ;;  %v1175_v59 = vrot.slane %v1174_v51, 2 }
 0x1c1   :  { %v1133_v60 = vadd.f32 %v1132_v52, %v1131_v44  ;;  %v1168_v61 = vrot.slane %v1167_v53, 2  ;;  %v1147_v62 = vadd.f32 %v1146_v54, %v1145_v46  ;;  %v1182_v63 = vrot.slane %v1181_v55, 2 }
 0x1c2   :  { %v1127_v0 = vrot.slane %v1126_v56, 1  ;;  %v1162_v1 = vadd.f32 %v1161_v57, %v1160_v49  ;;  %v1141_v2 = vrot.slane %v1140_v58, 1  ;;  %v1176_v3 = vadd.f32 %v1175_v59, %v1174_v51 }
 0x1c3   :  { %v1134_v4 = vrot.slane %v1133_v60, 1  ;;  %v1169_v5 = vadd.f32 %v1168_v61, %v1167_v53  ;;  %v1148_v6 = vrot.slane %v1147_v62, 1  ;;  %v1183_v7 = vadd.f32 %v1182_v63, %v1181_v55 }
 0x1c4   :  { %v1128_v8 = vadd.f32 %v1127_v0, %v1126_v56  ;;  %v1163_v9 = vrot.slane %v1162_v1, 1  ;;  %v1142_v10 = vadd.f32 %v1141_v2, %v1140_v58  ;;  %v1177_v11 = vrot.slane %v1176_v3, 1 }
 0x1c5   :  { %v1135_v16 = vadd.f32 %v1134_v4, %v1133_v60  ;;  %v1170_v17 = vrot.slane %v1169_v5, 1  ;;  %v1149_v18 = vadd.f32 %v1148_v6, %v1147_v62  ;;  %v1184_v19 = vrot.slane %v1183_v7, 1 }
 0x1c6   :  { %v1164_v22 = vadd.f32 %v1163_v9, %v1162_v1  ;;  %v1186_v23 = vmul.f32 0.0625, %v1128_v8  ;;  %v1178_v24 = vadd.f32 %v1177_v11, %v1176_v3  ;;  %v1188_v25 = vmul.f32 0.0625, %v1142_v10  ;;  %v1206_v3 = vld [vmem:[#allocation11] sm:$0xf] }
 0x1c7   :  { %v1171_v28 = vadd.f32 %v1170_v17, %v1169_v5  ;;  %v1187_v29 = vmul.f32 0.0625, %v1135_v16  ;;  %v1185_v30 = vadd.f32 %v1184_v19, %v1183_v7  ;;  %v1189_v31 = vmul.f32 0.0625, %v1149_v18 }
 0x1c8   :  { %v1190_v32 = vmul.f32 0.0625, %v1164_v22  ;;  %v1194_v33 = vmul.f32 %v1186_v23, %v1186_v23  ;;  %v1192_v34 = vmul.f32 0.0625, %v1178_v24  ;;  %v1196_v35 = vmul.f32 %v1188_v25, %v1188_v25 }
 0x1c9   :  { %v1191_v36 = vmul.f32 0.0625, %v1171_v28  ;;  %v1195_v37 = vmul.f32 %v1187_v29, %v1187_v29  ;;  %v1193_v38 = vmul.f32 0.0625, %v1185_v30  ;;  %v1197_v39 = vmul.f32 %v1189_v31, %v1189_v31 }
 0x1ca   :  { %v1198_v40 = vsub.f32 %v1190_v32, %v1194_v33  ;;  %v1200_v41 = vsub.f32 %v1192_v34, %v1196_v35  ;;  %v3615_v52 = vmov 1966171168   ;;  %v1224_v54 = vlaneseq }
 0x1cb   :  { %v1199_v42 = vsub.f32 %v1191_v36, %v1195_v37  ;;  %v1201_v43 = vsub.f32 %v1193_v38, %v1197_v39  ;;  %v1222_v53 = vunpack.c.l.s4 %v3615_v52 }
 0x1cc   :  { %v1202_v44 = vmax.f32 %v1198_v40, 0.0  ;;  %v1204_v45 = vmax.f32 %v1200_v41, 0.0  ;;  %v3793_v56 = vshrl.u32 %v1224_v54, 7 }
 0x1cd   :  { %v1203_v46 = vmax.f32 %v1199_v42, 0.0  ;;  %v1205_v47 = vmax.f32 %v1201_v43, 0.0  ;;  %v1223_v55 = vunpack.c.0.s8 %v1222_v53 }
 0x1ce   :  { %v1207_v48 = vadd.f32 1e-05, %v1202_v44  ;;  %v1209_v49 = vadd.f32 1e-05, %v1204_v45  ;;  %v3801_v4 = vsub.s32 0, %v3793_v56  ;;  %v3805_v6 = vsub.s32 1, %v3793_v56 }
 0x1cf   :  { %v1208_v50 = vadd.f32 1e-05, %v1203_v46  ;;  %v1210_v51 = vadd.f32 1e-05, %v1205_v47  ;;  %v3796_v59 = vsub.s32 %v1223_v55, %v3793_v56  ;;  %v3808_v7 = vsub.s32 2, %v3793_v56 }
 0x1d0   :  { %3411 = vrsqrt.f32 %v1207_v48  ;;  %v3811_v8 = vsub.s32 3, %v3793_v56 }
 0x1d1   :  { %3413 = vrsqrt.f32 %v1209_v49 }
 0x1d2   :  { %3415 = vrsqrt.f32 %v1208_v50 }
 0x1d3   :  { %3417 = vrsqrt.f32 %v1210_v51 }
 0x1da   :  { %v3412_v57 = vpop.eup %3411 }
 0x1db   :  { %v3414_v58 = vpop.eup %3413 }
 0x1dc   :  { %v3416_v60 = vpop.eup %3415 }
 0x1dd   :  { %v3418_v61 = vpop.eup %3417  ;;  %v1219_v62 = vcombine.low %v3412_v57, %v3416_v60 }
 0x1de   :  { %v1220_v63 = vcombine.low %v3414_v58, %v3418_v61 }
 0x1df   :  { %v1227_v0 = vrot.slane %v1219_v62, %v3796_v59 }
 0x1e0   :  { %v1234_v1 = vrot.slane %v1220_v63, %v3796_v59 }
 0x1e2   :  { %v1235_v2 = vcombine.low %v1227_v0, %v1234_v1 }
 0x1e4   :  { %v1242_v5 = vrot.slane %v1235_v2, %v3796_v59 }
 0x1e6   :  { %v1244_v9 = vmul.f32 %v1242_v5, %v1206_v3 }
 0x1e8   :  { %v1250_v10 = vrot.slane %v1244_v9, %v3801_v4  ;;  %v1254_v11 = vrot.slane %v1244_v9, %v3805_v6  ;;  %v1258_v16 = vrot.slane %v1244_v9, %v3808_v7  ;;  %v1262_v17 = vrot.slane %v1244_v9, %v3811_v8 }
 0x1ea   :  { %v1267_v18 = vmul.f32 %v1250_v10, %v1186_v23  ;;  %v1268_v19 = vmul.f32 %v1254_v11, %v1187_v29  ;;  %v1269_v22 = vmul.f32 %v1258_v16, %v1188_v25  ;;  %v1270_v24 = vmul.f32 %v1262_v17, %v1189_v31 }
 0x1eb   :  { %v1301_v28 = vmul.f32 %v1250_v10, %v3753_v12  ;;  %v1302_v30 = vmul.f32 %v1254_v11, %v3757_v14  ;;  %v1303_v32 = vmul.f32 %v1258_v16, %v3755_v13  ;;  %v1304_v33 = vmul.f32 %v1262_v17, %v3759_v15  ;;  %v1245_v14 = vld [vmem:[#allocation12] sm:$0xf] }
 0x1ec   :  { %v1275_v34 = vcombine.low %v1267_v18, %v1268_v19  ;;  %v1276_v35 = vcombine.low %v1269_v22, %v1270_v24  ;;  %v1305_v36 = vmul.f32 %v1250_v10, %v3769_v20  ;;  %v1306_v37 = vmul.f32 %v1254_v11, %v3781_v26 }
 0x1ed   :  { %v1307_v38 = vmul.f32 %v1258_v16, %v3771_v21  ;;  %v1308_v23 = vmul.f32 %v1262_v17, %v3783_v27 }
 0x1ee   :  { %v1283_v25 = vrot.slane %v1275_v34, %v3796_v59  ;;  %v1290_v12 = vrot.slane %v1276_v35, %v3796_v59 }
 0x1f0   :  { %v1291_v29 = vcombine.low %v1283_v25, %v1290_v12 }
 0x1f2   :  { %v1298_v13 = vrot.slane %v1291_v29, %v3796_v59 }
 0x1f4   :  { %v1300_v31 = vsub.f32 %v1245_v14, %v1298_v13 }
 0x1f6   :  { %v1313_v15 = vrot.slane %v1300_v31, %v3801_v4  ;;  %v1317_v39 = vrot.slane %v1300_v31, %v3805_v6  ;;  %v1321_v20 = vrot.slane %v1300_v31, %v3808_v7  ;;  %v1325_v26 = vrot.slane %v1300_v31, %v3811_v8 }
 0x1f8   :  { %v3832_v21 = vadd.f32 %v1313_v15, %v1301_v28  ;;  %v1331_v27 = vadd.f32 %v1317_v39, %v1302_v30  ;;  %v3834_v40 = vadd.f32 %v1321_v20, %v1303_v32  ;;  %v3836_v41 = vadd.f32 %v1325_v26, %v1304_v33 }
 0x1f9   :  { %v3838_v42 = vadd.f32 %v1313_v15, %v1305_v36  ;;  %v1335_v43 = vadd.f32 %v1317_v39, %v1306_v37  ;;  %v3840_v44 = vadd.f32 %v1321_v20, %v1307_v38  ;;  %v3842_v45 = vadd.f32 %v1325_v26, %v1308_v23 }
 0x1fa   :  { %v1338_v46 = vmax.f32 %v3832_v21, 0.0  ;;  %v1339_v47 = vmax.f32 %v1331_v27, 0.0  ;;  %v1340_v48 = vmax.f32 %v3834_v40, 0.0  ;;  %v1341_v49 = vmax.f32 %v3836_v41, 0.0 }
 0x1fb   :  { %v1342_v50 = vmax.f32 %v3838_v42, 0.0  ;;  %v1343_v51 = vmax.f32 %v1335_v43, 0.0  ;;  %v1344_v52 = vmax.f32 %v3840_v44, 0.0  ;;  %v1345_v53 = vmax.f32 %v3842_v45, 0.0 }
 0x1fc   :  { %3583 = dma.done.wait [#allocation5], 24576 }
 0x1fd   :  { %3584 = vsyncadd [#allocation5], 4294942720  ;;  %v3850_v54 = vpack.c.bf16 %v1343_v51, %v1339_v47  ;;  %v1355_v55 = vld [vmem:[#allocation2 + $0x8] sm:$0xff]  ;;  %v1357_v57 = vld [vmem:[#allocation2 + $0x18] sm:$0xff] }
 0x1fe   :  { %v1354_v58 = vld [vmem:[#allocation2] sm:$0xff]  ;;  %1546 = vmatprep.subr.bf16.mxu0 %v1355_v55  ;;  %1632 = vmatprep.subr.bf16.mxu1 %v1357_v57  ;;  %v1356_v60 = vld [vmem:[#allocation2 + $0x10] sm:$0xff]  ;;  %v1361_v61 = vld [vmem:[#allocation2 + $0x38] sm:$0xff] }
 0x1ff   :  { %1578 = vmatprep.mubr.bf16.mxu0 %v3850_v54  ;;  %1664 = vmatprep.mubr.bf16.mxu1 %v3850_v54  ;;  %v1363_v62 = vld [vmem:[#allocation2 + $0x48] sm:$0xff]  ;;  %v1360_v63 = vld [vmem:[#allocation2 + $0x30] sm:$0xff]  ;;  %v1362_v0 = vld [vmem:[#allocation2 + $0x40] sm:$0xff] }
 0x200   :  { %1547 = vmatpush1.bf16.msra.mxu0 %v1354_v58  ;;  %1633 = vmatpush1.bf16.msra.mxu1 %v1356_v60  ;;  %v1367_v1 = vld [vmem:[#allocation2 + $0x68] sm:$0xff]  ;;  %v1369_v2 = vld [vmem:[#allocation2 + $0x78] sm:$0xff]  ;;  %v1366_v3 = vld [vmem:[#allocation2 + $0x60] sm:$0xff] }
 0x201   :  { %1548 = vmatprep.subr.bf16.mxu0 %v1361_v61  ;;  %1634 = vmatprep.subr.bf16.mxu1 %v1363_v62  ;;  %v1368_v5 = vld [vmem:[#allocation2 + $0x70] sm:$0xff]  ;;  %v1373_v9 = vld [vmem:[#allocation2 + $0x98] sm:$0xff]  ;;  %v1375_v10 = vld [vmem:[#allocation2 + $0xa8] sm:$0xff] }
 0x202   :  { %v1372_v11 = vld [vmem:[#allocation2 + $0x90] sm:$0xff]  ;;  %v1374_v16 = vld [vmem:[#allocation2 + $0xa0] sm:$0xff]  ;;  %v1379_v17 = vld [vmem:[#allocation2 + $0xc8] sm:$0xff] }
 0x203   :  { %v1381_v18 = vld [vmem:[#allocation2 + $0xd8] sm:$0xff]  ;;  %v1378_v19 = vld [vmem:[#allocation2 + $0xc0] sm:$0xff]  ;;  %v1380_v22 = vld [vmem:[#allocation2 + $0xd0] sm:$0xff] }
 0x204   :  { %1549 = vmatpush1.bf16.msra.mxu0 %v1360_v63  ;;  %1635 = vmatpush1.bf16.msra.mxu1 %v1362_v0  ;;  %v1385_v24 = vld [vmem:[#allocation2 + $0xf8] sm:$0xff]  ;;  %v1387_v28 = vld [vmem:[#allocation2 + $0x108] sm:$0xff]  ;;  %v1384_v30 = vld [vmem:[#allocation2 + $0xf0] sm:$0xff] }
 0x205   :  { %1550 = vmatprep.subr.bf16.mxu0 %v1367_v1  ;;  %1636 = vmatprep.subr.bf16.mxu1 %v1369_v2  ;;  %v1386_v32 = vld [vmem:[#allocation2 + $0x100] sm:$0xff]  ;;  %v1391_v33 = vld [vmem:[#allocation2 + $0x128] sm:$0xff]  ;;  %v1393_v34 = vld [vmem:[#allocation2 + $0x138] sm:$0xff] }
 0x206   :  { %v1390_v35 = vld [vmem:[#allocation2 + $0x120] sm:$0xff]  ;;  %v1392_v36 = vld [vmem:[#allocation2 + $0x130] sm:$0xff]  ;;  %v1397_v37 = vld [vmem:[#allocation2 + $0x158] sm:$0xff] }
 0x207   :  { %v1399_v38 = vld [vmem:[#allocation2 + $0x168] sm:$0xff]  ;;  %v1396_v23 = vld [vmem:[#allocation2 + $0x150] sm:$0xff]  ;;  %v1398_v25 = vld [vmem:[#allocation2 + $0x160] sm:$0xff] }
 0x208   :  { %1551 = vmatpush1.bf16.msra.mxu0 %v1366_v3  ;;  %1637 = vmatpush1.bf16.msra.mxu1 %v1368_v5  ;;  %v1403_v12 = vld [vmem:[#allocation2 + $0x188] sm:$0xff]  ;;  %v1405_v29 = vld [vmem:[#allocation2 + $0x198] sm:$0xff]  ;;  %v1402_v14 = vld [vmem:[#allocation2 + $0x180] sm:$0xff] }
 0x209   :  { %1552 = vmatprep.subr.bf16.mxu0 %v1373_v9  ;;  %1638 = vmatprep.subr.bf16.mxu1 %v1375_v10  ;;  %v1404_v13 = vld [vmem:[#allocation2 + $0x190] sm:$0xff]  ;;  %v1409_v31 = vld [vmem:[#allocation2 + $0x1b8] sm:$0xff]  ;;  %v1411_v15 = vld [vmem:[#allocation2 + $0x1c8] sm:$0xff] }
 0x20a   :  { %v1408_v39 = vld [vmem:[#allocation2 + $0x1b0] sm:$0xff]  ;;  %v1410_v20 = vld [vmem:[#allocation2 + $0x1c0] sm:$0xff]  ;;  %v1415_v26 = vld [vmem:[#allocation2 + $0x1e8] sm:$0xff] }
 0x20b   :  { %v1417_v27 = vld [vmem:[#allocation2 + $0x1f8] sm:$0xff]  ;;  %v1414_v43 = vld [vmem:[#allocation2 + $0x1e0] sm:$0xff]  ;;  %v1416_v47 = vld [vmem:[#allocation2 + $0x1f0] sm:$0xff] }
 0x20c   :  { %1553 = vmatpush1.bf16.msra.mxu0 %v1372_v11  ;;  %1639 = vmatpush1.bf16.msra.mxu1 %v1374_v16  ;;  %v1421_v51 = vld [vmem:[#allocation2 + $0x218] sm:$0xff]  ;;  %v1423_v55 = vld [vmem:[#allocation2 + $0x228] sm:$0xff]  ;;  %v1420_v57 = vld [vmem:[#allocation2 + $0x210] sm:$0xff] }
 0x20d   :  { %1554 = vmatprep.subr.bf16.mxu0 %v1379_v17  ;;  %1640 = vmatprep.subr.bf16.mxu1 %v1381_v18  ;;  %v1422_v58 = vld [vmem:[#allocation2 + $0x220] sm:$0xff]  ;;  %v1427_v60 = vld [vmem:[#allocation2 + $0x248] sm:$0xff]  ;;  %v1429_v61 = vld [vmem:[#allocation2 + $0x258] sm:$0xff] }
 0x20e   :  { %v1426_v62 = vld [vmem:[#allocation2 + $0x240] sm:$0xff]  ;;  %v1428_v63 = vld [vmem:[#allocation2 + $0x250] sm:$0xff]  ;;  %v1433_v0 = vld [vmem:[#allocation2 + $0x278] sm:$0xff] }
 0x20f   :  { %v1435_v1 = vld [vmem:[#allocation2 + $0x288] sm:$0xff]  ;;  %v1432_v2 = vld [vmem:[#allocation2 + $0x270] sm:$0xff]  ;;  %v1434_v3 = vld [vmem:[#allocation2 + $0x280] sm:$0xff] }
 0x210   :  { %1555 = vmatpush1.bf16.msra.mxu0 %v1378_v19  ;;  %1641 = vmatpush1.bf16.msra.mxu1 %v1380_v22  ;;  %v1439_v5 = vld [vmem:[#allocation2 + $0x2a8] sm:$0xff]  ;;  %v1441_v9 = vld [vmem:[#allocation2 + $0x2b8] sm:$0xff]  ;;  %v1438_v10 = vld [vmem:[#allocation2 + $0x2a0] sm:$0xff] }
 0x211   :  { %1556 = vmatprep.subr.bf16.mxu0 %v1385_v24  ;;  %1642 = vmatprep.subr.bf16.mxu1 %v1387_v28  ;;  %v1440_v11 = vld [vmem:[#allocation2 + $0x2b0] sm:$0xff]  ;;  %v1445_v16 = vld [vmem:[#allocation2 + $0x2d8] sm:$0xff]  ;;  %v1447_v17 = vld [vmem:[#allocation2 + $0x2e8] sm:$0xff]  ;;  %v3858_v28 = vpack.c.bf16 %v1342_v50, %v1338_v46 }
 0x212   :  { %v1444_v18 = vld [vmem:[#allocation2 + $0x2d0] sm:$0xff]  ;;  %v1446_v19 = vld [vmem:[#allocation2 + $0x2e0] sm:$0xff]  ;;  %v1451_v22 = vld [vmem:[#allocation2 + $0x308] sm:$0xff] }
 0x213   :  { %v1453_v24 = vld [vmem:[#allocation2 + $0x318] sm:$0xff]  ;;  %v1456_v21 = vld [vmem:[#allocation2 + $0x330] sm:$0xff]  ;;  %v1458_v42 = vld [vmem:[#allocation2 + $0x340] sm:$0xff] }
 0x214   :  { %1557 = vmatpush1.bf16.msra.mxu0 %v1384_v30  ;;  %1643 = vmatpush1.bf16.msra.mxu1 %v1386_v32  ;;  %v1450_v30 = vld [vmem:[#allocation2 + $0x300] sm:$0xff]  ;;  %v1452_v32 = vld [vmem:[#allocation2 + $0x310] sm:$0xff]  ;;  %v1463_v46 = vld [vmem:[#allocation2 + $0x368] sm:$0xff] }
 0x215   :  { %1558 = vmatprep.subr.bf16.mxu0 %v1391_v33  ;;  %1644 = vmatprep.subr.bf16.mxu1 %v1393_v34  ;;  %v1457_v33 = vld [vmem:[#allocation2 + $0x338] sm:$0xff]  ;;  %v1459_v34 = vld [vmem:[#allocation2 + $0x348] sm:$0xff]  ;;  %v1462_v41 = vld [vmem:[#allocation2 + $0x360] sm:$0xff] }
 0x216   :  { %v1465_v50 = vld [vmem:[#allocation2 + $0x378] sm:$0xff]  ;;  %v1464_v45 = vld [vmem:[#allocation2 + $0x370] sm:$0xff]  ;;  %v1370_v40 = vld [vmem:[#allocation2 + $0x80] sm:$0xff] }
 0x217   :  { %v1377_v44 = vld [vmem:[#allocation2 + $0xb8] sm:$0xff] }
 0x218   :  { %1559 = vmatpush1.bf16.msra.mxu0 %v1390_v35  ;;  %1645 = vmatpush1.bf16.msra.mxu1 %v1392_v36  ;;  %v3864_v35 = vpack.c.bf16 %v1345_v53, %v1341_v49  ;;  %v1469_v49 = vld [vmem:[#allocation2 + $0x398] sm:$0xff]  ;;  %v1471_v53 = vld [vmem:[#allocation2 + $0x3a8] sm:$0xff]  ;;  %v1468_v36 = vld [vmem:[#allocation2 + $0x390] sm:$0xff] }
 0x219   :  { %1560 = vmatprep.subr.bf16.mxu0 %v1397_v37  ;;  %1646 = vmatprep.subr.bf16.mxu1 %v1399_v38  ;;  %v1470_v37 = vld [vmem:[#allocation2 + $0x3a0] sm:$0xff]  ;;  %v1475_v38 = vld [vmem:[#allocation2 + $0x3c8] sm:$0xff] }
 0x21c   :  { %1561 = vmatpush1.bf16.msra.mxu0 %v1396_v23  ;;  %1647 = vmatpush1.bf16.msra.mxu1 %v1398_v25  ;;  %v1477_v23 = vld [vmem:[#allocation2 + $0x3d8] sm:$0xff]  ;;  %v1474_v25 = vld [vmem:[#allocation2 + $0x3c0] sm:$0xff] }
 0x21d   :  { %1562 = vmatprep.subr.bf16.mxu0 %v1403_v12  ;;  %1648 = vmatprep.subr.bf16.mxu1 %v1405_v29  ;;  %v1476_v12 = vld [vmem:[#allocation2 + $0x3d0] sm:$0xff]  ;;  %v1481_v29 = vld [vmem:[#allocation2 + $0x3f8] sm:$0xff] }
 0x220   :  { %1563 = vmatpush1.bf16.msra.mxu0 %v1402_v14  ;;  %1649 = vmatpush1.bf16.msra.mxu1 %v1404_v13  ;;  %v1483_v14 = vld [vmem:[#allocation2 + $0x408] sm:$0xff]  ;;  %v1480_v13 = vld [vmem:[#allocation2 + $0x3f0] sm:$0xff] }
 0x221   :  { %1564 = vmatprep.subr.bf16.mxu0 %v1409_v31  ;;  %1650 = vmatprep.subr.bf16.mxu1 %v1411_v15  ;;  %v1482_v31 = vld [vmem:[#allocation2 + $0x400] sm:$0xff]  ;;  %v1487_v15 = vld [vmem:[#allocation2 + $0x428] sm:$0xff] }
 0x224   :  { %1565 = vmatpush1.bf16.msra.mxu0 %v1408_v39  ;;  %1651 = vmatpush1.bf16.msra.mxu1 %v1410_v20  ;;  %v1489_v39 = vld [vmem:[#allocation2 + $0x438] sm:$0xff]  ;;  %v1486_v20 = vld [vmem:[#allocation2 + $0x420] sm:$0xff] }
 0x225   :  { %1566 = vmatprep.subr.bf16.mxu0 %v1415_v26  ;;  %1652 = vmatprep.subr.bf16.mxu1 %v1417_v27  ;;  %v1488_v26 = vld [vmem:[#allocation2 + $0x430] sm:$0xff]  ;;  %v1493_v27 = vld [vmem:[#allocation2 + $0x458] sm:$0xff] }
 0x228   :  { %1567 = vmatpush1.bf16.msra.mxu0 %v1414_v43  ;;  %1653 = vmatpush1.bf16.msra.mxu1 %v1416_v47  ;;  %v1495_v43 = vld [vmem:[#allocation2 + $0x468] sm:$0xff]  ;;  %v1492_v47 = vld [vmem:[#allocation2 + $0x450] sm:$0xff] }
 0x229   :  { %1568 = vmatprep.subr.bf16.mxu0 %v1421_v51  ;;  %1654 = vmatprep.subr.bf16.mxu1 %v1423_v55  ;;  %v1494_v51 = vld [vmem:[#allocation2 + $0x460] sm:$0xff]  ;;  %v1499_v55 = vld [vmem:[#allocation2 + $0x488] sm:$0xff] }
 0x22c   :  { %1569 = vmatpush1.bf16.msra.mxu0 %v1420_v57  ;;  %1655 = vmatpush1.bf16.msra.mxu1 %v1422_v58  ;;  %v1501_v57 = vld [vmem:[#allocation2 + $0x498] sm:$0xff]  ;;  %v1498_v58 = vld [vmem:[#allocation2 + $0x480] sm:$0xff] }
 0x22d   :  { %1570 = vmatprep.subr.bf16.mxu0 %v1427_v60  ;;  %1656 = vmatprep.subr.bf16.mxu1 %v1429_v61  ;;  %v1500_v60 = vld [vmem:[#allocation2 + $0x490] sm:$0xff]  ;;  %v1505_v61 = vld [vmem:[#allocation2 + $0x4b8] sm:$0xff] }
 0x230   :  { %1571 = vmatpush1.bf16.msra.mxu0 %v1426_v62  ;;  %1657 = vmatpush1.bf16.msra.mxu1 %v1428_v63  ;;  %v1507_v62 = vld [vmem:[#allocation2 + $0x4c8] sm:$0xff]  ;;  %v1504_v63 = vld [vmem:[#allocation2 + $0x4b0] sm:$0xff] }
 0x231   :  { %1572 = vmatprep.subr.bf16.mxu0 %v1433_v0  ;;  %1658 = vmatprep.subr.bf16.mxu1 %v1435_v1  ;;  %v1506_v0 = vld [vmem:[#allocation2 + $0x4c0] sm:$0xff]  ;;  %v1511_v1 = vld [vmem:[#allocation2 + $0x4e8] sm:$0xff] }
 0x234   :  { %1573 = vmatpush1.bf16.msra.mxu0 %v1432_v2  ;;  %1659 = vmatpush1.bf16.msra.mxu1 %v1434_v3  ;;  %v1513_v2 = vld [vmem:[#allocation2 + $0x4f8] sm:$0xff]  ;;  %v1510_v3 = vld [vmem:[#allocation2 + $0x4e0] sm:$0xff] }
 0x235   :  { %1574 = vmatprep.subr.bf16.mxu0 %v1439_v5  ;;  %1660 = vmatprep.subr.bf16.mxu1 %v1441_v9  ;;  %v1512_v5 = vld [vmem:[#allocation2 + $0x4f0] sm:$0xff]  ;;  %v1517_v9 = vld [vmem:[#allocation2 + $0x518] sm:$0xff] }
 0x238   :  { %1575 = vmatpush1.bf16.msra.mxu0 %v1438_v10  ;;  %1661 = vmatpush1.bf16.msra.mxu1 %v1440_v11  ;;  %v1519_v10 = vld [vmem:[#allocation2 + $0x528] sm:$0xff]  ;;  %v1516_v11 = vld [vmem:[#allocation2 + $0x510] sm:$0xff] }
 0x239   :  { %1576 = vmatprep.subr.bf16.mxu0 %v1445_v16  ;;  %1662 = vmatprep.subr.bf16.mxu1 %v1447_v17  ;;  %v1518_v16 = vld [vmem:[#allocation2 + $0x520] sm:$0xff]  ;;  %v1523_v17 = vld [vmem:[#allocation2 + $0x548] sm:$0xff] }
 0x23c   :  { %1577 = vmatpush1.bf16.msra.mxu0 %v1444_v18  ;;  %1663 = vmatpush1.bf16.msra.mxu1 %v1446_v19  ;;  %v1525_v18 = vld [vmem:[#allocation2 + $0x558] sm:$0xff]  ;;  %v1522_v19 = vld [vmem:[#allocation2 + $0x540] sm:$0xff] }
 0x23d   :  { %1589 = vmatprep.subr.bf16.mxu0 %v1451_v22  ;;  %1675 = vmatprep.subr.bf16.mxu1 %v1453_v24  ;;  %v1524_v22 = vld [vmem:[#allocation2 + $0x550] sm:$0xff]  ;;  %v1529_v24 = vld [vmem:[#allocation2 + $0x578] sm:$0xff] }
 0x23f   :  { %1579 = vmatmul.mubr.bf16.vlgmr.msra.gmra.mrb[4].mxu0 %v3858_v28  ;;  %1665 = vmatmul.mubr.bf16.vlgmr.msra.gmra.mrb[4].mxu1 %v3858_v28 }
 0x240   :  { %1590 = vmatpush1.bf16.msra.mxu0 %v1450_v30  ;;  %1676 = vmatpush1.bf16.msra.mxu1 %v1452_v32  ;;  %v1531_v30 = vld [vmem:[#allocation2 + $0x588] sm:$0xff]  ;;  %v1528_v32 = vld [vmem:[#allocation2 + $0x570] sm:$0xff] }
 0x241   :  { %1591 = vmatprep.subr.bf16.mxu0 %v1457_v33  ;;  %1677 = vmatprep.subr.bf16.mxu1 %v1459_v34  ;;  %v1530_v33 = vld [vmem:[#allocation2 + $0x580] sm:$0xff]  ;;  %v1535_v34 = vld [vmem:[#allocation2 + $0x5a8] sm:$0xff] }
 0x242   :  { %1621 = vmatprep.mubr.bf16.mxu0 %v3864_v35  ;;  %1707 = vmatprep.mubr.bf16.mxu1 %v3864_v35 }
 0x244   :  { %1592 = vmatpush1.bf16.msra.mxu0 %v1456_v21  ;;  %1678 = vmatpush1.bf16.msra.mxu1 %v1458_v42  ;;  %v1537_v21 = vld [vmem:[#allocation2 + $0x5b8] sm:$0xff]  ;;  %v1534_v42 = vld [vmem:[#allocation2 + $0x5a0] sm:$0xff] }
 0x245   :  { %1593 = vmatprep.subr.bf16.mxu0 %v1463_v46  ;;  %1679 = vmatprep.subr.bf16.mxu1 %v1465_v50  ;;  %v1536_v46 = vld [vmem:[#allocation2 + $0x5b0] sm:$0xff]  ;;  %v1541_v50 = vld [vmem:[#allocation2 + $0x5d8] sm:$0xff] }
 0x248   :  { %1594 = vmatpush1.bf16.msra.mxu0 %v1462_v41  ;;  %1680 = vmatpush1.bf16.msra.mxu1 %v1464_v45  ;;  %v1543_v41 = vld [vmem:[#allocation2 + $0x5e8] sm:$0xff]  ;;  %v1540_v45 = vld [vmem:[#allocation2 + $0x5d0] sm:$0xff] }
 0x249   :  { %1595 = vmatprep.subr.bf16.mxu0 %v1469_v49  ;;  %1681 = vmatprep.subr.bf16.mxu1 %v1471_v53  ;;  %v1542_v49 = vld [vmem:[#allocation2 + $0x5e0] sm:$0xff]  ;;  %v1359_v53 = vld [vmem:[#allocation2 + $0x28] sm:$0xff] }
 0x24c   :  { %1596 = vmatpush1.bf16.msra.mxu0 %v1468_v36  ;;  %1682 = vmatpush1.bf16.msra.mxu1 %v1470_v37  ;;  %v3874_v36 = vpack.c.bf16 %v1344_v52, %v1340_v48  ;;  %v1358_v37 = vld [vmem:[#allocation2 + $0x20] sm:$0xff]  ;;  %v1376_v48 = vld [vmem:[#allocation2 + $0xb0] sm:$0xff]  ;;  %v1383_v52 = vld [vmem:[#allocation2 + $0xe8] sm:$0xff] }
 0x24d   :  { %1597 = vmatprep.subr.bf16.mxu0 %v1475_v38  ;;  %1683 = vmatprep.subr.bf16.mxu1 %v1477_v23  ;;  %v1365_v38 = vld [vmem:[#allocation2 + $0x58] sm:$0xff]  ;;  %v1364_v23 = vld [vmem:[#allocation2 + $0x50] sm:$0xff] }
 0x250   :  { %1598 = vmatpush1.bf16.msra.mxu0 %v1474_v25  ;;  %1684 = vmatpush1.bf16.msra.mxu1 %v1476_v12  ;;  %v1371_v25 = vld [vmem:[#allocation2 + $0x88] sm:$0xff]  ;;  %v1382_v12 = vld [vmem:[#allocation2 + $0xe0] sm:$0xff] }
 0x251   :  { %1599 = vmatprep.subr.bf16.mxu0 %v1481_v29  ;;  %1685 = vmatprep.subr.bf16.mxu1 %v1483_v14  ;;  %v1389_v29 = vld [vmem:[#allocation2 + $0x118] sm:$0xff]  ;;  %v1388_v14 = vld [vmem:[#allocation2 + $0x110] sm:$0xff] }
 0x254   :  { %1600 = vmatpush1.bf16.msra.mxu0 %v1480_v13  ;;  %1686 = vmatpush1.bf16.msra.mxu1 %v1482_v31  ;;  %v1395_v13 = vld [vmem:[#allocation2 + $0x148] sm:$0xff]  ;;  %v1401_v31 = vld [vmem:[#allocation2 + $0x178] sm:$0xff] }
 0x255   :  { %1601 = vmatprep.subr.bf16.mxu0 %v1487_v15  ;;  %1687 = vmatprep.subr.bf16.mxu1 %v1489_v39  ;;  %v1400_v15 = vld [vmem:[#allocation2 + $0x170] sm:$0xff]  ;;  %v1407_v39 = vld [vmem:[#allocation2 + $0x1a8] sm:$0xff] }
 0x258   :  { %1602 = vmatpush1.bf16.msra.mxu0 %v1486_v20  ;;  %1688 = vmatpush1.bf16.msra.mxu1 %v1488_v26  ;;  %v1406_v20 = vld [vmem:[#allocation2 + $0x1a0] sm:$0xff]  ;;  %v1413_v26 = vld [vmem:[#allocation2 + $0x1d8] sm:$0xff] }
 0x259   :  { %1603 = vmatprep.subr.bf16.mxu0 %v1493_v27  ;;  %1689 = vmatprep.subr.bf16.mxu1 %v1495_v43  ;;  %v1412_v27 = vld [vmem:[#allocation2 + $0x1d0] sm:$0xff]  ;;  %v1419_v43 = vld [vmem:[#allocation2 + $0x208] sm:$0xff] }
 0x25c   :  { %1604 = vmatpush1.bf16.msra.mxu0 %v1492_v47  ;;  %1690 = vmatpush1.bf16.msra.mxu1 %v1494_v51  ;;  %v1418_v47 = vld [vmem:[#allocation2 + $0x200] sm:$0xff]  ;;  %v1425_v51 = vld [vmem:[#allocation2 + $0x238] sm:$0xff] }
 0x25d   :  { %1605 = vmatprep.subr.bf16.mxu0 %v1499_v55  ;;  %1691 = vmatprep.subr.bf16.mxu1 %v1501_v57  ;;  %v1424_v55 = vld [vmem:[#allocation2 + $0x230] sm:$0xff]  ;;  %v1431_v57 = vld [vmem:[#allocation2 + $0x268] sm:$0xff] }
 0x260   :  { %1606 = vmatpush1.bf16.msra.mxu0 %v1498_v58  ;;  %1692 = vmatpush1.bf16.msra.mxu1 %v1500_v60  ;;  %v1430_v58 = vld [vmem:[#allocation2 + $0x260] sm:$0xff]  ;;  %v1437_v60 = vld [vmem:[#allocation2 + $0x298] sm:$0xff] }
 0x261   :  { %1607 = vmatprep.subr.bf16.mxu0 %v1505_v61  ;;  %1693 = vmatprep.subr.bf16.mxu1 %v1507_v62  ;;  %v1436_v61 = vld [vmem:[#allocation2 + $0x290] sm:$0xff]  ;;  %v1443_v62 = vld [vmem:[#allocation2 + $0x2c8] sm:$0xff] }
 0x264   :  { %1608 = vmatpush1.bf16.msra.mxu0 %v1504_v63  ;;  %1694 = vmatpush1.bf16.msra.mxu1 %v1506_v0  ;;  %v1442_v63 = vld [vmem:[#allocation2 + $0x2c0] sm:$0xff]  ;;  %v1449_v0 = vld [vmem:[#allocation2 + $0x2f8] sm:$0xff] }
 0x265   :  { %1609 = vmatprep.subr.bf16.mxu0 %v1511_v1  ;;  %1695 = vmatprep.subr.bf16.mxu1 %v1513_v2  ;;  %v1448_v1 = vld [vmem:[#allocation2 + $0x2f0] sm:$0xff]  ;;  %v1455_v2 = vld [vmem:[#allocation2 + $0x328] sm:$0xff] }
 0x268   :  { %1610 = vmatpush1.bf16.msra.mxu0 %v1510_v3  ;;  %1696 = vmatpush1.bf16.msra.mxu1 %v1512_v5  ;;  %v1454_v3 = vld [vmem:[#allocation2 + $0x320] sm:$0xff]  ;;  %v1461_v5 = vld [vmem:[#allocation2 + $0x358] sm:$0xff] }
 0x269   :  { %1611 = vmatprep.subr.bf16.mxu0 %v1517_v9  ;;  %1697 = vmatprep.subr.bf16.mxu1 %v1519_v10  ;;  %v1460_v9 = vld [vmem:[#allocation2 + $0x350] sm:$0xff]  ;;  %v1467_v10 = vld [vmem:[#allocation2 + $0x388] sm:$0xff] }
 0x26c   :  { %1612 = vmatpush1.bf16.msra.mxu0 %v1516_v11  ;;  %1698 = vmatpush1.bf16.msra.mxu1 %v1518_v16  ;;  %v1466_v11 = vld [vmem:[#allocation2 + $0x380] sm:$0xff]  ;;  %v1473_v16 = vld [vmem:[#allocation2 + $0x3b8] sm:$0xff] }
 0x26d   :  { %1613 = vmatprep.subr.bf16.mxu0 %v1523_v17  ;;  %1699 = vmatprep.subr.bf16.mxu1 %v1525_v18  ;;  %v1472_v17 = vld [vmem:[#allocation2 + $0x3b0] sm:$0xff]  ;;  %v1479_v18 = vld [vmem:[#allocation2 + $0x3e8] sm:$0xff] }
 0x270   :  { %1614 = vmatpush1.bf16.msra.mxu0 %v1522_v19  ;;  %1700 = vmatpush1.bf16.msra.mxu1 %v1524_v22  ;;  %v1478_v19 = vld [vmem:[#allocation2 + $0x3e0] sm:$0xff]  ;;  %v1485_v22 = vld [vmem:[#allocation2 + $0x418] sm:$0xff] }
 0x271   :  { %1615 = vmatprep.subr.bf16.mxu0 %v1529_v24  ;;  %1701 = vmatprep.subr.bf16.mxu1 %v1531_v30  ;;  %v1491_v24 = vld [vmem:[#allocation2 + $0x448] sm:$0xff]  ;;  %v1497_v30 = vld [vmem:[#allocation2 + $0x478] sm:$0xff] }
 0x274   :  { %1616 = vmatpush1.bf16.msra.mxu0 %v1528_v32  ;;  %1702 = vmatpush1.bf16.msra.mxu1 %v1530_v33  ;;  %v1496_v32 = vld [vmem:[#allocation2 + $0x470] sm:$0xff]  ;;  %v1503_v33 = vld [vmem:[#allocation2 + $0x4a8] sm:$0xff] }
 0x275   :  { %1617 = vmatprep.subr.bf16.mxu0 %v1535_v34  ;;  %1703 = vmatprep.subr.bf16.mxu1 %v1537_v21  ;;  %v1502_v34 = vld [vmem:[#allocation2 + $0x4a0] sm:$0xff]  ;;  %v1509_v21 = vld [vmem:[#allocation2 + $0x4d8] sm:$0xff] }
 0x278   :  { %1618 = vmatpush1.bf16.msra.mxu0 %v1534_v42  ;;  %1704 = vmatpush1.bf16.msra.mxu1 %v1536_v46  ;;  %v1508_v42 = vld [vmem:[#allocation2 + $0x4d0] sm:$0xff]  ;;  %v1515_v46 = vld [vmem:[#allocation2 + $0x508] sm:$0xff] }
 0x279   :  { %1619 = vmatprep.subr.bf16.mxu0 %v1541_v50  ;;  %1705 = vmatprep.subr.bf16.mxu1 %v1543_v41  ;;  %v1514_v50 = vld [vmem:[#allocation2 + $0x500] sm:$0xff]  ;;  %v1521_v41 = vld [vmem:[#allocation2 + $0x538] sm:$0xff] }
 0x27c   :  { %1620 = vmatpush1.bf16.msra.mxu0 %v1540_v45  ;;  %1706 = vmatpush1.bf16.msra.mxu1 %v1542_v49  ;;  %v1520_v45 = vld [vmem:[#allocation2 + $0x530] sm:$0xff]  ;;  %v1527_v49 = vld [vmem:[#allocation2 + $0x568] sm:$0xff] }
 0x27d   :  { %1718 = vmatprep.subr.bf16.mxu0 %v1359_v53  ;;  %v1526_v53 = vld [vmem:[#allocation2 + $0x560] sm:$0xff] }
 0x27f   :  { %1622 = vmatmul.mubr.bf16.vlgmr.msra.gmra.mrb[4].mxu0 %v3874_v36  ;;  %1708 = vmatmul.mubr.bf16.vlgmr.msra.gmra.mrb[4].mxu1 %v3874_v36 }
 0x280   :  { %1719 = vmatpush1.bf16.msra.mxu0 %v1358_v37  ;;  %1750 = vmatprep.mubr.bf16.mxu0 %v3850_v54  ;;  %v1394_v54 = vld [vmem:[#allocation2 + $0x140] sm:$0xff]  ;;  %v1533_v37 = vld [vmem:[#allocation2 + $0x598] sm:$0xff] }
 0x281   :  { %1720 = vmatprep.subr.bf16.mxu0 %v1365_v38  ;;  %v1532_v38 = vld [vmem:[#allocation2 + $0x590] sm:$0xff] }
 0x284   :  { %1721 = vmatpush1.bf16.msra.mxu0 %v1364_v23  ;;  %v1539_v23 = vld [vmem:[#allocation2 + $0x5c8] sm:$0xff] }
 0x285   :  { %1722 = vmatprep.subr.bf16.mxu0 %v1371_v25  ;;  %v1538_v25 = vld [vmem:[#allocation2 + $0x5c0] sm:$0xff] }
 0x288   :  { %1723 = vmatpush1.bf16.msra.mxu0 %v1370_v40  ;;  %v1545_v40 = vld [vmem:[#allocation2 + $0x5f8] sm:$0xff] }
 0x289   :  { %1724 = vmatprep.subr.bf16.mxu0 %v1377_v44  ;;  %v1544_v44 = vld [vmem:[#allocation2 + $0x5f0] sm:$0xff] }
 0x28c   :  { %1725 = vmatpush1.bf16.msra.mxu0 %v1376_v48 }
 0x28d   :  { %1726 = vmatprep.subr.bf16.mxu0 %v1383_v52 }
 0x290   :  { %1727 = vmatpush1.bf16.msra.mxu0 %v1382_v12 }
 0x291   :  { %1728 = vmatprep.subr.bf16.mxu0 %v1389_v29 }
 0x294   :  { %1729 = vmatpush1.bf16.msra.mxu0 %v1388_v14 }
 0x295   :  { %1730 = vmatprep.subr.bf16.mxu0 %v1395_v13 }
 0x298   :  { %1731 = vmatpush1.bf16.msra.mxu0 %v1394_v54 }
 0x299   :  { %1732 = vmatprep.subr.bf16.mxu0 %v1401_v31 }
 0x29c   :  { %1733 = vmatpush1.bf16.msra.mxu0 %v1400_v15 }
 0x29d   :  { %1734 = vmatprep.subr.bf16.mxu0 %v1407_v39 }
 0x2a0   :  { %1735 = vmatpush1.bf16.msra.mxu0 %v1406_v20 }
 0x2a1   :  { %1736 = vmatprep.subr.bf16.mxu0 %v1413_v26 }
 0x2a4   :  { %1737 = vmatpush1.bf16.msra.mxu0 %v1412_v27 }
 0x2a5   :  { %1738 = vmatprep.subr.bf16.mxu0 %v1419_v43 }
 0x2a8   :  { %1739 = vmatpush1.bf16.msra.mxu0 %v1418_v47 }
 0x2a9   :  { %1740 = vmatprep.subr.bf16.mxu0 %v1425_v51 }
 0x2ac   :  { %1741 = vmatpush1.bf16.msra.mxu0 %v1424_v55 }
 0x2ad   :  { %1742 = vmatprep.subr.bf16.mxu0 %v1431_v57 }
 0x2b0   :  { %1743 = vmatpush1.bf16.msra.mxu0 %v1430_v58 }
 0x2b1   :  { %1744 = vmatprep.subr.bf16.mxu0 %v1437_v60 }
 0x2b4   :  { %1745 = vmatpush1.bf16.msra.mxu0 %v1436_v61 }
 0x2b5   :  { %1746 = vmatprep.subr.bf16.mxu0 %v1443_v62 }
 0x2b8   :  { %1747 = vmatpush1.bf16.msra.mxu0 %v1442_v63 }
 0x2b9   :  { %1748 = vmatprep.subr.bf16.mxu0 %v1449_v0 }
 0x2bc   :  { %1749 = vmatpush1.bf16.msra.mxu0 %v1448_v1 }
 0x2bd   :  { %1761 = vmatprep.subr.bf16.mxu0 %v1455_v2 }
 0x2bf   :  { %1751 = vmatmul.mubr.bf16.vlgmr.msra.gmra.mrb[8].mxu0 %v3858_v28  ;;  %v1484_v28 = vld [vmem:[#allocation2 + $0x410] sm:$0xff] }
 0x2c0   :  { %1762 = vmatpush1.bf16.msra.mxu0 %v1454_v3  ;;  %1793 = vmatprep.mubr.bf16.mxu0 %v3864_v35  ;;  %v1490_v35 = vld [vmem:[#allocation2 + $0x440] sm:$0xff] }
 0x2c1   :  { %1763 = vmatprep.subr.bf16.mxu0 %v1461_v5 }
 0x2c4   :  { %1764 = vmatpush1.bf16.msra.mxu0 %v1460_v9 }
 0x2c5   :  { %1765 = vmatprep.subr.bf16.mxu0 %v1467_v10 }
 0x2c8   :  { %1766 = vmatpush1.bf16.msra.mxu0 %v1466_v11 }
 0x2c9   :  { %1767 = vmatprep.subr.bf16.mxu0 %v1473_v16 }
 0x2cc   :  { %1768 = vmatpush1.bf16.msra.mxu0 %v1472_v17 }
 0x2cd   :  { %1769 = vmatprep.subr.bf16.mxu0 %v1479_v18 }
 0x2d0   :  { %1770 = vmatpush1.bf16.msra.mxu0 %v1478_v19 }
 0x2d1   :  { %1771 = vmatprep.subr.bf16.mxu0 %v1485_v22 }
 0x2d4   :  { %1772 = vmatpush1.bf16.msra.mxu0 %v1484_v28 }
 0x2d5   :  { %1773 = vmatprep.subr.bf16.mxu0 %v1491_v24 }
 0x2d8   :  { %1774 = vmatpush1.bf16.msra.mxu0 %v1490_v35 }
 0x2d9   :  { %1775 = vmatprep.subr.bf16.mxu0 %v1497_v30 }
 0x2dc   :  { %1776 = vmatpush1.bf16.msra.mxu0 %v1496_v32 }
 0x2dd   :  { %1777 = vmatprep.subr.bf16.mxu0 %v1503_v33 }
 0x2e0   :  { %1778 = vmatpush1.bf16.msra.mxu0 %v1502_v34 }
 0x2e1   :  { %1779 = vmatprep.subr.bf16.mxu0 %v1509_v21 }
 0x2e4   :  { %1780 = vmatpush1.bf16.msra.mxu0 %v1508_v42 }
 0x2e5   :  { %1781 = vmatprep.subr.bf16.mxu0 %v1515_v46 }
 0x2e8   :  { %1782 = vmatpush1.bf16.msra.mxu0 %v1514_v50 }
 0x2e9   :  { %1783 = vmatprep.subr.bf16.mxu0 %v1521_v41 }
 0x2ec   :  { %1784 = vmatpush1.bf16.msra.mxu0 %v1520_v45 }
 0x2ed   :  { %1785 = vmatprep.subr.bf16.mxu0 %v1527_v49 }
 0x2f0   :  { %1786 = vmatpush1.bf16.msra.mxu0 %v1526_v53 }
 0x2f1   :  { %1787 = vmatprep.subr.bf16.mxu0 %v1533_v37 }
 0x2f4   :  { %1788 = vmatpush1.bf16.msra.mxu0 %v1532_v38 }
 0x2f5   :  { %1789 = vmatprep.subr.bf16.mxu0 %v1539_v23 }
 0x2f8   :  { %1790 = vmatpush1.bf16.msra.mxu0 %v1538_v25 }
 0x2f9   :  { %1791 = vmatprep.subr.bf16.mxu0 %v1545_v40 }
 0x2fc   :  { %1792 = vmatpush1.bf16.msra.mxu0 %v1544_v44 }
 0x2ff   :  { %1794 = vmatmul.mubr.bf16.vlgmr.msra.gmra.mrb[8].mxu0 %v3874_v36 }
 0x352   :  { %v3882_v48 = vpop.f32.mrb[4].mxu0  ;;  %v3884_v52 = vpop.f32.mrb[4].mxu1 }
 0x353   :  { %v1848_v12 = vmul.f32 %v3884_v52, %v3884_v52  ;;  %v3888_v29 = vpop.f32.mrb[5].mxu0  ;;  %v3890_v14 = vpop.f32.mrb[5].mxu1  ;;  %v1846_v13 = vmul.f32 %v3882_v48, %v3882_v48 }
 0x354   :  { %v1847_v54 = vmul.f32 %v3888_v29, %v3888_v29  ;;  %v1849_v36 = vmul.f32 %v3890_v14, %v3890_v14  ;;  %v3898_v31 = vpop.f32.mrb[6].mxu0  ;;  %v3900_v15 = vpop.f32.mrb[6].mxu1 }
 0x355   :  { %v1804_v39 = vadd.f32 %v3898_v31, %v3882_v48  ;;  %v1852_v20 = vmul.f32 %v3898_v31, %v3898_v31  ;;  %v1818_v26 = vadd.f32 %v3900_v15, %v3884_v52  ;;  %v1854_v27 = vmul.f32 %v3900_v15, %v3900_v15  ;;  %v3910_v43 = vpop.f32.mrb[7].mxu0  ;;  %v3912_v47 = vpop.f32.mrb[7].mxu1 }
 0x356   :  { %v1811_v51 = vadd.f32 %v3910_v43, %v3888_v29  ;;  %v1853_v55 = vmul.f32 %v3910_v43, %v3910_v43  ;;  %v1825_v57 = vadd.f32 %v3912_v47, %v3890_v14  ;;  %v1855_v58 = vmul.f32 %v3912_v47, %v3912_v47 }
 0x357   :  { %v1805_v60 = vrot.slane %v1804_v39, 4  ;;  %v1858_v61 = vadd.f32 %v1852_v20, %v1846_v13  ;;  %v1819_v62 = vrot.slane %v1818_v26, 4  ;;  %v1872_v63 = vadd.f32 %v1854_v27, %v1848_v12 }
 0x358   :  { %v1812_v0 = vrot.slane %v1811_v51, 4  ;;  %v1865_v1 = vadd.f32 %v1853_v55, %v1847_v54  ;;  %v1826_v2 = vrot.slane %v1825_v57, 4  ;;  %v1879_v3 = vadd.f32 %v1855_v58, %v1849_v36 }
 0x359   :  { %v1806_v5 = vadd.f32 %v1805_v60, %v1804_v39  ;;  %v1859_v9 = vrot.slane %v1858_v61, 4  ;;  %v1820_v10 = vadd.f32 %v1819_v62, %v1818_v26  ;;  %v1873_v11 = vrot.slane %v1872_v63, 4 }
 0x35a   :  { %v1813_v16 = vadd.f32 %v1812_v0, %v1811_v51  ;;  %v1866_v17 = vrot.slane %v1865_v1, 4  ;;  %v1827_v18 = vadd.f32 %v1826_v2, %v1825_v57  ;;  %v1880_v19 = vrot.slane %v1879_v3, 4 }
 0x35b   :  { %v1807_v22 = vrot.slane %v1806_v5, 2  ;;  %v1860_v28 = vadd.f32 %v1859_v9, %v1858_v61  ;;  %v1821_v24 = vrot.slane %v1820_v10, 2  ;;  %v1874_v35 = vadd.f32 %v1873_v11, %v1872_v63 }
 0x35c   :  { %v1814_v30 = vrot.slane %v1813_v16, 2  ;;  %v1867_v32 = vadd.f32 %v1866_v17, %v1865_v1  ;;  %v1828_v33 = vrot.slane %v1827_v18, 2  ;;  %v1881_v34 = vadd.f32 %v1880_v19, %v1879_v3 }
 0x35d   :  { %v1808_v21 = vadd.f32 %v1807_v22, %v1806_v5  ;;  %v1861_v42 = vrot.slane %v1860_v28, 2  ;;  %v1822_v46 = vadd.f32 %v1821_v24, %v1820_v10  ;;  %v1875_v50 = vrot.slane %v1874_v35, 2 }
 0x35e   :  { %v1815_v41 = vadd.f32 %v1814_v30, %v1813_v16  ;;  %v1868_v45 = vrot.slane %v1867_v32, 2  ;;  %v1829_v49 = vadd.f32 %v1828_v33, %v1827_v18  ;;  %v1882_v53 = vrot.slane %v1881_v34, 2 }
 0x35f   :  { %v1809_v37 = vrot.slane %v1808_v21, 1  ;;  %v1862_v38 = vadd.f32 %v1861_v42, %v1860_v28  ;;  %v1823_v23 = vrot.slane %v1822_v46, 1  ;;  %v1876_v25 = vadd.f32 %v1875_v50, %v1874_v35 }
 0x360   :  { %v1816_v40 = vrot.slane %v1815_v41, 1  ;;  %v1869_v44 = vadd.f32 %v1868_v45, %v1867_v32  ;;  %v1830_v12 = vrot.slane %v1829_v49, 1  ;;  %v1883_v13 = vadd.f32 %v1882_v53, %v1881_v34 }
 0x361   :  { %v1810_v54 = vadd.f32 %v1809_v37, %v1808_v21  ;;  %v1863_v36 = vrot.slane %v1862_v38, 1  ;;  %v1824_v39 = vadd.f32 %v1823_v23, %v1822_v46  ;;  %v1877_v20 = vrot.slane %v1876_v25, 1 }
 0x362   :  { %v1817_v26 = vadd.f32 %v1816_v40, %v1815_v41  ;;  %v1870_v27 = vrot.slane %v1869_v44, 1  ;;  %v1831_v51 = vadd.f32 %v1830_v12, %v1829_v49  ;;  %v1884_v55 = vrot.slane %v1883_v13, 1 }
 0x363   :  { %v1864_v57 = vadd.f32 %v1863_v36, %v1862_v38  ;;  %v3922_v58 = vmul.f32 0.0625, %v1810_v54  ;;  %v1878_v60 = vadd.f32 %v1877_v20, %v1876_v25  ;;  %v3924_v61 = vmul.f32 0.0625, %v1824_v39 }
 0x364   :  { %v1871_v62 = vadd.f32 %v1870_v27, %v1869_v44  ;;  %v3926_v63 = vmul.f32 0.0625, %v1817_v26  ;;  %v1885_v0 = vadd.f32 %v1884_v55, %v1883_v13  ;;  %v3928_v1 = vmul.f32 0.0625, %v1831_v51 }
 0x365   :  { %v1906_v2 = vmul.f32 0.0625, %v1864_v57  ;;  %v1912_v3 = vmul.f32 %v3922_v58, %v3922_v58  ;;  %v1908_v5 = vmul.f32 0.0625, %v1878_v60  ;;  %v1914_v9 = vmul.f32 %v3924_v61, %v3924_v61 }
 0x366   :  { %v1907_v10 = vmul.f32 0.0625, %v1871_v62  ;;  %v1913_v11 = vmul.f32 %v3926_v63, %v3926_v63  ;;  %v1909_v16 = vmul.f32 0.0625, %v1885_v0  ;;  %v1915_v17 = vmul.f32 %v3928_v1, %v3928_v1 }
 0x367   :  { %v1918_v18 = vsub.f32 %v1906_v2, %v1912_v3  ;;  %v1920_v19 = vsub.f32 %v1908_v5, %v1914_v9 }
 0x368   :  { %v1919_v22 = vsub.f32 %v1907_v10, %v1913_v11  ;;  %v1921_v28 = vsub.f32 %v1909_v16, %v1915_v17 }
 0x369   :  { %v1924_v24 = vmax.f32 %v1918_v18, 0.0  ;;  %v1926_v35 = vmax.f32 %v1920_v19, 0.0 }
 0x36a   :  { %v1925_v30 = vmax.f32 %v1919_v22, 0.0  ;;  %v1927_v32 = vmax.f32 %v1921_v28, 0.0 }
 0x36b   :  { %v1931_v33 = vadd.f32 1e-05, %v1924_v24  ;;  %v1933_v34 = vadd.f32 1e-05, %v1926_v35 }
 0x36c   :  { %v1932_v21 = vadd.f32 1e-05, %v1925_v30  ;;  %v1934_v42 = vadd.f32 1e-05, %v1927_v32 }
 0x36d   :  { %3419 = vrsqrt.f32 %v1931_v33 }
 0x36e   :  { %3421 = vrsqrt.f32 %v1933_v34 }
 0x36f   :  { %3423 = vrsqrt.f32 %v1932_v21 }
 0x370   :  { %3425 = vrsqrt.f32 %v1934_v42 }
 0x377   :  { %v3420_v46 = vpop.eup %3419 }
 0x378   :  { %v3422_v50 = vpop.eup %3421 }
 0x379   :  { %v3424_v41 = vpop.eup %3423 }
 0x37a   :  { %v3426_v45 = vpop.eup %3425  ;;  %v1949_v49 = vcombine.low %v3420_v46, %v3424_v41 }
 0x37b   :  { %v1950_v53 = vcombine.low %v3422_v50, %v3426_v45 }
 0x37c   :  { %v1958_v37 = vrot.slane %v1949_v49, %v3796_v59 }
 0x37d   :  { %v1965_v38 = vrot.slane %v1950_v53, %v3796_v59 }
 0x37f   :  { %v1973_v23 = vcombine.low %v1958_v37, %v1965_v38 }
 0x3d2   :  { %v3940_v25 = vpop.f32.mrb[8].mxu0 }
 0x3d3   :  { %v3942_v40 = vpop.f32.mrb[9].mxu0  ;;  %v1850_v12 = vmul.f32 %v3940_v25, %v3940_v25 }
 0x3d4   :  { %v3944_v44 = vpop.f32.mrb[10].mxu0  ;;  %v1851_v39 = vmul.f32 %v3942_v40, %v3942_v40 }
 0x3d5   :  { %v1832_v13 = vadd.f32 %v3944_v44, %v3940_v25  ;;  %v1856_v54 = vmul.f32 %v3944_v44, %v3944_v44  ;;  %v3952_v36 = vpop.f32.mrb[11].mxu0 }
 0x3d6   :  { %v1839_v20 = vadd.f32 %v3952_v36, %v3942_v40  ;;  %v1857_v26 = vmul.f32 %v3952_v36, %v3952_v36 }
 0x3d7   :  { %v1833_v27 = vrot.slane %v1832_v13, 4  ;;  %v1886_v51 = vadd.f32 %v1856_v54, %v1850_v12 }
 0x3d8   :  { %v1840_v55 = vrot.slane %v1839_v20, 4  ;;  %v1893_v57 = vadd.f32 %v1857_v26, %v1851_v39 }
 0x3d9   :  { %v1834_v60 = vadd.f32 %v1833_v27, %v1832_v13  ;;  %v1887_v62 = vrot.slane %v1886_v51, 4 }
 0x3da   :  { %v1841_v0 = vadd.f32 %v1840_v55, %v1839_v20  ;;  %v1894_v2 = vrot.slane %v1893_v57, 4 }
 0x3db   :  { %v1835_v3 = vrot.slane %v1834_v60, 2  ;;  %v1888_v5 = vadd.f32 %v1887_v62, %v1886_v51  ;;  %v1980_v51 = vrot.slane %v1973_v23, %v3796_v59  ;;  %v2011_v62 = vsub.s32 4, %v3793_v56 }
 0x3dc   :  { %v1842_v9 = vrot.slane %v1841_v0, 2  ;;  %v1895_v10 = vadd.f32 %v1894_v2, %v1893_v57  ;;  %v1930_v57 = vld [vmem:[%s4169_s5] sm:$0x3f] }
 0x3dd   :  { %v1836_v11 = vadd.f32 %v1835_v3, %v1834_v60  ;;  %v1889_v16 = vrot.slane %v1888_v5, 2 }
 0x3de   :  { %v1843_v17 = vadd.f32 %v1842_v9, %v1841_v0  ;;  %v1896_v18 = vrot.slane %v1895_v10, 2  ;;  %v2015_v0 = vsub.s32 5, %v3793_v56 }
 0x3df   :  { %v1837_v19 = vrot.slane %v1836_v11, 1  ;;  %v1890_v22 = vadd.f32 %v1889_v16, %v1888_v5 }
 0x3e0   :  { %v1844_v28 = vrot.slane %v1843_v17, 1  ;;  %v1897_v24 = vadd.f32 %v1896_v18, %v1895_v10 }
 0x3e1   :  { %v1838_v35 = vadd.f32 %v1837_v19, %v1836_v11  ;;  %v1891_v30 = vrot.slane %v1890_v22, 1 }
 0x3e2   :  { %v1845_v32 = vadd.f32 %v1844_v28, %v1843_v17  ;;  %v1898_v33 = vrot.slane %v1897_v24, 1 }
 0x3e3   :  { %v1892_v34 = vadd.f32 %v1891_v30, %v1890_v22  ;;  %v1904_v21 = vmul.f32 0.0625, %v1838_v35 }
 0x3e4   :  { %v1899_v42 = vadd.f32 %v1898_v33, %v1897_v24  ;;  %v1905_v46 = vmul.f32 0.0625, %v1845_v32 }
 0x3e5   :  { %v1910_v50 = vmul.f32 0.0625, %v1892_v34  ;;  %v1916_v41 = vmul.f32 %v1904_v21, %v1904_v21 }
 0x3e6   :  { %v1911_v45 = vmul.f32 0.0625, %v1899_v42  ;;  %v1917_v49 = vmul.f32 %v1905_v46, %v1905_v46 }
 0x3e7   :  { %v1922_v53 = vsub.f32 %v1910_v50, %v1916_v41  ;;  %v1991_v50 = vld [vmem:[%s4170_s6] sm:$0x3f] }
 0x3e8   :  { %v1923_v37 = vsub.f32 %v1911_v45, %v1917_v49 }
 0x3e9   :  { %v1928_v38 = vmax.f32 %v1922_v53, 0.0 }
 0x3ea   :  { %v1929_v12 = vmax.f32 %v1923_v37, 0.0 }
 0x3eb   :  { %v1935_v13 = vadd.f32 1e-05, %v1928_v38 }
 0x3ec   :  { %v1936_v54 = vadd.f32 1e-05, %v1929_v12 }
 0x3ed   :  { %3427 = vrsqrt.f32 %v1935_v13 }
 0x3ee   :  { %3429 = vrsqrt.f32 %v1936_v54 }
 0x3f7   :  { %v3428_v39 = vpop.eup %3427 }
 0x3f8   :  { %v3430_v20 = vpop.eup %3429 }
 0x3f9   :  { %v1951_v26 = vcombine.low %v3428_v39, %v3430_v20 }
 0x3fb   :  { %v1972_v27 = vrot.slane %v1951_v26, %v3796_v59 }
 0x3fd   :  { %v1987_v55 = vrot.slane %v1972_v27, %v3796_v59 }
 0x3ff   :  { %v1988_v60 = vcombine.low %v1980_v51, %v1987_v55 }
 0x401   :  { %v1990_v2 = vmul.f32 %v1988_v60, %v1930_v57 }
 0x403   :  { %v1996_v3 = vrot.slane %v1990_v2, %v3801_v4  ;;  %v2000_v5 = vrot.slane %v1990_v2, %v3805_v6  ;;  %v2004_v9 = vrot.slane %v1990_v2, %v3808_v7  ;;  %v2008_v23 = vrot.slane %v1990_v2, %v3811_v8 }
 0x404   :  { %v2012_v10 = vrot.slane %v1990_v2, %v2011_v62  ;;  %v2016_v11 = vrot.slane %v1990_v2, %v2015_v0 }
 0x405   :  { %v2023_v16 = vmul.f32 %v1996_v3, %v3922_v58  ;;  %v2024_v17 = vmul.f32 %v2000_v5, %v3926_v63  ;;  %v2025_v18 = vmul.f32 %v2004_v9, %v3924_v61  ;;  %v2026_v19 = vmul.f32 %v2008_v23, %v3928_v1 }
 0x406   :  { %v2027_v56 = vmul.f32 %v2012_v10, %v1904_v21  ;;  %v2028_v22 = vmul.f32 %v2016_v11, %v1905_v46  ;;  %v2077_v28 = vmul.f32 %v1996_v3, %v3882_v48  ;;  %v2078_v24 = vmul.f32 %v2000_v5, %v3888_v29 }
 0x407   :  { %v2035_v35 = vcombine.low %v2023_v16, %v2024_v17  ;;  %v2036_v30 = vcombine.low %v2025_v18, %v2026_v19  ;;  %v2079_v32 = vmul.f32 %v2004_v9, %v3884_v52  ;;  %v2080_v33 = vmul.f32 %v2008_v23, %v3890_v14 }
 0x408   :  { %v2037_v34 = vcombine.low %v2027_v56, %v2028_v22  ;;  %v2081_v58 = vmul.f32 %v2012_v10, %v3940_v25  ;;  %v2082_v63 = vmul.f32 %v2016_v11, %v3942_v40  ;;  %v2083_v61 = vmul.f32 %v1996_v3, %v3898_v31 }
 0x409   :  { %v2044_v1 = vrot.slane %v2035_v35, %v3796_v59  ;;  %v2051_v21 = vrot.slane %v2036_v30, %v3796_v59  ;;  %v2084_v48 = vmul.f32 %v2000_v5, %v3910_v43  ;;  %v2085_v29 = vmul.f32 %v2004_v9, %v3900_v15 }
 0x40a   :  { %v2058_v42 = vrot.slane %v2037_v34, %v3796_v59  ;;  %v2086_v52 = vmul.f32 %v2008_v23, %v3912_v47  ;;  %v2087_v14 = vmul.f32 %v2012_v10, %v3944_v44  ;;  %v2088_v25 = vmul.f32 %v2016_v11, %v3952_v36 }
 0x40b   :  { %v2059_v46 = vcombine.low %v2044_v1, %v2051_v21 }
 0x40c   :  { %v2073_v31 = vrot.slane %v2058_v42, %v3796_v59 }
 0x40d   :  { %v2066_v40 = vrot.slane %v2059_v46, %v3796_v59 }
 0x40f   :  { %v2074_v43 = vcombine.low %v2066_v40, %v2073_v31 }
 0x411   :  { %v2076_v41 = vsub.f32 %v1991_v50, %v2074_v43 }
 0x413   :  { %v2093_v15 = vrot.slane %v2076_v41, %v3801_v4  ;;  %v2097_v45 = vrot.slane %v2076_v41, %v3805_v6  ;;  %v2101_v47 = vrot.slane %v2076_v41, %v3808_v7  ;;  %v2105_v44 = vrot.slane %v2076_v41, %v3811_v8 }
 0x414   :  { %v2109_v36 = vrot.slane %v2076_v41, %v2011_v62  ;;  %v2113_v49 = vrot.slane %v2076_v41, %v2015_v0 }
 0x415   :  { %v4000_v53 = vadd.f32 %v2093_v15, %v2077_v28  ;;  %v2121_v37 = vadd.f32 %v2097_v45, %v2078_v24  ;;  %v4002_v38 = vadd.f32 %v2101_v47, %v2079_v32  ;;  %v4004_v12 = vadd.f32 %v2105_v44, %v2080_v33 }
 0x416   :  { %v4006_v13 = vadd.f32 %v2109_v36, %v2081_v58  ;;  %v4008_v54 = vadd.f32 %v2113_v49, %v2082_v63  ;;  %v4010_v39 = vadd.f32 %v2093_v15, %v2083_v61  ;;  %v2127_v20 = vadd.f32 %v2097_v45, %v2084_v48 }
 0x417   :  { %v4012_v26 = vadd.f32 %v2101_v47, %v2085_v29  ;;  %v4014_v27 = vadd.f32 %v2105_v44, %v2086_v52  ;;  %v4016_v8 = vadd.f32 %v2109_v36, %v2087_v14  ;;  %v4018_v51 = vadd.f32 %v2113_v49, %v2088_v25 }
 0x418   :  { %v2132_v55 = vmax.f32 %v4000_v53, 0.0  ;;  %v2133_v57 = vmax.f32 %v2121_v37, 0.0  ;;  %v2134_v60 = vmax.f32 %v4002_v38, 0.0  ;;  %v2135_v62 = vmax.f32 %v4004_v12, 0.0 }
 0x419   :  { %v2136_v0 = vmax.f32 %v4006_v13, 0.0  ;;  %v2137_v2 = vmax.f32 %v4008_v54, 0.0  ;;  %v2138_v3 = vmax.f32 %v4010_v39, 0.0  ;;  %v2139_v5 = vmax.f32 %v2127_v20, 0.0 }
 0x41a   :  { %v2140_v9 = vmax.f32 %v4012_v26, 0.0  ;;  %v2141_v23 = vmax.f32 %v4014_v27, 0.0  ;;  %v2142_v10 = vmax.f32 %v4016_v8, 0.0  ;;  %v2143_v11 = vmax.f32 %v4018_v51, 0.0 }
 0x41b   :  { %3585 = dma.done.wait [#allocation5 + $0x1], 18432 }
 0x41c   :  { %3586 = vsyncadd [#allocation5 + $0x1], 4294948864  ;;  %v2149_v16 = vpack.c.bf16 %v2139_v5, %v2133_v57  ;;  %v2155_v17 = vld [vmem:[#allocation3 + $0x8] sm:$0xff]  ;;  %v2154_v18 = vld [vmem:[#allocation3] sm:$0xff]  ;;  %v4034_v20 = vpack.c.bf16 %v2138_v3, %v2132_v55 }
 0x41d   :  { %v2158_v19 = vld [vmem:[#allocation3 + $0x20] sm:$0xff]  ;;  %2298 = vmatprep.subr.bf16.mxu1 %v2155_v17  ;;  %v2157_v56 = vld [vmem:[#allocation3 + $0x18] sm:$0xff]  ;;  %v2180_v28 = vld [vmem:[#allocation3 + $0xd0] sm:$0xff] }
 0x41e   :  { %2459 = vmatprep.mubr.bf16.mxu0 %v2149_v16  ;;  %2330 = vmatprep.mubr.bf16.mxu1 %v2149_v16  ;;  %v2161_v22 = vld [vmem:[#allocation3 + $0x38] sm:$0xff]  ;;  %v2156_v24 = vld [vmem:[#allocation3 + $0x10] sm:$0xff]  ;;  %v2183_v35 = vld [vmem:[#allocation3 + $0xe8] sm:$0xff] }
 0x41f   :  { %2299 = vmatpush1.bf16.msra.mxu1 %v2154_v18  ;;  %3045 = vmatprep.subr.bf16.mxu0 %v2180_v28  ;;  %v2160_v30 = vld [vmem:[#allocation3 + $0x30] sm:$0xff]  ;;  %v2159_v32 = vld [vmem:[#allocation3 + $0x28] sm:$0xff]  ;;  %v2186_v34 = vld [vmem:[#allocation3 + $0x100] sm:$0xff]  ;;  %v4040_v18 = vpack.c.bf16 %v2141_v23, %v2135_v62 }
 0x420   :  { %2300 = vmatprep.subr.bf16.mxu1 %v2158_v19  ;;  %3046 = vmatpush3.bf16.msra.mxu0 %v2156_v24  ;;  %v2164_v33 = vld [vmem:[#allocation3 + $0x50] sm:$0xff]  ;;  %v2163_v58 = vld [vmem:[#allocation3 + $0x48] sm:$0xff]  ;;  %v2162_v63 = vld [vmem:[#allocation3 + $0x40] sm:$0xff] }
 0x421   :  { %3047 = vmatprep.subr.bf16.mxu0 %v2183_v35  ;;  %v2167_v61 = vld [vmem:[#allocation3 + $0x68] sm:$0xff]  ;;  %v2189_v1 = vld [vmem:[#allocation3 + $0x118] sm:$0xff]  ;;  %v2166_v21 = vld [vmem:[#allocation3 + $0x60] sm:$0xff] }
 0x422   :  { %v2165_v48 = vld [vmem:[#allocation3 + $0x58] sm:$0xff]  ;;  %v2170_v29 = vld [vmem:[#allocation3 + $0x80] sm:$0xff]  ;;  %v2192_v42 = vld [vmem:[#allocation3 + $0x130] sm:$0xff] }
 0x423   :  { %2301 = vmatpush1.bf16.msra.mxu1 %v2157_v56  ;;  %v2169_v52 = vld [vmem:[#allocation3 + $0x78] sm:$0xff]  ;;  %v2168_v14 = vld [vmem:[#allocation3 + $0x70] sm:$0xff]  ;;  %v2195_v46 = vld [vmem:[#allocation3 + $0x148] sm:$0xff] }
 0x424   :  { %2302 = vmatprep.subr.bf16.mxu1 %v2161_v22  ;;  %3048 = vmatpush3.bf16.msra.mxu0 %v2159_v32  ;;  %v2173_v25 = vld [vmem:[#allocation3 + $0x98] sm:$0xff]  ;;  %v2172_v40 = vld [vmem:[#allocation3 + $0x90] sm:$0xff]  ;;  %v2171_v31 = vld [vmem:[#allocation3 + $0x88] sm:$0xff] }
 0x425   :  { %3049 = vmatprep.subr.bf16.mxu0 %v2186_v34  ;;  %v2176_v50 = vld [vmem:[#allocation3 + $0xb0] sm:$0xff]  ;;  %v2198_v43 = vld [vmem:[#allocation3 + $0x160] sm:$0xff]  ;;  %v2175_v41 = vld [vmem:[#allocation3 + $0xa8] sm:$0xff] }
 0x426   :  { %v2174_v15 = vld [vmem:[#allocation3 + $0xa0] sm:$0xff]  ;;  %v2179_v45 = vld [vmem:[#allocation3 + $0xc8] sm:$0xff]  ;;  %v2201_v47 = vld [vmem:[#allocation3 + $0x178] sm:$0xff] }
 0x427   :  { %2303 = vmatpush1.bf16.msra.mxu1 %v2160_v30  ;;  %v2178_v44 = vld [vmem:[#allocation3 + $0xc0] sm:$0xff]  ;;  %v2177_v36 = vld [vmem:[#allocation3 + $0xb8] sm:$0xff]  ;;  %v2228_v37 = vld [vmem:[#allocation3 + $0x250] sm:$0xff] }
 0x428   :  { %2304 = vmatprep.subr.bf16.mxu1 %v2164_v33  ;;  %3050 = vmatpush3.bf16.msra.mxu0 %v2162_v63  ;;  %v2182_v49 = vld [vmem:[#allocation3 + $0xe0] sm:$0xff]  ;;  %v2181_v57 = vld [vmem:[#allocation3 + $0xd8] sm:$0xff]  ;;  %v2204_v5 = vld [vmem:[#allocation3 + $0x190] sm:$0xff] }
 0x429   :  { %3051 = vmatprep.subr.bf16.mxu0 %v2189_v1  ;;  %v2185_v16 = vld [vmem:[#allocation3 + $0xf8] sm:$0xff]  ;;  %v2231_v17 = vld [vmem:[#allocation3 + $0x268] sm:$0xff]  ;;  %v2184_v53 = vld [vmem:[#allocation3 + $0xf0] sm:$0xff] }
 0x42a   :  { %v2207_v39 = vld [vmem:[#allocation3 + $0x1a8] sm:$0xff]  ;;  %v2188_v55 = vld [vmem:[#allocation3 + $0x110] sm:$0xff]  ;;  %v2234_v3 = vld [vmem:[#allocation3 + $0x280] sm:$0xff] }
 0x42b   :  { %2305 = vmatpush1.bf16.msra.mxu1 %v2163_v58  ;;  %v2187_v12 = vld [vmem:[#allocation3 + $0x108] sm:$0xff]  ;;  %v2210_v27 = vld [vmem:[#allocation3 + $0x1c0] sm:$0xff]  ;;  %v2237_v23 = vld [vmem:[#allocation3 + $0x298] sm:$0xff] }
 0x42c   :  { %2306 = vmatprep.subr.bf16.mxu1 %v2167_v61  ;;  %3052 = vmatpush3.bf16.msra.mxu0 %v2165_v48  ;;  %v2191_v62 = vld [vmem:[#allocation3 + $0x128] sm:$0xff]  ;;  %v2190_v19 = vld [vmem:[#allocation3 + $0x120] sm:$0xff]  ;;  %v2213_v56 = vld [vmem:[#allocation3 + $0x1d8] sm:$0xff] }
 0x42d   :  { %3053 = vmatprep.subr.bf16.mxu0 %v2192_v42  ;;  %v2194_v22 = vld [vmem:[#allocation3 + $0x140] sm:$0xff]  ;;  %v2240_v28 = vld [vmem:[#allocation3 + $0x2b0] sm:$0xff]  ;;  %v2193_v24 = vld [vmem:[#allocation3 + $0x138] sm:$0xff] }
 0x42e   :  { %v2216_v35 = vld [vmem:[#allocation3 + $0x1f0] sm:$0xff]  ;;  %v2197_v30 = vld [vmem:[#allocation3 + $0x158] sm:$0xff]  ;;  %v2243_v32 = vld [vmem:[#allocation3 + $0x2c8] sm:$0xff] }
 0x42f   :  { %2307 = vmatpush1.bf16.msra.mxu1 %v2166_v21  ;;  %v2196_v33 = vld [vmem:[#allocation3 + $0x150] sm:$0xff]  ;;  %v2219_v34 = vld [vmem:[#allocation3 + $0x208] sm:$0xff]  ;;  %v2246_v63 = vld [vmem:[#allocation3 + $0x2e0] sm:$0xff] }
 0x430   :  { %2308 = vmatprep.subr.bf16.mxu1 %v2170_v29  ;;  %3054 = vmatpush3.bf16.msra.mxu0 %v2168_v14  ;;  %v2200_v58 = vld [vmem:[#allocation3 + $0x170] sm:$0xff]  ;;  %v2199_v61 = vld [vmem:[#allocation3 + $0x168] sm:$0xff]  ;;  %v2222_v1 = vld [vmem:[#allocation3 + $0x220] sm:$0xff] }
 0x431   :  { %3055 = vmatprep.subr.bf16.mxu0 %v2195_v46  ;;  %v2203_v21 = vld [vmem:[#allocation3 + $0x188] sm:$0xff]  ;;  %v2249_v48 = vld [vmem:[#allocation3 + $0x2f8] sm:$0xff]  ;;  %v2202_v29 = vld [vmem:[#allocation3 + $0x180] sm:$0xff] }
 0x432   :  { %v2225_v42 = vld [vmem:[#allocation3 + $0x238] sm:$0xff]  ;;  %v2276_v14 = vld [vmem:[#allocation3 + $0x3d0] sm:$0xff]  ;;  %v2255_v26 = vld [vmem:[#allocation3 + $0x328] sm:$0xff] }
 0x433   :  { %2309 = vmatpush1.bf16.msra.mxu1 %v2169_v52  ;;  %v2206_v52 = vld [vmem:[#allocation3 + $0x1a0] sm:$0xff]  ;;  %v2205_v46 = vld [vmem:[#allocation3 + $0x198] sm:$0xff]  ;;  %v2208_v38 = vld [vmem:[#allocation3 + $0x1b0] sm:$0xff] }
 0x434   :  { %2310 = vmatprep.subr.bf16.mxu1 %v2173_v25  ;;  %3056 = vmatpush3.bf16.msra.mxu0 %v2171_v31  ;;  %v4049_v25 = vpack.c.bf16 %v2140_v9, %v2134_v60  ;;  %v2209_v31 = vld [vmem:[#allocation3 + $0x1b8] sm:$0xff]  ;;  %v2212_v60 = vld [vmem:[#allocation3 + $0x1d0] sm:$0xff]  ;;  %v2282_v9 = vld [vmem:[#allocation3 + $0x400] sm:$0xff] }
 0x435   :  { %3057 = vmatprep.subr.bf16.mxu0 %v2198_v43  ;;  %v4055_v43 = vpack.c.bf16 %v2143_v11, %v2137_v2  ;;  %v2211_v54 = vld [vmem:[#allocation3 + $0x1c8] sm:$0xff]  ;;  %v2258_v51 = vld [vmem:[#allocation3 + $0x340] sm:$0xff]  ;;  %v2285_v11 = vld [vmem:[#allocation3 + $0x418] sm:$0xff] }
 0x436   :  { %v2215_v2 = vld [vmem:[#allocation3 + $0x1e8] sm:$0xff]  ;;  %v2238_v13 = vld [vmem:[#allocation3 + $0x2a0] sm:$0xff] }
 0x437   :  { %2311 = vmatpush1.bf16.msra.mxu1 %v2172_v40  ;;  %v2252_v40 = vld [vmem:[#allocation3 + $0x310] sm:$0xff]  ;;  %v2242_v8 = vld [vmem:[#allocation3 + $0x2c0] sm:$0xff] }
 0x438   :  { %2312 = vmatprep.subr.bf16.mxu1 %v2176_v50  ;;  %3058 = vmatpush3.bf16.msra.mxu0 %v2174_v15  ;;  %v2279_v50 = vld [vmem:[#allocation3 + $0x3e8] sm:$0xff]  ;;  %v2261_v15 = vld [vmem:[#allocation3 + $0x358] sm:$0xff] }
 0x439   :  { %3059 = vmatprep.subr.bf16.mxu0 %v2201_v47  ;;  %v2288_v47 = vld [vmem:[#allocation3 + $0x430] sm:$0xff] }
 0x43b   :  { %2313 = vmatpush1.bf16.msra.mxu1 %v2175_v41  ;;  %v2214_v41 = vld [vmem:[#allocation3 + $0x1e0] sm:$0xff] }
 0x43c   :  { %2314 = vmatprep.subr.bf16.mxu1 %v2179_v45  ;;  %3060 = vmatpush3.bf16.msra.mxu0 %v2177_v36  ;;  %v2218_v45 = vld [vmem:[#allocation3 + $0x200] sm:$0xff]  ;;  %v2264_v36 = vld [vmem:[#allocation3 + $0x370] sm:$0xff] }
 0x43d   :  { %3067 = vmatprep.subr.bf16.mxu0 %v2228_v37  ;;  %v2291_v37 = vld [vmem:[#allocation3 + $0x448] sm:$0xff] }
 0x43f   :  { %2315 = vmatpush1.bf16.msra.mxu1 %v2178_v44  ;;  %2460 = vmatmul.mubr.bf16.vlgmr.msra.gmra.mrb[12].mxu0 %v4034_v20  ;;  %v2217_v44 = vld [vmem:[#allocation3 + $0x1f8] sm:$0xff] }
 0x440   :  { %2316 = vmatprep.subr.bf16.mxu1 %v2182_v49  ;;  %3068 = vmatpush3.bf16.msra.mxu0 %v2204_v5  ;;  %v2221_v49 = vld [vmem:[#allocation3 + $0x218] sm:$0xff]  ;;  %v2224_v5 = vld [vmem:[#allocation3 + $0x230] sm:$0xff] }
 0x441   :  { %3069 = vmatprep.subr.bf16.mxu0 %v2231_v17  ;;  %2500 = vmatprep.mubr.bf16.mxu0 %v4040_v18  ;;  %v2223_v17 = vld [vmem:[#allocation3 + $0x228] sm:$0xff] }
 0x443   :  { %2317 = vmatpush1.bf16.msra.mxu1 %v2181_v57  ;;  %v2267_v57 = vld [vmem:[#allocation3 + $0x388] sm:$0xff] }
 0x444   :  { %2318 = vmatprep.subr.bf16.mxu1 %v2185_v16  ;;  %3070 = vmatpush3.bf16.msra.mxu0 %v2207_v39  ;;  %v2294_v16 = vld [vmem:[#allocation3 + $0x460] sm:$0xff]  ;;  %v2297_v39 = vld [vmem:[#allocation3 + $0x478] sm:$0xff] }
 0x445   :  { %3071 = vmatprep.subr.bf16.mxu0 %v2234_v3  ;;  %v2273_v3 = vld [vmem:[#allocation3 + $0x3b8] sm:$0xff] }
 0x447   :  { %2319 = vmatpush1.bf16.msra.mxu1 %v2184_v53  ;;  %v2227_v53 = vld [vmem:[#allocation3 + $0x248] sm:$0xff] }
 0x448   :  { %2320 = vmatprep.subr.bf16.mxu1 %v2188_v55  ;;  %3072 = vmatpush3.bf16.msra.mxu0 %v2210_v27  ;;  %v2226_v55 = vld [vmem:[#allocation3 + $0x240] sm:$0xff]  ;;  %v4064_v27 = vpack.c.bf16 %v2142_v10, %v2136_v0  ;;  %v2241_v0 = vld [vmem:[#allocation3 + $0x2b8] sm:$0xff] }
 0x449   :  { %3073 = vmatprep.subr.bf16.mxu0 %v2237_v23  ;;  %v2233_v23 = vld [vmem:[#allocation3 + $0x278] sm:$0xff] }
 0x44a   :  { %v2245_v10 = vld [vmem:[#allocation3 + $0x2d8] sm:$0xff] }
 0x44b   :  { %2321 = vmatpush1.bf16.msra.mxu1 %v2187_v12  ;;  %v2230_v12 = vld [vmem:[#allocation3 + $0x260] sm:$0xff] }
 0x44c   :  { %2322 = vmatprep.subr.bf16.mxu1 %v2191_v62  ;;  %3074 = vmatpush3.bf16.msra.mxu0 %v2213_v56  ;;  %v2229_v62 = vld [vmem:[#allocation3 + $0x258] sm:$0xff]  ;;  %v2236_v56 = vld [vmem:[#allocation3 + $0x290] sm:$0xff] }
 0x44d   :  { %3075 = vmatprep.subr.bf16.mxu0 %v2240_v28  ;;  %v2239_v28 = vld [vmem:[#allocation3 + $0x2a8] sm:$0xff] }
 0x44f   :  { %2323 = vmatpush1.bf16.msra.mxu1 %v2190_v19  ;;  %v2232_v19 = vld [vmem:[#allocation3 + $0x270] sm:$0xff] }
 0x450   :  { %2324 = vmatprep.subr.bf16.mxu1 %v2194_v22  ;;  %3076 = vmatpush3.bf16.msra.mxu0 %v2216_v35  ;;  %v2235_v22 = vld [vmem:[#allocation3 + $0x288] sm:$0xff]  ;;  %v2248_v35 = vld [vmem:[#allocation3 + $0x2f0] sm:$0xff] }
 0x451   :  { %3077 = vmatprep.subr.bf16.mxu0 %v2243_v32  ;;  %v2251_v32 = vld [vmem:[#allocation3 + $0x308] sm:$0xff] }
 0x453   :  { %2325 = vmatpush1.bf16.msra.mxu1 %v2193_v24  ;;  %v2244_v24 = vld [vmem:[#allocation3 + $0x2d0] sm:$0xff] }
 0x454   :  { %2326 = vmatprep.subr.bf16.mxu1 %v2197_v30  ;;  %3078 = vmatpush3.bf16.msra.mxu0 %v2219_v34  ;;  %v2247_v30 = vld [vmem:[#allocation3 + $0x2e8] sm:$0xff]  ;;  %v2254_v34 = vld [vmem:[#allocation3 + $0x320] sm:$0xff] }
 0x455   :  { %3079 = vmatprep.subr.bf16.mxu0 %v2246_v63  ;;  %v2257_v63 = vld [vmem:[#allocation3 + $0x338] sm:$0xff] }
 0x457   :  { %2327 = vmatpush1.bf16.msra.mxu1 %v2196_v33  ;;  %v2250_v33 = vld [vmem:[#allocation3 + $0x300] sm:$0xff] }
 0x458   :  { %2328 = vmatprep.subr.bf16.mxu1 %v2200_v58  ;;  %3080 = vmatpush3.bf16.msra.mxu0 %v2222_v1  ;;  %v2253_v58 = vld [vmem:[#allocation3 + $0x318] sm:$0xff]  ;;  %v2260_v1 = vld [vmem:[#allocation3 + $0x350] sm:$0xff] }
 0x459   :  { %3081 = vmatprep.subr.bf16.mxu0 %v2249_v48  ;;  %v2263_v48 = vld [vmem:[#allocation3 + $0x368] sm:$0xff] }
 0x45b   :  { %2329 = vmatpush1.bf16.msra.mxu1 %v2199_v61  ;;  %v2256_v61 = vld [vmem:[#allocation3 + $0x330] sm:$0xff] }
 0x45c   :  { %2341 = vmatprep.subr.bf16.mxu1 %v2203_v21  ;;  %3082 = vmatpush3.bf16.msra.mxu0 %v2225_v42  ;;  %v2259_v21 = vld [vmem:[#allocation3 + $0x348] sm:$0xff]  ;;  %v2266_v42 = vld [vmem:[#allocation3 + $0x380] sm:$0xff] }
 0x45d   :  { %3089 = vmatprep.subr.bf16.mxu0 %v2276_v14  ;;  %v2269_v14 = vld [vmem:[#allocation3 + $0x398] sm:$0xff] }
 0x45e   :  { %2331 = vmatmul.mubr.bf16.vlgmr.msra.gmra.mrb[8].mxu1 %v4034_v20  ;;  %v2220_v20 = vld [vmem:[#allocation3 + $0x210] sm:$0xff] }
 0x45f   :  { %2342 = vmatpush1.bf16.msra.mxu1 %v2202_v29  ;;  %2373 = vmatprep.mubr.bf16.mxu1 %v4040_v18  ;;  %v2270_v18 = vld [vmem:[#allocation3 + $0x3a0] sm:$0xff] }
 0x460   :  { %2343 = vmatprep.subr.bf16.mxu1 %v2206_v52  ;;  %2501 = vmatmul.mubr.bf16.vlgmr.msra.gmra.mrb[16].mxu0 %v4049_v25  ;;  %v2262_v29 = vld [vmem:[#allocation3 + $0x360] sm:$0xff]  ;;  %v2265_v52 = vld [vmem:[#allocation3 + $0x378] sm:$0xff] }
 0x461   :  { %3090 = vmatpush3.bf16.msra.mxu0 %v2252_v40  ;;  %2541 = vmatprep.mubr.bf16.mxu0 %v4055_v43  ;;  %v2271_v40 = vld [vmem:[#allocation3 + $0x3a8] sm:$0xff] }
 0x462   :  { %3091 = vmatprep.subr.bf16.mxu0 %v2279_v50  ;;  %v2274_v50 = vld [vmem:[#allocation3 + $0x3c0] sm:$0xff] }
 0x463   :  { %2344 = vmatpush1.bf16.msra.mxu1 %v2205_v46  ;;  %v2272_v46 = vld [vmem:[#allocation3 + $0x3b0] sm:$0xff] }
 0x464   :  { %2345 = vmatprep.subr.bf16.mxu1 %v2209_v31  ;;  %v2275_v31 = vld [vmem:[#allocation3 + $0x3c8] sm:$0xff] }
 0x465   :  { %3092 = vmatpush3.bf16.msra.mxu0 %v2255_v26  ;;  %v2281_v26 = vld [vmem:[#allocation3 + $0x3f8] sm:$0xff] }
 0x466   :  { %3093 = vmatprep.subr.bf16.mxu0 %v2282_v9  ;;  %v2284_v9 = vld [vmem:[#allocation3 + $0x410] sm:$0xff] }
 0x467   :  { %2346 = vmatpush1.bf16.msra.mxu1 %v2208_v38  ;;  %v2277_v38 = vld [vmem:[#allocation3 + $0x3d8] sm:$0xff] }
 0x468   :  { %2347 = vmatprep.subr.bf16.mxu1 %v2212_v60  ;;  %v2280_v60 = vld [vmem:[#allocation3 + $0x3f0] sm:$0xff] }
 0x469   :  { %3094 = vmatpush3.bf16.msra.mxu0 %v2258_v51  ;;  %v2287_v51 = vld [vmem:[#allocation3 + $0x428] sm:$0xff] }
 0x46a   :  { %3095 = vmatprep.subr.bf16.mxu0 %v2285_v11  ;;  %v2290_v11 = vld [vmem:[#allocation3 + $0x440] sm:$0xff] }
 0x46b   :  { %2348 = vmatpush1.bf16.msra.mxu1 %v2211_v54  ;;  %v2283_v54 = vld [vmem:[#allocation3 + $0x408] sm:$0xff] }
 0x46c   :  { %2349 = vmatprep.subr.bf16.mxu1 %v2215_v2  ;;  %v2286_v2 = vld [vmem:[#allocation3 + $0x420] sm:$0xff] }
 0x46d   :  { %3096 = vmatpush3.bf16.msra.mxu0 %v2261_v15  ;;  %v2293_v15 = vld [vmem:[#allocation3 + $0x458] sm:$0xff] }
 0x46e   :  { %3097 = vmatprep.subr.bf16.mxu0 %v2288_v47  ;;  %v2296_v47 = vld [vmem:[#allocation3 + $0x470] sm:$0xff] }
 0x46f   :  { %2350 = vmatpush1.bf16.msra.mxu1 %v2214_v41  ;;  %v2289_v41 = vld [vmem:[#allocation3 + $0x438] sm:$0xff] }
 0x470   :  { %2351 = vmatprep.subr.bf16.mxu1 %v2218_v45  ;;  %v2292_v45 = vld [vmem:[#allocation3 + $0x450] sm:$0xff] }
 0x471   :  { %3098 = vmatpush3.bf16.msra.mxu0 %v2264_v36 }
 0x472   :  { %3099 = vmatprep.subr.bf16.mxu0 %v2291_v37 }
 0x473   :  { %2352 = vmatpush1.bf16.msra.mxu1 %v2217_v44  ;;  %v2295_v44 = vld [vmem:[#allocation3 + $0x468] sm:$0xff] }
 0x474   :  { %2353 = vmatprep.subr.bf16.mxu1 %v2221_v49 }
 0x475   :  { %3100 = vmatpush3.bf16.msra.mxu0 %v2267_v57 }
 0x476   :  { %3101 = vmatprep.subr.bf16.mxu0 %v2294_v16 }
 0x477   :  { %2354 = vmatpush1.bf16.msra.mxu1 %v2220_v20 }
 0x478   :  { %2355 = vmatprep.subr.bf16.mxu1 %v2224_v5 }
 0x479   :  { %3102 = vmatpush3.bf16.msra.mxu0 %v2270_v18 }
 0x47a   :  { %3103 = vmatprep.subr.bf16.mxu0 %v2297_v39 }
 0x47b   :  { %2356 = vmatpush1.bf16.msra.mxu1 %v2223_v17 }
 0x47c   :  { %2357 = vmatprep.subr.bf16.mxu1 %v2227_v53 }
 0x47d   :  { %3104 = vmatpush3.bf16.msra.mxu0 %v2273_v3 }
 0x47f   :  { %2358 = vmatpush1.bf16.msra.mxu1 %v2226_v55 }
 0x480   :  { %2359 = vmatprep.subr.bf16.mxu1 %v2230_v12  ;;  %2542 = vmatmul.mubr.bf16.vlgmr.msra.gmra.mrb[20].mxu0 %v4064_v27 }
 0x483   :  { %2360 = vmatpush1.bf16.msra.mxu1 %v2229_v62 }
 0x484   :  { %2361 = vmatprep.subr.bf16.mxu1 %v2233_v23 }
 0x487   :  { %2362 = vmatpush1.bf16.msra.mxu1 %v2232_v19 }
 0x488   :  { %2363 = vmatprep.subr.bf16.mxu1 %v2236_v56 }
 0x48b   :  { %2364 = vmatpush1.bf16.msra.mxu1 %v2235_v22 }
 0x48c   :  { %2365 = vmatprep.subr.bf16.mxu1 %v2239_v28 }
 0x48f   :  { %2366 = vmatpush1.bf16.msra.mxu1 %v2238_v13 }
 0x490   :  { %2367 = vmatprep.subr.bf16.mxu1 %v2242_v8 }
 0x493   :  { %2368 = vmatpush1.bf16.msra.mxu1 %v2241_v0 }
 0x494   :  { %2369 = vmatprep.subr.bf16.mxu1 %v2245_v10 }
 0x497   :  { %2370 = vmatpush1.bf16.msra.mxu1 %v2244_v24 }
 0x498   :  { %2371 = vmatprep.subr.bf16.mxu1 %v2248_v35 }
 0x49b   :  { %2372 = vmatpush1.bf16.msra.mxu1 %v2247_v30 }
 0x49c   :  { %2384 = vmatprep.subr.bf16.mxu1 %v2251_v32 }
 0x49e   :  { %2374 = vmatmul.mubr.bf16.vlgmr.msra.gmra.mrb[8].mxu1 %v4049_v25  ;;  %v2268_v25 = vld [vmem:[#allocation3 + $0x390] sm:$0xff] }
 0x49f   :  { %2385 = vmatpush1.bf16.msra.mxu1 %v2250_v33  ;;  %2416 = vmatprep.mubr.bf16.mxu1 %v4055_v43  ;;  %v2278_v43 = vld [vmem:[#allocation3 + $0x3e0] sm:$0xff] }
 0x4a0   :  { %2386 = vmatprep.subr.bf16.mxu1 %v2254_v34 }
 0x4a3   :  { %2387 = vmatpush1.bf16.msra.mxu1 %v2253_v58 }
 0x4a4   :  { %2388 = vmatprep.subr.bf16.mxu1 %v2257_v63 }
 0x4a7   :  { %2389 = vmatpush1.bf16.msra.mxu1 %v2256_v61 }
 0x4a8   :  { %2390 = vmatprep.subr.bf16.mxu1 %v2260_v1 }
 0x4ab   :  { %2391 = vmatpush1.bf16.msra.mxu1 %v2259_v21 }
 0x4ac   :  { %2392 = vmatprep.subr.bf16.mxu1 %v2263_v48 }
 0x4af   :  { %2393 = vmatpush1.bf16.msra.mxu1 %v2262_v29 }
 0x4b0   :  { %2394 = vmatprep.subr.bf16.mxu1 %v2266_v42 }
 0x4b3   :  { %2395 = vmatpush1.bf16.msra.mxu1 %v2265_v52 }
 0x4b4   :  { %2396 = vmatprep.subr.bf16.mxu1 %v2269_v14 }
 0x4b7   :  { %2397 = vmatpush1.bf16.msra.mxu1 %v2268_v25 }
 0x4b8   :  { %2398 = vmatprep.subr.bf16.mxu1 %v2272_v46 }
 0x4bb   :  { %2399 = vmatpush1.bf16.msra.mxu1 %v2271_v40 }
 0x4bc   :  { %2400 = vmatprep.subr.bf16.mxu1 %v2275_v31 }
 0x4bf   :  { %2401 = vmatpush1.bf16.msra.mxu1 %v2274_v50 }
 0x4c0   :  { %2402 = vmatprep.subr.bf16.mxu1 %v2278_v43 }
 0x4c3   :  { %2403 = vmatpush1.bf16.msra.mxu1 %v2277_v38 }
 0x4c4   :  { %2404 = vmatprep.subr.bf16.mxu1 %v2281_v26 }
 0x4c7   :  { %2405 = vmatpush1.bf16.msra.mxu1 %v2280_v60 }
 0x4c8   :  { %2406 = vmatprep.subr.bf16.mxu1 %v2284_v9 }
 0x4cb   :  { %2407 = vmatpush1.bf16.msra.mxu1 %v2283_v54 }
 0x4cc   :  { %2408 = vmatprep.subr.bf16.mxu1 %v2287_v51 }
 0x4cf   :  { %2409 = vmatpush1.bf16.msra.mxu1 %v2286_v2 }
 0x4d0   :  { %2410 = vmatprep.subr.bf16.mxu1 %v2290_v11 }
 0x4d3   :  { %2411 = vmatpush1.bf16.msra.mxu1 %v2289_v41 }
 0x4d4   :  { %2412 = vmatprep.subr.bf16.mxu1 %v2293_v15 }
 0x4d7   :  { %2413 = vmatpush1.bf16.msra.mxu1 %v2292_v45 }
 0x4d8   :  { %2414 = vmatprep.subr.bf16.mxu1 %v2296_v47 }
 0x4db   :  { %2415 = vmatpush1.bf16.msra.mxu1 %v2295_v44 }
 0x4de   :  { %2417 = vmatmul.mubr.bf16.vlgmr.msra.gmra.mrb[8].mxu1 %v4064_v27 }
 0x512   :  { %v3061_v36 = vpop.f32.mrb[12].mxu0 }
 0x513   :  { %v3062_v49 = vpop.f32.mrb[13].mxu0 }
 0x514   :  { %v3063_v37 = vadd.f32 %v3062_v49, %v3061_v36  ;;  %v3064_v20 = vpop.f32.mrb[14].mxu0 }
 0x515   :  { %v3065_v57 = vpop.f32.mrb[15].mxu0 }
 0x516   :  { %v3066_v5 = vadd.f32 %v3065_v57, %v3064_v20 }
 0x533   :  { %v3083_v16 = vpop.f32.mrb[16].mxu0 }
 0x534   :  { %v3084_v17 = vpop.f32.mrb[17].mxu0 }
 0x535   :  { %v3085_v18 = vadd.f32 %v3084_v17, %v3083_v16  ;;  %v3086_v53 = vpop.f32.mrb[18].mxu0 }
 0x536   :  { %v3087_v39 = vpop.f32.mrb[19].mxu0 }
 0x537   :  { %v2503_v55 = vadd.f32 %v3085_v18, %v3063_v37  ;;  %v3088_v3 = vadd.f32 %v3087_v39, %v3086_v53 }
 0x539   :  { %v2506_v12 = vadd.f32 %v3088_v3, %v3066_v5 }
 0x553   :  { %v3105_v62 = vpop.f32.mrb[20].mxu0 }
 0x554   :  { %v3106_v23 = vpop.f32.mrb[21].mxu0 }
 0x555   :  { %v3107_v19 = vadd.f32 %v3106_v23, %v3105_v62  ;;  %v3108_v56 = vpop.f32.mrb[22].mxu0 }
 0x556   :  { %v3109_v22 = vpop.f32.mrb[23].mxu0 }
 0x557   :  { %v4070_v27 = vadd.f32 %v3107_v19, %v2503_v55  ;;  %v3110_v28 = vadd.f32 %v3109_v22, %v3108_v56 }
 0x559   :  { %v2573_v13 = vmul.f32 %v4070_v27, %v4070_v27  ;;  %v4074_v8 = vadd.f32 %v3110_v28, %v2506_v12 }
 0x55b   :  { %v2564_v0 = vadd.f32 %v4074_v8, %v4070_v27  ;;  %v2576_v10 = vmul.f32 %v4074_v8, %v4074_v8 }
 0x55d   :  { %v2565_v24 = vrot.slane %v2564_v0, 4  ;;  %v2591_v35 = vadd.f32 %v2576_v10, %v2573_v13 }
 0x55f   :  { %v2566_v30 = vadd.f32 %v2565_v24, %v2564_v0  ;;  %v2592_v32 = vrot.slane %v2591_v35, 4 }
 0x561   :  { %v2567_v33 = vrot.slane %v2566_v30, 2  ;;  %v2593_v34 = vadd.f32 %v2592_v32, %v2591_v35 }
 0x563   :  { %v2568_v58 = vadd.f32 %v2567_v33, %v2566_v30  ;;  %v2594_v63 = vrot.slane %v2593_v34, 2 }
 0x565   :  { %v2569_v61 = vrot.slane %v2568_v58, 1  ;;  %v2595_v1 = vadd.f32 %v2594_v63, %v2593_v34 }
 0x567   :  { %v2570_v21 = vadd.f32 %v2569_v61, %v2568_v58  ;;  %v2596_v48 = vrot.slane %v2595_v1, 1 }
 0x569   :  { %v2597_v29 = vadd.f32 %v2596_v48, %v2595_v1  ;;  %v4080_v42 = vmul.f32 0.0625, %v2570_v21 }
 0x56b   :  { %v2603_v52 = vmul.f32 0.0625, %v2597_v29  ;;  %v2606_v14 = vmul.f32 %v4080_v42, %v4080_v42 }
 0x56d   :  { %v2609_v25 = vsub.f32 %v2603_v52, %v2606_v14 }
 0x56f   :  { %v2612_v22 = vmax.f32 %v2609_v25, 0.0 }
 0x571   :  { %v2616_v33 = vadd.f32 1e-05, %v2612_v22 }
 0x573   :  { %3431 = vrsqrt.f32 %v2616_v33 }
 0x57d   :  { %v3432_v1 = vpop.eup %3431 }
 0x57e   :  { %v2637_v14 = vrot.slane %v3432_v1, %v3796_v59 }
 0x5b1   :  { %v4084_v46 = vpop.f32.mrb[8].mxu1 }
 0x5b2   :  { %v4086_v40 = vpop.f32.mrb[9].mxu1  ;;  %v2571_v50 = vmul.f32 %v4084_v46, %v4084_v46 }
 0x5b3   :  { %v4088_v31 = vpop.f32.mrb[10].mxu1  ;;  %v2572_v60 = vmul.f32 %v4086_v40, %v4086_v40 }
 0x5b4   :  { %v2550_v43 = vadd.f32 %v4088_v31, %v4084_v46  ;;  %v2574_v38 = vmul.f32 %v4088_v31, %v4088_v31  ;;  %v4096_v26 = vpop.f32.mrb[11].mxu1 }
 0x5b5   :  { %v2557_v9 = vadd.f32 %v4096_v26, %v4086_v40  ;;  %v2575_v54 = vmul.f32 %v4096_v26, %v4096_v26 }
 0x5b6   :  { %v2551_v51 = vrot.slane %v2550_v43, 4  ;;  %v2577_v2 = vadd.f32 %v2574_v38, %v2571_v50  ;;  %v2613_v50 = vld [vmem:[%s4172_s8] sm:$0x7] }
 0x5b7   :  { %v2558_v11 = vrot.slane %v2557_v9, 4  ;;  %v2584_v41 = vadd.f32 %v2575_v54, %v2572_v60 }
 0x5b8   :  { %v2552_v15 = vadd.f32 %v2551_v51, %v2550_v43  ;;  %v2578_v45 = vrot.slane %v2577_v2, 4 }
 0x5b9   :  { %v2559_v47 = vadd.f32 %v2558_v11, %v2557_v9  ;;  %v2585_v44 = vrot.slane %v2584_v41, 4 }
 0x5ba   :  { %v2553_v36 = vrot.slane %v2552_v15, 2  ;;  %v2579_v49 = vadd.f32 %v2578_v45, %v2577_v2 }
 0x5bb   :  { %v2560_v37 = vrot.slane %v2559_v47, 2  ;;  %v2586_v20 = vadd.f32 %v2585_v44, %v2584_v41 }
 0x5bc   :  { %v2554_v57 = vadd.f32 %v2553_v36, %v2552_v15  ;;  %v2580_v5 = vrot.slane %v2579_v49, 2 }
 0x5bd   :  { %v2561_v16 = vadd.f32 %v2560_v37, %v2559_v47  ;;  %v2587_v17 = vrot.slane %v2586_v20, 2 }
 0x5be   :  { %v2555_v18 = vrot.slane %v2554_v57, 1  ;;  %v2581_v53 = vadd.f32 %v2580_v5, %v2579_v49 }
 0x5bf   :  { %v2562_v39 = vrot.slane %v2561_v16, 1  ;;  %v2588_v55 = vadd.f32 %v2587_v17, %v2586_v20 }
 0x5c0   :  { %v2556_v3 = vadd.f32 %v2555_v18, %v2554_v57  ;;  %v2582_v12 = vrot.slane %v2581_v53, 1 }
 0x5c1   :  { %v2563_v62 = vadd.f32 %v2562_v39, %v2561_v16  ;;  %v2589_v23 = vrot.slane %v2588_v55, 1 }
 0x5c2   :  { %v2583_v19 = vadd.f32 %v2582_v12, %v2581_v53  ;;  %v2598_v56 = vmul.f32 0.0625, %v2556_v3 }
 0x5c3   :  { %v2590_v28 = vadd.f32 %v2589_v23, %v2588_v55  ;;  %v2599_v13 = vmul.f32 0.0625, %v2563_v62 }
 0x5c4   :  { %v2601_v0 = vmul.f32 0.0625, %v2583_v19  ;;  %v2604_v10 = vmul.f32 %v2598_v56, %v2598_v56 }
 0x5c5   :  { %v2602_v24 = vmul.f32 0.0625, %v2590_v28  ;;  %v2605_v35 = vmul.f32 %v2599_v13, %v2599_v13 }
 0x5c6   :  { %v2607_v30 = vsub.f32 %v2601_v0, %v2604_v10 }
 0x5c7   :  { %v2608_v32 = vsub.f32 %v2602_v24, %v2605_v35 }
 0x5c8   :  { %v2610_v34 = vmax.f32 %v2607_v30, 0.0 }
 0x5c9   :  { %v2611_v58 = vmax.f32 %v2608_v32, 0.0 }
 0x5ca   :  { %v2614_v63 = vadd.f32 1e-05, %v2610_v34 }
 0x5cb   :  { %v2615_v61 = vadd.f32 1e-05, %v2611_v58 }
 0x5cc   :  { %3433 = vrsqrt.f32 %v2614_v63 }
 0x5cd   :  { %3435 = vrsqrt.f32 %v2615_v61 }
 0x5d6   :  { %v3434_v21 = vpop.eup %3433 }
 0x5d7   :  { %v3436_v48 = vpop.eup %3435 }
 0x5d8   :  { %v2623_v29 = vcombine.low %v3434_v21, %v3436_v48 }
 0x5da   :  { %v2630_v52 = vrot.slane %v2623_v29, %v3796_v59 }
 0x5dc   :  { %v2638_v25 = vcombine.low %v2630_v52, %v2637_v14 }
 0x5de   :  { %v2645_v43 = vrot.slane %v2638_v25, %v3796_v59 }
 0x5e0   :  { %v2647_v38 = vmul.f32 %v2645_v43, %v2613_v50 }
 0x5e2   :  { %v2653_v60 = vrot.slane %v2647_v38, %v3801_v4  ;;  %v2657_v9 = vrot.slane %v2647_v38, %v3805_v6  ;;  %v2661_v54 = vrot.slane %v2647_v38, %v3808_v7 }
 0x5e4   :  { %v2665_v51 = vmul.f32 %v2653_v60, %v2598_v56  ;;  %v2666_v2 = vmul.f32 %v2657_v9, %v2599_v13  ;;  %v2667_v11 = vmul.f32 %v2661_v54, %v4080_v42  ;;  %v2696_v41 = vmul.f32 %v2653_v60, %v4084_v46  ;;  %v2648_v42 = vld [vmem:[%s4173_s9] sm:$0x7] }
 0x5e5   :  { %v2697_v15 = vmul.f32 %v2657_v9, %v4086_v40  ;;  %v2698_v45 = vmul.f32 %v2661_v54, %v4070_v27  ;;  %v2699_v47 = vmul.f32 %v2653_v60, %v4088_v31  ;;  %v2700_v44 = vmul.f32 %v2657_v9, %v4096_v26 }
 0x5e6   :  { %v2671_v36 = vcombine.low %v2665_v51, %v2666_v2  ;;  %v2701_v49 = vmul.f32 %v2661_v54, %v4074_v8  ;;  %v2685_v20 = vrot.slane %v2667_v11, %v3796_v59 }
 0x5e8   :  { %v2678_v37 = vrot.slane %v2671_v36, %v3796_v59 }
 0x5ea   :  { %v2686_v57 = vcombine.low %v2678_v37, %v2685_v20 }
 0x5ec   :  { %v2693_v46 = vrot.slane %v2686_v57, %v3796_v59 }
 0x5ee   :  { %v2695_v40 = vsub.f32 %v2648_v42, %v2693_v46 }
 0x5f0   :  { %v2706_v27 = vrot.slane %v2695_v40, %v3801_v4  ;;  %v2710_v31 = vrot.slane %v2695_v40, %v3805_v6  ;;  %v2714_v26 = vrot.slane %v2695_v40, %v3808_v7 }
 0x5f2   :  { %v4129_v5 = vadd.f32 %v2706_v27, %v2696_v41  ;;  %v2719_v8 = vadd.f32 %v2710_v31, %v2697_v15  ;;  %v4131_v16 = vadd.f32 %v2714_v26, %v2698_v45  ;;  %v4133_v17 = vadd.f32 %v2706_v27, %v2699_v47 }
 0x5f3   :  { %v2722_v18 = vadd.f32 %v2710_v31, %v2700_v44  ;;  %v4135_v53 = vadd.f32 %v2714_v26, %v2701_v49 }
 0x5f4   :  { %v2724_v39 = vmax.f32 %v4129_v5, 0.0  ;;  %v2725_v59 = vmax.f32 %v2719_v8, 0.0  ;;  %v2726_v55 = vmax.f32 %v4131_v16, 0.0  ;;  %v2727_v4 = vmax.f32 %v4133_v17, 0.0 }
 0x5f5   :  { %v2728_v6 = vmax.f32 %v2722_v18, 0.0  ;;  %v2729_v7 = vmax.f32 %v4135_v53, 0.0 }
 0x5f6   :  { %3587 = dma.done.wait [#allocation5 + $0x2], 3072 }
 0x5f7   :  { %3588 = vsyncadd [#allocation5 + $0x2], 4294964224  ;;  %v2735_v3 = vpack.c.bf16 %v2728_v6, %v2725_v59  ;;  %v3616_v12 = vmov 0.0   ;;  %vm3617_vm0 = vmmov 0   ;;  %v2745_v62 = vld [vmem:[#allocation4 + $0x40] sm:$0xff]  ;;  %v2746_v56 = vld [vmem:[#allocation4 + $0x48] sm:$0xff]  ;;  %v2736_v25 = vpack.c.bf16 %v2729_v7, %v2726_v55 }
 0x5f8   :  { %3142 = vmatprep.subr.bf16.mxu0 %v3616_v12  ;;  %3158 = vmatprep.mubr.msk.bf16.mxu0 %vm3617_vm0, %v3616_v12  ;;  %v2737_v23 = vld [vmem:[#allocation4] sm:$0xff]  ;;  %v2754_v22 = vld [vmem:[#allocation4 + $0x88] sm:$0xff]  ;;  %v2747_v13 = vld [vmem:[#allocation4 + $0x50] sm:$0xff]  ;;  %v2734_v50 = vpack.c.bf16 %v2727_v4, %v2724_v39 }
 0x5f9   :  { %2800 = vmatprep.mubr.bf16.mxu1 %v2735_v3  ;;  %v2753_v19 = vld [vmem:[#allocation4 + $0x80] sm:$0xff]  ;;  %3111 = vmatprep.subr.bf16.mxu1 %v2745_v62  ;;  %v2738_v28 = vld [vmem:[#allocation4 + $0x8] sm:$0xff]  ;;  %v2755_v0 = vld [vmem:[#allocation4 + $0x90] sm:$0xff] }
 0x5fa   :  { %3143 = vmatpush3.bf16.msra.mxu0 %v2753_v19  ;;  %3112 = vmatpush3.bf16.msra.mxu1 %v2737_v23  ;;  %v2739_v10 = vld [vmem:[#allocation4 + $0x10] sm:$0xff]  ;;  %v2748_v24 = vld [vmem:[#allocation4 + $0x58] sm:$0xff]  ;;  %v2749_v32 = vld [vmem:[#allocation4 + $0x60] sm:$0xff] }
 0x5fb   :  { %3144 = vmatprep.subr.bf16.mxu0 %v3616_v12  ;;  %3113 = vmatprep.subr.bf16.mxu1 %v2746_v56  ;;  %v2756_v35 = vld [vmem:[#allocation4 + $0x98] sm:$0xff]  ;;  %v2757_v33 = vld [vmem:[#allocation4 + $0xa0] sm:$0xff]  ;;  %v2750_v58 = vld [vmem:[#allocation4 + $0x68] sm:$0xff] }
 0x5fc   :  { %v2740_v30 = vld [vmem:[#allocation4 + $0x18] sm:$0xff]  ;;  %v2741_v34 = vld [vmem:[#allocation4 + $0x20] sm:$0xff]  ;;  %v2758_v63 = vld [vmem:[#allocation4 + $0xa8] sm:$0xff] }
 0x5fd   :  { %v2742_v61 = vld [vmem:[#allocation4 + $0x28] sm:$0xff]  ;;  %v2751_v1 = vld [vmem:[#allocation4 + $0x70] sm:$0xff]  ;;  %v2752_v29 = vld [vmem:[#allocation4 + $0x78] sm:$0xff] }
 0x5fe   :  { %3145 = vmatpush3.bf16.msra.mxu0 %v2754_v22  ;;  %3114 = vmatpush3.bf16.msra.mxu1 %v2738_v28  ;;  %v2759_v21 = vld [vmem:[#allocation4 + $0xb0] sm:$0xff]  ;;  %v2760_v52 = vld [vmem:[#allocation4 + $0xb8] sm:$0xff]  ;;  %v3041_v54 = vld [vmem:[%s4175_s11] ss:$0 sm:$0xff]  ;;  %s3618_s11 = smov [#allocation14]  }
 0x5ff   :  { %3146 = vmatprep.subr.bf16.mxu0 %v3616_v12  ;;  %3115 = vmatprep.subr.bf16.mxu1 %v2747_v13  ;;  %v2743_v48 = vld [vmem:[#allocation4 + $0x30] sm:$0xff]  ;;  %v2744_v14 = vld [vmem:[#allocation4 + $0x38] sm:$0xff]  ;;  %s2875_s30 = sshll.u32 %s3618_s11, 4  ;;  %s2876_s30 = int_to_ptr.vmem [resolvable:$true] %s2875_s30 }
 0x600   :  { %s3555_s14 = scalar_lea.vmem %s2876_s30, 256  ;;  %p3560_p13 = scmp.lt.s32.totalorder %s2876_s30, %s2876_s30 }
 0x601   :  { %p3556_p12 = scmp.ne.s32.totalorder %s2876_s30, %s3555_s14  ;;  %p3561_p0 = scmp.lt.s32.totalorder %s3555_s14, %s3555_s14 }
 0x602   :  { %3147 = vmatpush3.bf16.msra.mxu0 %v2755_v0  ;;  %3116 = vmatpush3.bf16.msra.mxu1 %v2739_v10 }
 0x603   :  { %3148 = vmatprep.subr.bf16.mxu0 %v3616_v12  ;;  %3117 = vmatprep.subr.bf16.mxu1 %v2748_v24  ;;  %p3562_p1 = por %p3561_p0, %p3560_p13 }
 0x605   :  { %p3563_p2 = pnand %p3562_p1, %p3556_p12 }
 0x606   :  { %3149 = vmatpush3.bf16.msra.mxu0 %v2756_v35  ;;  %3118 = vmatpush3.bf16.msra.mxu1 %v2740_v30 }
 0x607   :  { %3150 = vmatprep.subr.bf16.mxu0 %v3616_v12  ;;  %3119 = vmatprep.subr.bf16.mxu1 %v2749_v32 }
 0x60a   :  { %3151 = vmatpush3.bf16.msra.mxu0 %v2757_v33  ;;  %3120 = vmatpush3.bf16.msra.mxu1 %v2741_v34 }
 0x60b   :  { %3152 = vmatprep.subr.bf16.mxu0 %v3616_v12  ;;  %3121 = vmatprep.subr.bf16.mxu1 %v2750_v58 }
 0x60e   :  { %3153 = vmatpush3.bf16.msra.mxu0 %v2758_v63  ;;  %3122 = vmatpush3.bf16.msra.mxu1 %v2742_v61 }
 0x60f   :  { %3154 = vmatprep.subr.bf16.mxu0 %v3616_v12  ;;  %3123 = vmatprep.subr.bf16.mxu1 %v2751_v1 }
 0x612   :  { %3155 = vmatpush3.bf16.msra.mxu0 %v2759_v21  ;;  %3124 = vmatpush3.bf16.msra.mxu1 %v2743_v48 }
 0x613   :  { %3156 = vmatprep.subr.bf16.mxu0 %v3616_v12  ;;  %3125 = vmatprep.subr.bf16.mxu1 %v2752_v29 }
 0x616   :  { %3157 = vmatpush3.bf16.msra.mxu0 %v2760_v52  ;;  %3126 = vmatpush3.bf16.msra.mxu1 %v2744_v14 }
 0x619   :  { %3159 = vmatmul.mubr.bf16.vlgmr.msra.gmra.mrb[24].mxu0 %v2736_v25  ;;  %2801 = vmatmul.mubr.bf16.vlgmr.msra.gmra.mrb[12].mxu1 %v2734_v50 }
 0x6ec   :  { %v2843_v43 = vpop.f32.mrb[24].mxu0  ;;  %v3127_v38 = vpop.f32.mrb[12].mxu1 }
 0x6ed   :  { %v3160_v60 = vpop.f32.mrb[25].mxu0  ;;  %v3128_v9 = vpop.f32.mrb[13].mxu1 }
 0x6ee   :  { %v2846_v51 = vpop.f32.mrb[26].mxu0  ;;  %v3129_v2 = vadd.f32 %v3128_v9, %v3127_v38  ;;  %v3130_v11 = vpop.f32.mrb[14].mxu1 }
 0x6ef   :  { %v3161_v41 = vpop.f32.mrb[27].mxu0  ;;  %v3131_v15 = vpop.f32.mrb[15].mxu1 }
 0x6f0   :  { %v2803_v45 = vadd.f32 %v3129_v2, %v3041_v54  ;;  %v3132_v47 = vadd.f32 %v3131_v15, %v3130_v11 }
 0x6f2   :  { %v2844_v44 = vadd.f32 %v2843_v43, %v2803_v45  ;;  %v2806_v36 = vadd.f32 %v3132_v47, %v3041_v54 }
 0x6f4   :  { %v2847_v49 = vadd.f32 %v2846_v51, %v2806_v36  ;;  %2850 = vmax.xlane.f32.xlu0 %v2844_v44 }
 0x6f8   :  { %2852 = vmax.xlane.f32.xlu0 %v2847_v49 }
 0x781   :  { %v2851_v37 = vpop.xlane.xlu0 %2850 }
 0x782   :  { %v2854_v20 = vsub.f32 %v2844_v44, %v2851_v37 }
 0x784   :  { %v2856_v57 = vmul.f32 1.442695, %v2854_v20 }
 0x785   :  { %v2853_v42 = vpop.xlane.xlu0 %2852 }
 0x786   :  { %3437 = vpow2.f32 %v2856_v57  ;;  %v2855_v46 = vsub.f32 %v2847_v49, %v2853_v42 }
 0x788   :  { %v2858_v40 = vmul.f32 1.442695, %v2855_v46 }
 0x78a   :  { %3439 = vpow2.f32 %v2858_v40 }
 0x790   :  { %v3438_v27 = vpop.eup %3437 }
 0x791   :  { %2860 = vadd.xlane.f32.xlu1 %v3438_v27 }
 0x794   :  { %v3440_v31 = vpop.eup %3439 }
 0x795   :  { %2862 = vadd.xlane.f32.xlu1 %v3440_v31 }
 0x81e   :  { %v2861_v26 = vpop.xlane.xlu1 %2860 }
 0x81f   :  { %3441 = vrcp.f32 %v2861_v26 }
 0x822   :  { %v2863_v5 = vpop.xlane.xlu1 %2862 }
 0x823   :  { %3443 = vrcp.f32 %v2863_v5 }
 0x829   :  { %v3442_v8 = vpop.eup %3441 }
 0x82a   :  { %v2866_v16 = vmul.f32 %v3442_v8, %v3438_v27 }
 0x82c   :  { %2868 = vst [vmem:[#allocation14] sm:$0xff] %v2866_v16 }
 0x82d   :  { %v3444_v17 = vpop.eup %3443 }
 0x82e   :  { %v2867_v18 = vmul.f32 %v3444_v17, %v3440_v31 }
 0x830   :  { %2869 = vst [vmem:[#allocation14 + $0x8] sm:$0xff] %v2867_v18 }
 0x831   :  { %3566 = shalt.err (!%p3563_p2)
}
 0x832   :  { %s3567_s16 = scalar_lea.hbm %s4176_s12, 256 }
 0x833   :  { %p3568_p3 = scmp.ne.s32.totalorder %s4176_s12, %s3567_s16  ;;  %p3571_p4 = scmp.lt.u32.totalorder %s3567_s16, %s4176_s12 }
 0x835   :  { %p3573_p5 = pnand %p3571_p4, %p3568_p3 }
 0x837   :  { %3576 = shalt.err (!%p3573_p5)
}
 0x838   :  { %s3619_s20 = smov 8  }
 0x839   :  { %2881 = dma.vmem_to_hbm [thread:$0]  %s2876_s30, 256, %s4176_s12, [#allocation8], %s3603_s24, %s3603_s24, %s3619_s20  }
 0x83a   :  { %3589 = dma.done.wait [#allocation8], 256  }
 0x83b   :  { %3590 = vsyncadd [#allocation8], 4294967040 }
 0x83c   :  { %2885 = vsyncpa [#allocation7], 1 }
 0x83d   :  { %2886 = vsyncpa [#allocation10], 1 }
 0x83e   :  { %2887 = vsyncpa [#allocation13], 1 }
 0x83f   :  { %2888 = vsyncpa [#allocation8], 1 }
 0x840   :  { %2889 = vsyncmov [#allocation5] }
 0x843   :  { %s2890_s3 = vpop.sfrf %2889 }
 0x844   :  { %p3042_p6 = scmp.ne.s32.totalorder %s2890_s3, 0 }
 0x846   :  { %2894 = shalt.err (%p3042_p6)  }
 0x847   :  { %2896 = vsyncmov [#allocation5 + $0x1] }
 0x84a   :  { %s2897_s15 = vpop.sfrf %2896 }
 0x84b   :  { %p3043_p7 = scmp.ne.s32.totalorder %s2897_s15, 0 }
 0x84d   :  { %2901 = shalt.err (%p3043_p7)  }
 0x84e   :  { %2903 = vsyncmov [#allocation5 + $0x2] }
 0x851   :  { %s2904_s0 = vpop.sfrf %2903 }
 0x852   :  { %p3044_p8 = scmp.ne.s32.totalorder %s2904_s0, 0 }
 0x854   :  { %2908 = shalt.err (%p3044_p8)  }

</bundles_post_ra>
